<compile_context>
chip_gen: v7x
topology: tpu7x:2x2x1
jax: 0.10.0
libtpu: 0.0.40
codegen_flags: <defaults>
</compile_context>

<pallas_src>
import functools

import numpy as np

import jax
import jax.numpy as jnp
from jax import lax
from jax.experimental import pallas as pl
from jax.experimental.pallas import tpu as pltpu


# ------------------------- one-time parameter prep --------------------------

def _banded(w_oihw, w_in, pad, k_pad, half_pad=256):
    """Banded conv-as-matmul weights.

    Output: (KH, k_pad, 2*half_pad) where
      mats[kh, w*Cin + cin, dw*half_pad + wp*Cout + co] = W[co, cin, kh, kw],
      kw = w + pad - (2*wp + dw)   (zero outside 0 <= kw < KW).
    W zero padding and the 2x2 W-pool (dw = even/odd output column) are folded
    into the matrix; each dw half is zero-padded to `half_pad` lanes so the
    W-pool max in-kernel is vreg-aligned.
    """
    w = np.asarray(w_oihw, np.float32)                  # (Cout, Cin, KH, KW)
    cout, cin_n, kh_n, kw_n = w.shape
    wk = w.transpose(2, 3, 1, 0)                        # (KH, KW, Cin, Cout)
    w_out = w_in + 2 * pad - kw_n + 1                   # 'same' conv width
    wp_n = w_out // 2                                   # pooled width
    mats = np.zeros((kh_n, k_pad, 2 * half_pad), np.float32)
    for kh in range(kh_n):
        for dw in range(2):
            for wp in range(wp_n):
                for wi in range(w_in):
                    kw = wi + pad - (2 * wp + dw)
                    if 0 <= kw < kw_n:
                        mats[kh,
                             wi * cin_n:(wi + 1) * cin_n,
                             dw * half_pad + wp * cout:
                             dw * half_pad + (wp + 1) * cout] = wk[kh, kw]
    return mats


def prepare_params(params):
    """One-time re-layout of PyTorch-style weights for the fused kernel."""
    # conv1: fold KH into K -> (140, 512); conv2: per-kh (5, 256, 512).
    m1 = _banded(params["w1"], w_in=28, pad=2, k_pad=28).reshape(5 * 28, 512)
    m2 = _banded(params["w2"], w_in=14, pad=2, k_pad=256)        # (5, 256, 512)

    b1 = np.asarray(params["b1"], np.float32)
    b2 = np.asarray(params["b2"], np.float32)
    b1row = np.zeros((1, 256), np.float32)
    b1row[0, :224] = np.tile(b1, 14)                   # lane = wp*16 + co
    b2row = np.zeros((1, 256), np.float32)
    b2row[0, :224] = np.tile(b2, 7)                    # lane = wp*32 + co

    # Linear weight permuted to the (hp, wp*32+co) activation layout; K padded
    # 224 -> 256, N padded 10 -> 128 so logits stores are full-lane writes.
    wo = np.asarray(params["w_out"], np.float32).reshape(10, 32, 7, 7)
    wl = np.zeros((7, 256, 128), np.float32)
    wl[:, :224, :10] = wo.transpose(2, 3, 1, 0).reshape(7, 7 * 32, 10)
    bo = np.zeros((1, 128), np.float32)
    bo[0, :10] = np.asarray(params["b_out"], np.float32)

    return {
        "m1": jnp.asarray(m1, jnp.bfloat16),
        "m2": jnp.asarray(m2, jnp.bfloat16),
        "b1row": jnp.asarray(b1row),
        "b2row": jnp.asarray(b2row),
        "wl": jnp.asarray(wl, jnp.bfloat16),
        "borow": jnp.asarray(bo),
    }


# ------------------------------ fused kernel --------------------------------

def _cnn_fused_kernel(x1_ref, m1_ref, b1_ref, m2_ref, b2_ref, wl_ref, bo_ref,
                      feat_ref, logits_ref, p0_ref, p1_ref, p2_ref, *, nb):
    f32, bf16 = jnp.float32, jnp.bfloat16
    M8 = nb * 8        # 8 rows per image: [pad/dummy, t=0..6]

    # Rows j*8 of each 8-row group are conv2's top H-padding rows -> force 0.
    pad_mask = (lax.broadcasted_iota(jnp.int32, (M8, 1), 0) % 8) != 0

    # ---- stage 1: conv1 (KH folded into K=140) + bias + ReLU + 2x2 pool -----
    # x1 block rows: c*(nb*8) + j*8 + s with c = 2p+dh, s=0 dummy, s=1..7 <-> t.
    for p, dst in ((0, p0_ref), (1, p1_ref)):
        lhs = x1_ref[2 * p * M8:(2 * p + 2) * M8, :]               # (2*M8, 140)
        r = jnp.dot(lhs, m1_ref[...], preferred_element_type=f32)  # (2*M8, 512)
        m = jnp.maximum(r[:M8, :], r[M8:, :])          # H-pool (dh = 0 vs 1)
        m = jnp.maximum(m[:, :256], m[:, 256:])        # W-pool (lane halves)
        act = jnp.maximum(m + b1_ref[...], 0.0)        # bias + ReLU (f32)
        act = jnp.where(pad_mask, act, 0.0)            # zero the pad rows
        dst[0:M8, :] = act.astype(bf16)
        dst[M8:M8 + 8, :] = jnp.zeros((8, 256), bf16)  # bottom H-pad rows

    # ---- stage 2: conv2 (kh loop, batched M = nb*8) + bias + ReLU + pool ----
    bufs = (p0_ref, p1_ref)
    acc0 = None
    acc1 = None
    for kh in range(5):
        w = m2_ref[kh]                                              # (256, 512)
        for dh in (0, 1):
            o = dh + kh
            lhs = bufs[o % 2][(o // 2):(o // 2) + M8, :]            # (M8, 256)
            d = jnp.dot(lhs, w, preferred_element_type=f32)         # (M8, 512)
            if dh == 0:
                acc0 = d if acc0 is None else acc0 + d
            else:
                acc1 = d if acc1 is None else acc1 + d
    m = jnp.maximum(acc0, acc1)                        # H-pool
    m = jnp.maximum(m[:, :256], m[:, 256:])            # W-pool
    pooled2 = jnp.maximum(m + b2_ref[...], 0.0)        # (M8, 256) f32
    feat_ref[...] = pooled2                            # rows j*8+7 are junk
    p2_ref[0:M8, :] = pooled2.astype(bf16)
    p2_ref[M8:M8 + 8, :] = jnp.zeros((8, 256), bf16)

    # ---- stage 3: Linear(1568 -> 10), hp folded via row-offset slices -------
    # logits[i] = sum_hp pooled2[i*8 + hp] @ WL[hp]; valid rows are j*8 + 0.
    logits = None
    for hp in range(7):
        d = jnp.dot(p2_ref[hp:hp + M8, :], wl_ref[hp],
                    preferred_element_type=f32)                    # (M8, 128)
        logits = d if logits is None else logits + d
    logits_ref[...] = logits + bo_ref[...]


# ------------------------------ forward pass --------------------------------

def cnn_forward(x_nchw, prep, nb=4):
    B = x_nchw.shape[0]
    G = (B + nb - 1) // nb
    Bp = G * nb

    x = x_nchw[:, 0]                                               # (B, 28, 28)
    if Bp != B:
        x = jnp.concatenate([x, jnp.zeros((Bp - B, 28, 28), x.dtype)], axis=0)
    xpad = jnp.pad(x, ((0, 0), (2, 2), (0, 0)))                    # (Bp, 32, 28)

    # Tiny XLA glue: H-im2col slab for the KH-folded conv1 matmul.
    # Slab row (c, s) of an image (c = 2p+dh, s = t+1) holds the 5 padded input
    # rows 4t + c + kh (kh = 0..4) concatenated along lanes; s = 0 is a zero
    # dummy row (it becomes conv2's top H-padding after pooling).
    rows = (np.arange(4)[:, None, None] + 4 * np.arange(7)[None, :, None]
            + np.arange(5)[None, None, :])                         # (4, 7, 5)
    slab = xpad[:, rows, :].reshape(Bp, 4, 7, 140)
    slab = jnp.concatenate(
        [jnp.zeros((Bp, 4, 1, 140), slab.dtype), slab], axis=2)    # (Bp,4,8,140)
    slab = slab.reshape(G, nb, 4, 8, 140).transpose(0, 2, 1, 3, 4)
    slab = slab.reshape(G * 4 * nb * 8, 140).astype(jnp.bfloat16)

    M8 = nb * 8
    feat_raw, logits_raw = pl.pallas_call(
        functools.partial(_cnn_fused_kernel, nb=nb),
        out_shape=(
            jax.ShapeDtypeStruct((G * M8, 256), jnp.float32),
            jax.ShapeDtypeStruct((G * M8, 128), jnp.float32),
        ),
        grid=(G,),
        in_specs=[
            pl.BlockSpec((4 * M8, 140), lambda g: (g, 0)),    # conv1 im2col slab
            pl.BlockSpec((140, 512), lambda g: (0, 0)),       # conv1 folded weights
            pl.BlockSpec((1, 256), lambda g: (0, 0)),         # conv1 bias row
            pl.BlockSpec((5, 256, 512), lambda g: (0, 0, 0)),  # conv2 band weights
            pl.BlockSpec((1, 256), lambda g: (0, 0)),         # conv2 bias row
            pl.BlockSpec((7, 256, 128), lambda g: (0, 0, 0)),  # linear weights
            pl.BlockSpec((1, 128), lambda g: (0, 0)),          # linear bias row
        ],
        out_specs=(
            pl.BlockSpec((M8, 256), lambda g: (g, 0)),
            pl.BlockSpec((M8, 128), lambda g: (g, 0)),
        ),
        scratch_shapes=[
            pltpu.VMEM((M8 + 8, 256), jnp.bfloat16),   # pooled1, even rows (padded)
            pltpu.VMEM((M8 + 8, 256), jnp.bfloat16),   # pooled1, odd rows (padded)
            pltpu.VMEM((M8 + 8, 256), jnp.bfloat16),   # pooled2 (padded, for linear)
        ],
        compiler_params=pltpu.CompilerParams(
            dimension_semantics=("parallel",),
        ),
    )(slab, prep["m1"], prep["b1row"], prep["m2"], prep["b2row"],
      prep["wl"], prep["borow"])

    # Valid rows: image i -> rows i*8 + hp (hp < 7) for features, i*8 for logits.
    feat = feat_raw.reshape(G * nb, 8, 256)[:B, :7, :224]          # (B, 7, 224)
    feat = feat.reshape(B, 7, 7, 32).transpose(0, 3, 1, 2).reshape(B, 32 * 7 * 7)
    logits = logits_raw.reshape(G * nb, 8, 128)[:B, 0, :10]
    return logits, feat


# ------------------------- pure-JAX reference check -------------------------

def ref_forward(x_nchw, p):
    hi = lax.Precision.HIGHEST
    y = lax.conv_general_dilated(x_nchw, p["w1"], (1, 1), ((2, 2), (2, 2)),
                                 dimension_numbers=("NCHW", "OIHW", "NCHW"),
                                 precision=hi)
    y = jax.nn.relu(y + p["b1"][None, :, None, None])
    y = lax.reduce_window(y, -jnp.inf, lax.max, (1, 1, 2, 2), (1, 1, 2, 2), "VALID")
    y = lax.conv_general_dilated(y, p["w2"], (1, 1), ((2, 2), (2, 2)),
                                 dimension_numbers=("NCHW", "OIHW", "NCHW"),
                                 precision=hi)
    y = jax.nn.relu(y + p["b2"][None, :, None, None])
    y = lax.reduce_window(y, -jnp.inf, lax.max, (1, 1, 2, 2), (1, 1, 2, 2), "VALID")
    flat = y.reshape(y.shape[0], -1)
    out = jnp.dot(flat, p["w_out"].T, precision=hi) + p["b_out"]
    return out, flat


# ---------------------------------- main ------------------------------------

if __name__ == "__main__":
    key = jax.random.PRNGKey(0)
    kx, k1, k2, k3, k4, k5, k6 = jax.random.split(key, 7)

    # 28x28 spatial is required by the Linear(32*7*7, 10) layer.
    B = 6
    x = jax.random.normal(kx, (B, 1, 28, 28), jnp.float32)

    params = {
        "w1": 0.05 * jax.random.normal(k1, (16, 1, 5, 5), jnp.float32),
        "b1": 0.05 * jax.random.normal(k2, (16,), jnp.float32),
        "w2": 0.05 * jax.random.normal(k3, (32, 16, 5, 5), jnp.float32),
        "b2": 0.05 * jax.random.normal(k4, (32,), jnp.float32),
        "w_out": 0.05 * jax.random.normal(k5, (10, 32 * 7 * 7), jnp.float32),
        "b_out": 0.05 * jax.random.normal(k6, (10,), jnp.float32),
    }

    prep = prepare_params(params)        # one-time weight re-layout (host side)

    fwd = jax.jit(cnn_forward, static_argnames=("nb",))
    out, feat = fwd(x, prep, nb=4)       # grid of 2 steps (both v7x TCs busy)
    jax.block_until_ready((out, feat))

    assert out.shape == (B, 10), out.shape
    assert feat.shape == (B, 32 * 7 * 7), feat.shape

    ref_out, ref_feat = ref_forward(x, params)
    assert jnp.allclose(out, ref_out, atol=2e-2, rtol=2e-2)
    assert jnp.allclose(feat, ref_feat, atol=2e-2, rtol=2e-2)

    print("KERNEL_OK")
</pallas_src>

<mosaic_0001>
module attributes {stable_mosaic.version = 11 : i64} {
  func.func @_cnn_fused_kernel(%arg0: i32, %arg1: memref<128x140xbf16, #tpu.memory_space<vmem>>, %arg2: memref<140x512xbf16, #tpu.memory_space<vmem>>, %arg3: memref<1x256xf32, #tpu.memory_space<vmem>>, %arg4: memref<5x256x512xbf16, #tpu.memory_space<vmem>>, %arg5: memref<1x256xf32, #tpu.memory_space<vmem>>, %arg6: memref<7x256x128xbf16, #tpu.memory_space<vmem>>, %arg7: memref<1x128xf32, #tpu.memory_space<vmem>>, %arg8: memref<32x256xf32, #tpu.memory_space<vmem>>, %arg9: memref<32x128xf32, #tpu.memory_space<vmem>>, %arg10: memref<40x256xbf16, #tpu.memory_space<vmem>>, %arg11: memref<40x256xbf16, #tpu.memory_space<vmem>>, %arg12: memref<40x256xbf16, #tpu.memory_space<vmem>>) attributes {dimension_semantics = [#tpu.dimension_semantics<parallel>], iteration_bounds = array<i64: 2>, scalar_prefetch = 0 : i64, scratch_operands = 3 : i64, tpu.core_type = #tpu.core_type<tc>, window_params = [{transform_indices = @transform_0, window_bounds = array<i64: 128, 140>}, {pipeline_mode = #tpu.pipeline_mode<synchronous>, transform_indices = @transform_1, window_bounds = array<i64: 140, 512>}, {pipeline_mode = #tpu.pipeline_mode<synchronous>, transform_indices = @transform_2, window_bounds = array<i64: 1, 256>}, {pipeline_mode = #tpu.pipeline_mode<synchronous>, transform_indices = @transform_3, window_bounds = array<i64: 5, 256, 512>}, {pipeline_mode = #tpu.pipeline_mode<synchronous>, transform_indices = @transform_4, window_bounds = array<i64: 1, 256>}, {pipeline_mode = #tpu.pipeline_mode<synchronous>, transform_indices = @transform_5, window_bounds = array<i64: 7, 256, 128>}, {pipeline_mode = #tpu.pipeline_mode<synchronous>, transform_indices = @transform_6, window_bounds = array<i64: 1, 128>}, {transform_indices = @transform_7, window_bounds = array<i64: 32, 256>}, {transform_indices = @transform_8, window_bounds = array<i64: 32, 128>}]} {
    %0 = tpu.iota {dimensions = array<i32: 0>} : vector<32x1xi32>
    %c8_i32 = arith.constant 8 : i32
    %c0_i32 = arith.constant 0 : i32
    %1 = arith.cmpi eq, %c8_i32, %c0_i32 : i32
    %c1_i32 = arith.constant 1 : i32
    %2 = arith.select %1, %c1_i32, %c8_i32 : i32
    %3 = vector.broadcast %2 : i32 to vector<32x1xi32>
    %4 = arith.remsi %0, %3 : vector<32x1xi32>
    %c0_i32_0 = arith.constant 0 : i32
    %5 = vector.broadcast %c0_i32_0 : i32 to vector<32x1xi32>
    %6 = arith.cmpi ne, %4, %5 : vector<32x1xi32>
    %c0_i32_1 = arith.constant 0 : i32
    %7 = vector.broadcast %c0_i32_1 : i32 to vector<32x1xi32>
    %8 = arith.cmpi slt, %4, %7 : vector<32x1xi32>
    %c0_i32_2 = arith.constant 0 : i32
    %9 = arith.cmpi slt, %2, %c0_i32_2 : i32
    %10 = vector.broadcast %9 : i1 to vector<32x1xi1>
    %11 = vector.broadcast %10 : vector<32x1xi1> to vector<32x1xi1>
    %12 = arith.xori %8, %11 : vector<32x1xi1>
    %13 = arith.andi %12, %6 : vector<32x1xi1>
    %14 = vector.broadcast %2 : i32 to vector<32x1xi32>
    %15 = arith.addi %4, %14 : vector<32x1xi32>
    %16 = arith.select %13, %15, %4 : vector<32x1xi1>, vector<32x1xi32>
    %c0_i32_3 = arith.constant 0 : i32
    %17 = vector.broadcast %c0_i32_3 : i32 to vector<32x1xi32>
    %18 = arith.cmpi ne, %16, %17 : vector<32x1xi32>
    %c0 = arith.constant 0 : index
    %c0_4 = arith.constant 0 : index
    %19 = vector.load %arg1[%c0, %c0_4] : memref<128x140xbf16, #tpu.memory_space<vmem>>, vector<64x140xbf16>
    %c0_5 = arith.constant 0 : index
    %c0_6 = arith.constant 0 : index
    %20 = vector.load %arg2[%c0_5, %c0_6] : memref<140x512xbf16, #tpu.memory_space<vmem>>, vector<140x512xbf16>
    %cst = arith.constant dense<0.000000e+00> : vector<64x512xf32>
    %21 = tpu.matmul %19, %20, %cst {dimension_numbers = #tpu.dot_dimension_numbers<[1], [0], [0], [1], [0, 0, 1, 1], [], []>} : vector<64x140xbf16>, vector<140x512xbf16>, vector<64x512xf32> -> vector<64x512xf32>
    %22 = vector.extract_strided_slice %21 {offsets = [0, 0], sizes = [32, 512], strides = [1, 1]} : vector<64x512xf32> to vector<32x512xf32>
    %23 = vector.extract_strided_slice %21 {offsets = [32, 0], sizes = [32, 512], strides = [1, 1]} : vector<64x512xf32> to vector<32x512xf32>
    %24 = arith.maximumf %22, %23 : vector<32x512xf32>
    %25 = vector.extract_strided_slice %24 {offsets = [0, 0], sizes = [32, 256], strides = [1, 1]} : vector<32x512xf32> to vector<32x256xf32>
    %26 = vector.extract_strided_slice %24 {offsets = [0, 256], sizes = [32, 256], strides = [1, 1]} : vector<32x512xf32> to vector<32x256xf32>
    %27 = arith.maximumf %25, %26 : vector<32x256xf32>
    %c0_7 = arith.constant 0 : index
    %c0_8 = arith.constant 0 : index
    %28 = vector.load %arg3[%c0_7, %c0_8] : memref<1x256xf32, #tpu.memory_space<vmem>>, vector<1x256xf32>
    %29 = vector.broadcast %28 : vector<1x256xf32> to vector<32x256xf32>
    %30 = arith.addf %27, %29 : vector<32x256xf32>
    %cst_9 = arith.constant 0.000000e+00 : f32
    %31 = vector.broadcast %cst_9 : f32 to vector<32x256xf32>
    %32 = arith.maximumf %30, %31 : vector<32x256xf32>
    %cst_10 = arith.constant 0.000000e+00 : f32
    %33 = vector.shape_cast %18 : vector<32x1xi1> to vector<32x1xi1>
    %34 = vector.broadcast %33 : vector<32x1xi1> to vector<32x256xi1>
    %35 = vector.broadcast %cst_10 : f32 to vector<32x256xf32>
    %36 = arith.select %34, %32, %35 : vector<32x256xi1>, vector<32x256xf32>
    %37 = arith.truncf %36 : vector<32x256xf32> to vector<32x256xbf16>
    %c0_11 = arith.constant 0 : index
    %c0_12 = arith.constant 0 : index
    %38 = vector.load %arg10[%c0_11, %c0_12] : memref<40x256xbf16, #tpu.memory_space<vmem>>, vector<32x256xbf16>
    tpu.vector_store %arg10[%c0_11, %c0_12], %37 {strides = array<i32>} : memref<40x256xbf16, #tpu.memory_space<vmem>>, vector<32x256xbf16>,
    %cst_13 = arith.constant 0.000000e+00 : bf16
    %39 = vector.broadcast %cst_13 : bf16 to vector<8x256xbf16>
    %c32 = arith.constant 32 : index
    %c0_14 = arith.constant 0 : index
    %40 = vector.load %arg10[%c32, %c0_14] : memref<40x256xbf16, #tpu.memory_space<vmem>>, vector<8x256xbf16>
    tpu.vector_store %arg10[%c32, %c0_14], %39 {strides = array<i32>} : memref<40x256xbf16, #tpu.memory_space<vmem>>, vector<8x256xbf16>,
    %c64 = arith.constant 64 : index
    %c0_15 = arith.constant 0 : index
    %41 = vector.load %arg1[%c64, %c0_15] : memref<128x140xbf16, #tpu.memory_space<vmem>>, vector<64x140xbf16>
    %c0_16 = arith.constant 0 : index
    %c0_17 = arith.constant 0 : index
    %42 = vector.load %arg2[%c0_16, %c0_17] : memref<140x512xbf16, #tpu.memory_space<vmem>>, vector<140x512xbf16>
    %cst_18 = arith.constant dense<0.000000e+00> : vector<64x512xf32>
    %43 = tpu.matmul %41, %42, %cst_18 {dimension_numbers = #tpu.dot_dimension_numbers<[1], [0], [0], [1], [0, 0, 1, 1], [], []>} : vector<64x140xbf16>, vector<140x512xbf16>, vector<64x512xf32> -> vector<64x512xf32>
    %44 = vector.extract_strided_slice %43 {offsets = [0, 0], sizes = [32, 512], strides = [1, 1]} : vector<64x512xf32> to vector<32x512xf32>
    %45 = vector.extract_strided_slice %43 {offsets = [32, 0], sizes = [32, 512], strides = [1, 1]} : vector<64x512xf32> to vector<32x512xf32>
    %46 = arith.maximumf %44, %45 : vector<32x512xf32>
    %47 = vector.extract_strided_slice %46 {offsets = [0, 0], sizes = [32, 256], strides = [1, 1]} : vector<32x512xf32> to vector<32x256xf32>
    %48 = vector.extract_strided_slice %46 {offsets = [0, 256], sizes = [32, 256], strides = [1, 1]} : vector<32x512xf32> to vector<32x256xf32>
    %49 = arith.maximumf %47, %48 : vector<32x256xf32>
    %c0_19 = arith.constant 0 : index
    %c0_20 = arith.constant 0 : index
    %50 = vector.load %arg3[%c0_19, %c0_20] : memref<1x256xf32, #tpu.memory_space<vmem>>, vector<1x256xf32>
    %51 = vector.broadcast %50 : vector<1x256xf32> to vector<32x256xf32>
    %52 = arith.addf %49, %51 : vector<32x256xf32>
    %cst_21 = arith.constant 0.000000e+00 : f32
    %53 = vector.broadcast %cst_21 : f32 to vector<32x256xf32>
    %54 = arith.maximumf %52, %53 : vector<32x256xf32>
    %cst_22 = arith.constant 0.000000e+00 : f32
    %55 = vector.shape_cast %18 : vector<32x1xi1> to vector<32x1xi1>
    %56 = vector.broadcast %55 : vector<32x1xi1> to vector<32x256xi1>
    %57 = vector.broadcast %cst_22 : f32 to vector<32x256xf32>
    %58 = arith.select %56, %54, %57 : vector<32x256xi1>, vector<32x256xf32>
    %59 = arith.truncf %58 : vector<32x256xf32> to vector<32x256xbf16>
    %c0_23 = arith.constant 0 : index
    %c0_24 = arith.constant 0 : index
    %60 = vector.load %arg11[%c0_23, %c0_24] : memref<40x256xbf16, #tpu.memory_space<vmem>>, vector<32x256xbf16>
    tpu.vector_store %arg11[%c0_23, %c0_24], %59 {strides = array<i32>} : memref<40x256xbf16, #tpu.memory_space<vmem>>, vector<32x256xbf16>,
    %cst_25 = arith.constant 0.000000e+00 : bf16
    %61 = vector.broadcast %cst_25 : bf16 to vector<8x256xbf16>
    %c32_26 = arith.constant 32 : index
    %c0_27 = arith.constant 0 : index
    %62 = vector.load %arg11[%c32_26, %c0_27] : memref<40x256xbf16, #tpu.memory_space<vmem>>, vector<8x256xbf16>
    tpu.vector_store %arg11[%c32_26, %c0_27], %61 {strides = array<i32>} : memref<40x256xbf16, #tpu.memory_space<vmem>>, vector<8x256xbf16>,
    %c0_28 = arith.constant 0 : index
    %c0_29 = arith.constant 0 : index
    %c0_30 = arith.constant 0 : index
    %63 = vector.load %arg4[%c0_28, %c0_29, %c0_30] : memref<5x256x512xbf16, #tpu.memory_space<vmem>>, vector<1x256x512xbf16>
    %64 = vector.shape_cast %63 : vector<1x256x512xbf16> to vector<256x512xbf16>
    %c0_31 = arith.constant 0 : index
    %c0_32 = arith.constant 0 : index
    %65 = vector.load %arg10[%c0_31, %c0_32] : memref<40x256xbf16, #tpu.memory_space<vmem>>, vector<32x256xbf16>
    %cst_33 = arith.constant dense<0.000000e+00> : vector<32x512xf32>
    %66 = tpu.matmul %65, %64, %cst_33 {dimension_numbers = #tpu.dot_dimension_numbers<[1], [0], [0], [1], [0, 0, 1, 1], [], []>} : vector<32x256xbf16>, vector<256x512xbf16>, vector<32x512xf32> -> vector<32x512xf32>
    %c0_34 = arith.constant 0 : index
    %c0_35 = arith.constant 0 : index
    %67 = vector.load %arg11[%c0_34, %c0_35] : memref<40x256xbf16, #tpu.memory_space<vmem>>, vector<32x256xbf16>
    %cst_36 = arith.constant dense<0.000000e+00> : vector<32x512xf32>
    %68 = tpu.matmul %67, %64, %cst_36 {dimension_numbers = #tpu.dot_dimension_numbers<[1], [0], [0], [1], [0, 0, 1, 1], [], []>} : vector<32x256xbf16>, vector<256x512xbf16>, vector<32x512xf32> -> vector<32x512xf32>
    %c1 = arith.constant 1 : index
    %c0_37 = arith.constant 0 : index
    %c0_38 = arith.constant 0 : index
    %69 = vector.load %arg4[%c1, %c0_37, %c0_38] : memref<5x256x512xbf16, #tpu.memory_space<vmem>>, vector<1x256x512xbf16>
    %70 = vector.shape_cast %69 : vector<1x256x512xbf16> to vector<256x512xbf16>
    %c0_39 = arith.constant 0 : index
    %c0_40 = arith.constant 0 : index
    %71 = vector.load %arg11[%c0_39, %c0_40] : memref<40x256xbf16, #tpu.memory_space<vmem>>, vector<32x256xbf16>
    %cst_41 = arith.constant dense<0.000000e+00> : vector<32x512xf32>
    %72 = tpu.matmul %71, %70, %cst_41 {dimension_numbers = #tpu.dot_dimension_numbers<[1], [0], [0], [1], [0, 0, 1, 1], [], []>} : vector<32x256xbf16>, vector<256x512xbf16>, vector<32x512xf32> -> vector<32x512xf32>
    %73 = arith.addf %66, %72 : vector<32x512xf32>
    %c1_42 = arith.constant 1 : index
    %c0_43 = arith.constant 0 : index
    %74 = vector.load %arg10[%c1_42, %c0_43] : memref<40x256xbf16, #tpu.memory_space<vmem>>, vector<32x256xbf16>
    %cst_44 = arith.constant dense<0.000000e+00> : vector<32x512xf32>
    %75 = tpu.matmul %74, %70, %cst_44 {dimension_numbers = #tpu.dot_dimension_numbers<[1], [0], [0], [1], [0, 0, 1, 1], [], []>} : vector<32x256xbf16>, vector<256x512xbf16>, vector<32x512xf32> -> vector<32x512xf32>
    %76 = arith.addf %68, %75 : vector<32x512xf32>
    %c2 = arith.constant 2 : index
    %c0_45 = arith.constant 0 : index
    %c0_46 = arith.constant 0 : index
    %77 = vector.load %arg4[%c2, %c0_45, %c0_46] : memref<5x256x512xbf16, #tpu.memory_space<vmem>>, vector<1x256x512xbf16>
    %78 = vector.shape_cast %77 : vector<1x256x512xbf16> to vector<256x512xbf16>
    %c1_47 = arith.constant 1 : index
    %c0_48 = arith.constant 0 : index
    %79 = vector.load %arg10[%c1_47, %c0_48] : memref<40x256xbf16, #tpu.memory_space<vmem>>, vector<32x256xbf16>
    %cst_49 = arith.constant dense<0.000000e+00> : vector<32x512xf32>
    %80 = tpu.matmul %79, %78, %cst_49 {dimension_numbers = #tpu.dot_dimension_numbers<[1], [0], [0], [1], [0, 0, 1, 1], [], []>} : vector<32x256xbf16>, vector<256x512xbf16>, vector<32x512xf32> -> vector<32x512xf32>
    %81 = arith.addf %73, %80 : vector<32x512xf32>
    %c1_50 = arith.constant 1 : index
    %c0_51 = arith.constant 0 : index
    %82 = vector.load %arg11[%c1_50, %c0_51] : memref<40x256xbf16, #tpu.memory_space<vmem>>, vector<32x256xbf16>
    %cst_52 = arith.constant dense<0.000000e+00> : vector<32x512xf32>
    %83 = tpu.matmul %82, %78, %cst_52 {dimension_numbers = #tpu.dot_dimension_numbers<[1], [0], [0], [1], [0, 0, 1, 1], [], []>} : vector<32x256xbf16>, vector<256x512xbf16>, vector<32x512xf32> -> vector<32x512xf32>
    %84 = arith.addf %76, %83 : vector<32x512xf32>
    %c3 = arith.constant 3 : index
    %c0_53 = arith.constant 0 : index
    %c0_54 = arith.constant 0 : index
    %85 = vector.load %arg4[%c3, %c0_53, %c0_54] : memref<5x256x512xbf16, #tpu.memory_space<vmem>>, vector<1x256x512xbf16>
    %86 = vector.shape_cast %85 : vector<1x256x512xbf16> to vector<256x512xbf16>
    %c1_55 = arith.constant 1 : index
    %c0_56 = arith.constant 0 : index
    %87 = vector.load %arg11[%c1_55, %c0_56] : memref<40x256xbf16, #tpu.memory_space<vmem>>, vector<32x256xbf16>
    %cst_57 = arith.constant dense<0.000000e+00> : vector<32x512xf32>
    %88 = tpu.matmul %87, %86, %cst_57 {dimension_numbers = #tpu.dot_dimension_numbers<[1], [0], [0], [1], [0, 0, 1, 1], [], []>} : vector<32x256xbf16>, vector<256x512xbf16>, vector<32x512xf32> -> vector<32x512xf32>
    %89 = arith.addf %81, %88 : vector<32x512xf32>
    %c2_58 = arith.constant 2 : index
    %c0_59 = arith.constant 0 : index
    %90 = vector.load %arg10[%c2_58, %c0_59] : memref<40x256xbf16, #tpu.memory_space<vmem>>, vector<32x256xbf16>
    %cst_60 = arith.constant dense<0.000000e+00> : vector<32x512xf32>
    %91 = tpu.matmul %90, %86, %cst_60 {dimension_numbers = #tpu.dot_dimension_numbers<[1], [0], [0], [1], [0, 0, 1, 1], [], []>} : vector<32x256xbf16>, vector<256x512xbf16>, vector<32x512xf32> -> vector<32x512xf32>
    %92 = arith.addf %84, %91 : vector<32x512xf32>
    %c4 = arith.constant 4 : index
    %c0_61 = arith.constant 0 : index
    %c0_62 = arith.constant 0 : index
    %93 = vector.load %arg4[%c4, %c0_61, %c0_62] : memref<5x256x512xbf16, #tpu.memory_space<vmem>>, vector<1x256x512xbf16>
    %94 = vector.shape_cast %93 : vector<1x256x512xbf16> to vector<256x512xbf16>
    %c2_63 = arith.constant 2 : index
    %c0_64 = arith.constant 0 : index
    %95 = vector.load %arg10[%c2_63, %c0_64] : memref<40x256xbf16, #tpu.memory_space<vmem>>, vector<32x256xbf16>
    %cst_65 = arith.constant dense<0.000000e+00> : vector<32x512xf32>
    %96 = tpu.matmul %95, %94, %cst_65 {dimension_numbers = #tpu.dot_dimension_numbers<[1], [0], [0], [1], [0, 0, 1, 1], [], []>} : vector<32x256xbf16>, vector<256x512xbf16>, vector<32x512xf32> -> vector<32x512xf32>
    %97 = arith.addf %89, %96 : vector<32x512xf32>
    %c2_66 = arith.constant 2 : index
    %c0_67 = arith.constant 0 : index
    %98 = vector.load %arg11[%c2_66, %c0_67] : memref<40x256xbf16, #tpu.memory_space<vmem>>, vector<32x256xbf16>
    %cst_68 = arith.constant dense<0.000000e+00> : vector<32x512xf32>
    %99 = tpu.matmul %98, %94, %cst_68 {dimension_numbers = #tpu.dot_dimension_numbers<[1], [0], [0], [1], [0, 0, 1, 1], [], []>} : vector<32x256xbf16>, vector<256x512xbf16>, vector<32x512xf32> -> vector<32x512xf32>
    %100 = arith.addf %92, %99 : vector<32x512xf32>
    %101 = arith.maximumf %97, %100 : vector<32x512xf32>
    %102 = vector.extract_strided_slice %101 {offsets = [0, 0], sizes = [32, 256], strides = [1, 1]} : vector<32x512xf32> to vector<32x256xf32>
    %103 = vector.extract_strided_slice %101 {offsets = [0, 256], sizes = [32, 256], strides = [1, 1]} : vector<32x512xf32> to vector<32x256xf32>
    %104 = arith.maximumf %102, %103 : vector<32x256xf32>
    %c0_69 = arith.constant 0 : index
    %c0_70 = arith.constant 0 : index
    %105 = vector.load %arg5[%c0_69, %c0_70] : memref<1x256xf32, #tpu.memory_space<vmem>>, vector<1x256xf32>
    %106 = vector.broadcast %105 : vector<1x256xf32> to vector<32x256xf32>
    %107 = arith.addf %104, %106 : vector<32x256xf32>
    %cst_71 = arith.constant 0.000000e+00 : f32
    %108 = vector.broadcast %cst_71 : f32 to vector<32x256xf32>
    %109 = arith.maximumf %107, %108 : vector<32x256xf32>
    %c0_72 = arith.constant 0 : index
    %c0_73 = arith.constant 0 : index
    %110 = vector.load %arg8[%c0_72, %c0_73] : memref<32x256xf32, #tpu.memory_space<vmem>>, vector<32x256xf32>
    tpu.vector_store %arg8[%c0_72, %c0_73], %109 {strides = array<i32>} : memref<32x256xf32, #tpu.memory_space<vmem>>, vector<32x256xf32>,
    %111 = arith.truncf %109 : vector<32x256xf32> to vector<32x256xbf16>
    %c0_74 = arith.constant 0 : index
    %c0_75 = arith.constant 0 : index
    %112 = vector.load %arg12[%c0_74, %c0_75] : memref<40x256xbf16, #tpu.memory_space<vmem>>, vector<32x256xbf16>
    tpu.vector_store %arg12[%c0_74, %c0_75], %111 {strides = array<i32>} : memref<40x256xbf16, #tpu.memory_space<vmem>>, vector<32x256xbf16>,
    %cst_76 = arith.constant 0.000000e+00 : bf16
    %113 = vector.broadcast %cst_76 : bf16 to vector<8x256xbf16>
    %c32_77 = arith.constant 32 : index
    %c0_78 = arith.constant 0 : index
    %114 = vector.load %arg12[%c32_77, %c0_78] : memref<40x256xbf16, #tpu.memory_space<vmem>>, vector<8x256xbf16>
    tpu.vector_store %arg12[%c32_77, %c0_78], %113 {strides = array<i32>} : memref<40x256xbf16, #tpu.memory_space<vmem>>, vector<8x256xbf16>,
    %c0_79 = arith.constant 0 : index
    %c0_80 = arith.constant 0 : index
    %115 = vector.load %arg12[%c0_79, %c0_80] : memref<40x256xbf16, #tpu.memory_space<vmem>>, vector<32x256xbf16>
    %c0_81 = arith.constant 0 : index
    %c0_82 = arith.constant 0 : index
    %c0_83 = arith.constant 0 : index
    %116 = vector.load %arg6[%c0_81, %c0_82, %c0_83] : memref<7x256x128xbf16, #tpu.memory_space<vmem>>, vector<1x256x128xbf16>
    %117 = vector.shape_cast %116 : vector<1x256x128xbf16> to vector<256x128xbf16>
    %cst_84 = arith.constant dense<0.000000e+00> : vector<32x128xf32>
    %118 = tpu.matmul %115, %117, %cst_84 {dimension_numbers = #tpu.dot_dimension_numbers<[1], [0], [0], [1], [0, 0, 1, 1], [], []>} : vector<32x256xbf16>, vector<256x128xbf16>, vector<32x128xf32> -> vector<32x128xf32>
    %c1_85 = arith.constant 1 : index
    %c0_86 = arith.constant 0 : index
    %119 = vector.load %arg12[%c1_85, %c0_86] : memref<40x256xbf16, #tpu.memory_space<vmem>>, vector<32x256xbf16>
    %c1_87 = arith.constant 1 : index
    %c0_88 = arith.constant 0 : index
    %c0_89 = arith.constant 0 : index
    %120 = vector.load %arg6[%c1_87, %c0_88, %c0_89] : memref<7x256x128xbf16, #tpu.memory_space<vmem>>, vector<1x256x128xbf16>
    %121 = vector.shape_cast %120 : vector<1x256x128xbf16> to vector<256x128xbf16>
    %cst_90 = arith.constant dense<0.000000e+00> : vector<32x128xf32>
    %122 = tpu.matmul %119, %121, %cst_90 {dimension_numbers = #tpu.dot_dimension_numbers<[1], [0], [0], [1], [0, 0, 1, 1], [], []>} : vector<32x256xbf16>, vector<256x128xbf16>, vector<32x128xf32> -> vector<32x128xf32>
    %123 = arith.addf %118, %122 : vector<32x128xf32>
    %c2_91 = arith.constant 2 : index
    %c0_92 = arith.constant 0 : index
    %124 = vector.load %arg12[%c2_91, %c0_92] : memref<40x256xbf16, #tpu.memory_space<vmem>>, vector<32x256xbf16>
    %c2_93 = arith.constant 2 : index
    %c0_94 = arith.constant 0 : index
    %c0_95 = arith.constant 0 : index
    %125 = vector.load %arg6[%c2_93, %c0_94, %c0_95] : memref<7x256x128xbf16, #tpu.memory_space<vmem>>, vector<1x256x128xbf16>
    %126 = vector.shape_cast %125 : vector<1x256x128xbf16> to vector<256x128xbf16>
    %cst_96 = arith.constant dense<0.000000e+00> : vector<32x128xf32>
    %127 = tpu.matmul %124, %126, %cst_96 {dimension_numbers = #tpu.dot_dimension_numbers<[1], [0], [0], [1], [0, 0, 1, 1], [], []>} : vector<32x256xbf16>, vector<256x128xbf16>, vector<32x128xf32> -> vector<32x128xf32>
    %128 = arith.addf %123, %127 : vector<32x128xf32>
    %c3_97 = arith.constant 3 : index
    %c0_98 = arith.constant 0 : index
    %129 = vector.load %arg12[%c3_97, %c0_98] : memref<40x256xbf16, #tpu.memory_space<vmem>>, vector<32x256xbf16>
    %c3_99 = arith.constant 3 : index
    %c0_100 = arith.constant 0 : index
    %c0_101 = arith.constant 0 : index
    %130 = vector.load %arg6[%c3_99, %c0_100, %c0_101] : memref<7x256x128xbf16, #tpu.memory_space<vmem>>, vector<1x256x128xbf16>
    %131 = vector.shape_cast %130 : vector<1x256x128xbf16> to vector<256x128xbf16>
    %cst_102 = arith.constant dense<0.000000e+00> : vector<32x128xf32>
    %132 = tpu.matmul %129, %131, %cst_102 {dimension_numbers = #tpu.dot_dimension_numbers<[1], [0], [0], [1], [0, 0, 1, 1], [], []>} : vector<32x256xbf16>, vector<256x128xbf16>, vector<32x128xf32> -> vector<32x128xf32>
    %133 = arith.addf %128, %132 : vector<32x128xf32>
    %c4_103 = arith.constant 4 : index
    %c0_104 = arith.constant 0 : index
    %134 = vector.load %arg12[%c4_103, %c0_104] : memref<40x256xbf16, #tpu.memory_space<vmem>>, vector<32x256xbf16>
    %c4_105 = arith.constant 4 : index
    %c0_106 = arith.constant 0 : index
    %c0_107 = arith.constant 0 : index
    %135 = vector.load %arg6[%c4_105, %c0_106, %c0_107] : memref<7x256x128xbf16, #tpu.memory_space<vmem>>, vector<1x256x128xbf16>
    %136 = vector.shape_cast %135 : vector<1x256x128xbf16> to vector<256x128xbf16>
    %cst_108 = arith.constant dense<0.000000e+00> : vector<32x128xf32>
    %137 = tpu.matmul %134, %136, %cst_108 {dimension_numbers = #tpu.dot_dimension_numbers<[1], [0], [0], [1], [0, 0, 1, 1], [], []>} : vector<32x256xbf16>, vector<256x128xbf16>, vector<32x128xf32> -> vector<32x128xf32>
    %138 = arith.addf %133, %137 : vector<32x128xf32>
    %c5 = arith.constant 5 : index
    %c0_109 = arith.constant 0 : index
    %139 = vector.load %arg12[%c5, %c0_109] : memref<40x256xbf16, #tpu.memory_space<vmem>>, vector<32x256xbf16>
    %c5_110 = arith.constant 5 : index
    %c0_111 = arith.constant 0 : index
    %c0_112 = arith.constant 0 : index
    %140 = vector.load %arg6[%c5_110, %c0_111, %c0_112] : memref<7x256x128xbf16, #tpu.memory_space<vmem>>, vector<1x256x128xbf16>
    %141 = vector.shape_cast %140 : vector<1x256x128xbf16> to vector<256x128xbf16>
    %cst_113 = arith.constant dense<0.000000e+00> : vector<32x128xf32>
    %142 = tpu.matmul %139, %141, %cst_113 {dimension_numbers = #tpu.dot_dimension_numbers<[1], [0], [0], [1], [0, 0, 1, 1], [], []>} : vector<32x256xbf16>, vector<256x128xbf16>, vector<32x128xf32> -> vector<32x128xf32>
    %143 = arith.addf %138, %142 : vector<32x128xf32>
    %c6 = arith.constant 6 : index
    %c0_114 = arith.constant 0 : index
    %144 = vector.load %arg12[%c6, %c0_114] : memref<40x256xbf16, #tpu.memory_space<vmem>>, vector<32x256xbf16>
    %c6_115 = arith.constant 6 : index
    %c0_116 = arith.constant 0 : index
    %c0_117 = arith.constant 0 : index
    %145 = vector.load %arg6[%c6_115, %c0_116, %c0_117] : memref<7x256x128xbf16, #tpu.memory_space<vmem>>, vector<1x256x128xbf16>
    %146 = vector.shape_cast %145 : vector<1x256x128xbf16> to vector<256x128xbf16>
    %cst_118 = arith.constant dense<0.000000e+00> : vector<32x128xf32>
    %147 = tpu.matmul %144, %146, %cst_118 {dimension_numbers = #tpu.dot_dimension_numbers<[1], [0], [0], [1], [0, 0, 1, 1], [], []>} : vector<32x256xbf16>, vector<256x128xbf16>, vector<32x128xf32> -> vector<32x128xf32>
    %148 = arith.addf %143, %147 : vector<32x128xf32>
    %c0_119 = arith.constant 0 : index
    %c0_120 = arith.constant 0 : index
    %149 = vector.load %arg7[%c0_119, %c0_120] : memref<1x128xf32, #tpu.memory_space<vmem>>, vector<1x128xf32>
    %150 = vector.broadcast %149 : vector<1x128xf32> to vector<32x128xf32>
    %151 = arith.addf %148, %150 : vector<32x128xf32>
    %c0_121 = arith.constant 0 : index
    %c0_122 = arith.constant 0 : index
    %152 = vector.load %arg9[%c0_121, %c0_122] : memref<32x128xf32, #tpu.memory_space<vmem>>, vector<32x128xf32>
    tpu.vector_store %arg9[%c0_121, %c0_122], %151 {strides = array<i32>} : memref<32x128xf32, #tpu.memory_space<vmem>>, vector<32x128xf32>,
    return
  }
  func.func @transform_0(%arg0: i32) -> (i32, i32) {
    %c0_i32 = arith.constant 0 : i32
    %c0_i32_0 = arith.constant 0 : i32
    return %arg0, %c0_i32 : i32, i32
  }
  func.func @transform_1(%arg0: i32) -> (i32, i32) {
    %c0_i32 = arith.constant 0 : i32
    %c0_i32_0 = arith.constant 0 : i32
    %c0_i32_1 = arith.constant 0 : i32
    return %c0_i32, %c0_i32_0 : i32, i32
  }
  func.func @transform_2(%arg0: i32) -> (i32, i32) {
    %c0_i32 = arith.constant 0 : i32
    %c0_i32_0 = arith.constant 0 : i32
    %c0_i32_1 = arith.constant 0 : i32
    return %c0_i32, %c0_i32_0 : i32, i32
  }
  func.func @transform_3(%arg0: i32) -> (i32, i32, i32) {
    %c0_i32 = arith.constant 0 : i32
    %c0_i32_0 = arith.constant 0 : i32
    %c0_i32_1 = arith.constant 0 : i32
    %c0_i32_2 = arith.constant 0 : i32
    return %c0_i32, %c0_i32_0, %c0_i32_1 : i32, i32, i32
  }
  func.func @transform_4(%arg0: i32) -> (i32, i32) {
    %c0_i32 = arith.constant 0 : i32
    %c0_i32_0 = arith.constant 0 : i32
    %c0_i32_1 = arith.constant 0 : i32
    return %c0_i32, %c0_i32_0 : i32, i32
  }
  func.func @transform_5(%arg0: i32) -> (i32, i32, i32) {
    %c0_i32 = arith.constant 0 : i32
    %c0_i32_0 = arith.constant 0 : i32
    %c0_i32_1 = arith.constant 0 : i32
    %c0_i32_2 = arith.constant 0 : i32
    return %c0_i32, %c0_i32_0, %c0_i32_1 : i32, i32, i32
  }
  func.func @transform_6(%arg0: i32) -> (i32, i32) {
    %c0_i32 = arith.constant 0 : i32
    %c0_i32_0 = arith.constant 0 : i32
    %c0_i32_1 = arith.constant 0 : i32
    return %c0_i32, %c0_i32_0 : i32, i32
  }
  func.func @transform_7(%arg0: i32) -> (i32, i32) {
    %c0_i32 = arith.constant 0 : i32
    %c0_i32_0 = arith.constant 0 : i32
    return %arg0, %c0_i32 : i32, i32
  }
  func.func @transform_8(%arg0: i32) -> (i32, i32) {
    %c0_i32 = arith.constant 0 : i32
    %c0_i32_0 = arith.constant 0 : i32
    return %arg0, %c0_i32 : i32, i32
  }
}

</mosaic_0001>

<bundles_post_ra>
// kernel: cnn_forward.1
= control target key start
LH: loop header
LB: loop body
LE: loop exit
PB: predicated region body
PF: predicated region fallthrough
CT: control target
= control target key end

     0   :  { %s8781_s27 = smov 0   ;;  %s12261_s0 = inlined_call_operand.vmem [shape: bf16[256,140], index: 0, kind: input, shape index: {}]   ;;  %s12262_s1 = inlined_call_operand.vmem [shape: bf16[140,512], index: 1, kind: input, shape index: {}]   ;;  %s12263_s2 = inlined_call_operand.vmem [shape: f32[1,256], index: 2, kind: input, shape index: {}]   ;;  %s12264_s3 = inlined_call_operand.vmem [shape: bf16[5,256,512], index: 3, kind: input, shape index: {}]   ;;  %s12265_s4 = inlined_call_operand.vmem [shape: f32[1,256], index: 4, kind: input, shape index: {}]   ;;  %s12266_s5 = inlined_call_operand.vmem [shape: bf16[7,256,128], index: 5, kind: input, shape index: {}]   ;;  %s12267_s6 = inlined_call_operand.vmem [shape: f32[1,128], index: 6, kind: input, shape index: {}]   ;;  %s12268_s7 = inlined_call_operand.vmem [shape: f32[64,256], index: 7, kind: output, shape index: {0}]   ;;  %s12269_s8 = inlined_call_operand.vmem [shape: f32[64,128], index: 8, kind: output, shape index: {1}]  }
   0x1 LB: > { %s6459_s28 = sadd.s32 4294967295, %s8733_s27   ;;  %p6463_p0 = scmp.ge.s32.totalorder %s8733_s27, 1  ;;  %s8733_s27 = sphi %s8781_s27, %s19_s27  }
   0x2   : > { %p267_p1 = scmp.lt.s32.totalorder %s8733_s27, 3 }
   0x4   : > { %p268_p2 = pnand %p6463_p0, %p267_p1 }
   0x6   : > { %271 = sbr.rel (%p268_p2) target bundleno = 1471 (0x5bf), region = 48 }
   0xd   : > { %v8792_v0 = vld [vmem:[%s12262_s1 + $0x4] ss:$16 sps:$4 sm:$0xff]   ;;  %v8797_v1 = vld [vmem:[%s12262_s1 + $0xc] ss:$16 sps:$4 sm:$0xff]   ;;  %v8803_v2 = vld [vmem:[%s12262_s1] ss:$16 sps:$4 sm:$0xff]  }
   0xe   : > { %668 = vmatprep.subr.bf16.mxu0 %v8792_v0  ;;  %v8808_v3 = vld [vmem:[%s12262_s1 + $0x8] ss:$16 sps:$4 sm:$0xff]   ;;  %741 = vmatprep.subr.bf16.mxu1 %v8797_v1  ;;  %v8814_v4 = vld [vmem:[%s12262_s1 + $0x24] ss:$16 sps:$4 sm:$0xff]   ;;  %v8821_v5 = vld [vmem:[%s12262_s1 + $0x2c] ss:$16 sps:$4 sm:$0xff]  }
   0xf   : > { %669 = vmatpush1.bf16.msra.mxu0 %v8803_v2  ;;  %742 = vmatpush1.bf16.msra.mxu1 %v8808_v3  ;;  %v8826_v6 = vld [vmem:[%s12262_s1 + $0x20] ss:$16 sps:$4 sm:$0xff]   ;;  %v8832_v7 = vld [vmem:[%s12262_s1 + $0x28] ss:$16 sps:$4 sm:$0xff]   ;;  %v8838_v8 = vld [vmem:[%s12262_s1 + $0x44] ss:$16 sps:$4 sm:$0xff]  }
  0x10   : > { %670 = vmatprep.subr.bf16.mxu0 %v8814_v4  ;;  %743 = vmatprep.subr.bf16.mxu1 %v8821_v5  ;;  %s6464_s25 = sshll.u32 %s6459_s28, 4  ;;  %v8845_v9 = vld [vmem:[%s12262_s1 + $0x4c] ss:$16 sps:$4 sm:$0xff]   ;;  %v8850_v10 = vld [vmem:[%s12262_s1 + $0x40] ss:$16 sps:$4 sm:$0xff]   ;;  %vm642_vm0 = vcmask 97280  }
  0x11   : > { %v8855_v11 = vld [vmem:[%s12262_s1 + $0x48] ss:$16 sps:$4 sm:$0xff]   ;;  %v8862_v12 = vld [vmem:[%s12262_s1 + $0x64] ss:$16 sps:$4 sm:$0xff]   ;;  %v8869_v13 = vld [vmem:[%s12262_s1 + $0x6c] ss:$16 sps:$4 sm:$0xff]  }
  0x12   : > { %p309_p3 = scmp.lt.s32.totalorder %s6464_s25, 31  ;;  %v8874_v14 = vld [vmem:[%s12262_s1 + $0x60] ss:$16 sps:$4 sm:$0xff]   ;;  %v8881_v15 = vld [vmem:[%s12262_s1 + $0x68] ss:$16 sps:$4 sm:$0xff]   ;;  %vm655_vm1 = vcmask 1045504  }
  0x13   : > { %671 = vmatpush1.bf16.msra.mxu0 %v8826_v6  ;;  %744 = vmatpush1.bf16.msra.mxu1 %v8832_v7  ;;  %v8886_v16 = vld [vmem:[%s12262_s1 + $0x84] ss:$16 sps:$4 sm:$0xff]   ;;  %v8893_v17 = vld [vmem:[%s12262_s1 + $0x8c] ss:$16 sps:$4 sm:$0xff]   ;;  %v8898_v18 = vld [vmem:[%s12262_s1 + $0x80] ss:$16 sps:$4 sm:$0xff]  }
  0x14   : > { %672 = vmatprep.subr.bf16.mxu0 %v8838_v8  ;;  %745 = vmatprep.subr.bf16.mxu1 %v8845_v9  ;;  %s12475_s25 = smov (!%p309_p3, %s6464_s25), 31  ;;  %v8903_v19 = vld [vmem:[%s12262_s1 + $0x88] ss:$16 sps:$4 sm:$0xff]   ;;  %v8910_v20 = vld [vmem:[%s12262_s1 + $0xa4] ss:$16 sps:$4 sm:$0xff]   ;;  %vm3950_vm8 = vcmask 1046528  }
  0x15   : > { %v8917_v21 = vld [vmem:[%s12262_s1 + $0xac] ss:$16 sps:$4 sm:$0xff]   ;;  %s7519_s13 = sshll.u32 %s12475_s25, 3  ;;  %v8924_v22 = vld [vmem:[%s12262_s1 + $0xa0] ss:$16 sps:$4 sm:$0xff]   ;;  %s6467_s14 = sshll.u32 %s6459_s28, 2 }
  0x16   : > { %v8929_v23 = vld [vmem:[%s12262_s1 + $0xa8] ss:$16 sps:$4 sm:$0xff]   ;;  %s8934_s20 = scalar_lea.vmem %s12261_s0, %s7519_s13  ;;  %v8941_v24 = vld [vmem:[%s12262_s1 + $0xc4] ss:$16 sps:$4 sm:$0xff]   ;;  %v8946_v25 = vld [vmem:[%s12262_s1 + $0xcc] ss:$16 sps:$4 sm:$0xff]  }
  0x17   : > { %673 = vmatpush1.bf16.msra.mxu0 %v8850_v10  ;;  %746 = vmatpush1.bf16.msra.mxu1 %v8855_v11  ;;  %v8951_v26 = vld [vmem:[%s12262_s1 + $0xc0] ss:$16 sps:$4 sm:$0xff]   ;;  %v8956_v27 = vld [vmem:[%s12262_s1 + $0xc8] ss:$16 sps:$4 sm:$0xff]   ;;  %v8961_v28 = vld [vmem:[%s12262_s1 + $0xe4] ss:$16 sps:$4 sm:$0xff]  }
  0x18   : > { %674 = vmatprep.subr.bf16.mxu0 %v8862_v12  ;;  %747 = vmatprep.subr.bf16.mxu1 %v8869_v13  ;;  %v8966_v29 = vld [vmem:[%s12262_s1 + $0xec] ss:$16 sps:$4 sm:$0xff]   ;;  %v8974_v31 = vld [vmem:[%s12262_s1 + $0x100] sm:$0xff]  ;;  %v428_v32 = vld [vmem:[%s12262_s1 + $0x110] sm:$0x33]  ;;  %p316_p4 = scmp.lt.s32.totalorder %s6467_s14, 7 }
  0x19   : > { %v7936_v30 = vld [vmem:[%s8934_s20 + $0x4] ss:$8 sps:$4 sm:$0xff]   ;;  %v429_v34 = vld [vmem:[%s12262_s1 + $0x118] sm:$0x33]  ;;  %v8996_v35 = vld [vmem:[%s12262_s1 + $0xe0] ss:$16 sps:$4 sm:$0xff]   ;;  %v6513_v37 = vcombine.high %v8974_v31, %v428_v32  ;;  %v6512_v39 = vcombine.low %v8974_v31, %v428_v32 }
  0x1a   : > { %v8984_v33 = vld [vmem:[%s12262_s1 + $0x108] sm:$0xff]  ;;  %6517 = vmatprep.mubr.msk.bf16.mxu0 %vm642_vm0, %v7936_v30  ;;  %6522 = vmatprep.mubr.msk.bf16.mxu1 %vm642_vm0, %v7936_v30  ;;  %v7937_v44 = vld [vmem:[%s8934_s20 + $0x14] ss:$8 sps:$4 sm:$0xff]   ;;  %v7939_v45 = vld [vmem:[%s8934_s20 + $0x10] ss:$8 sps:$4 sm:$0xff]   ;;  %s12477_s14 = smov (!%p316_p4, %s6467_s14), 7 }
  0x1b   : > { %675 = vmatpush1.bf16.msra.mxu0 %v8874_v14  ;;  %748 = vmatpush1.bf16.msra.mxu1 %v8881_v15  ;;  %v9001_v36 = vld [vmem:[%s12262_s1 + $0xe8] ss:$16 sps:$4 sm:$0xff]   ;;  %v6515_v38 = vcombine.high %v8984_v33, %v429_v34  ;;  %v6514_v40 = vcombine.low %v8984_v33, %v429_v34  ;;  %v657_v41 = vsel %vm655_vm1, %v6512_v39, 0  ;;  %v7940_v46 = vld [vmem:[%s8934_s20 + $0x24] ss:$8 sps:$4 sm:$0xff]   ;;  %v8735_v34 = vmov 0  }
  0x1c   : > { %676 = vmatprep.subr.bf16.mxu0 %v8886_v16  ;;  %749 = vmatprep.subr.bf16.mxu1 %v8893_v17  ;;  %v7934_v43 = vld [vmem:[%s8934_s20] ss:$8 sps:$4 sm:$0xff]   ;;  %v7943_v48 = vld [vmem:[%s8934_s20 + $0x34] ss:$8 sps:$4 sm:$0xff]   ;;  %v7945_v49 = vld [vmem:[%s8934_s20 + $0x30] ss:$8 sps:$4 sm:$0xff]  }
  0x1d   : > { %v663_v42 = vsel %vm655_vm1, %v6514_v40, 0  ;;  %v7942_v47 = vld [vmem:[%s8934_s20 + $0x20] ss:$8 sps:$4 sm:$0xff]   ;;  %v953_v50 = vld [vmem:[%s12262_s1 + $0x110] sm:$0x33]  ;;  %910 = vst [vmem:[#allocation2 + $0x20] sm:$0xff] %v8735_v34 }
  0x1e   : > { %v954_v51 = vld [vmem:[%s12262_s1 + $0x118] sm:$0x33]  ;;  %v7952_v52 = vld [vmem:[%s8934_s20 + $0x44] ss:$8 sps:$4 sm:$0xff]   ;;  %v6571_v53 = vcombine.high %v8974_v31, %v953_v50  ;;  %v6570_v55 = vcombine.low %v8974_v31, %v953_v50  ;;  %v7950_v59 = vld [vmem:[%s8934_s20 + $0x40] ss:$8 sps:$4 sm:$0xff]  }
  0x1f   : > { %677 = vmatpush1.bf16.msra.mxu0 %v8898_v18  ;;  %750 = vmatpush1.bf16.msra.mxu1 %v8903_v19  ;;  %v6573_v54 = vcombine.high %v8984_v33, %v954_v51  ;;  %v6572_v56 = vcombine.low %v8984_v33, %v954_v51  ;;  %v7953_v60 = vld [vmem:[%s8934_s20 + $0x54] ss:$8 sps:$4 sm:$0xff]   ;;  %v7955_v61 = vld [vmem:[%s8934_s20 + $0x50] ss:$8 sps:$4 sm:$0xff]   ;;  %v7956_v62 = vld [vmem:[%s8934_s20 + $0x64] ss:$8 sps:$4 sm:$0xff]  }
  0x20   : > { %678 = vmatprep.subr.bf16.mxu0 %v8910_v20  ;;  %751 = vmatprep.subr.bf16.mxu1 %v8917_v21  ;;  %v1180_v57 = vsel %vm655_vm1, %v6570_v55, 0  ;;  %v7958_v63 = vld [vmem:[%s8934_s20 + $0x60] ss:$8 sps:$4 sm:$0xff]   ;;  %v8006_v30 = vld [vmem:[%s12264_s3 + $0x2e4] ss:$16 sps:$4 sm:$0xff]   ;;  %1425 = vst [vmem:[#allocation3 + $0x20] sm:$0xff] %v8735_v34 }
  0x21   : > { %v1186_v58 = vsel %vm655_vm1, %v6572_v56, 0  ;;  %v8009_v31 = vld [vmem:[%s12264_s3 + $0x2ec] ss:$16 sps:$4 sm:$0xff]   ;;  %v8004_v32 = vld [vmem:[%s12264_s3 + $0x2e0] ss:$16 sps:$4 sm:$0xff]   ;;  %4824 = vst [vmem:[#allocation4 + $0x20] sm:$0xff] %v8735_v34 }
  0x22   : > { %v8007_v33 = vld [vmem:[%s12264_s3 + $0x2e8] ss:$16 sps:$4 sm:$0xff]   ;;  %v8018_v39 = vld [vmem:[%s12264_s3 + $0x324] ss:$16 sps:$4 sm:$0xff]   ;;  %v8021_v40 = vld [vmem:[%s12264_s3 + $0x32c] ss:$16 sps:$4 sm:$0xff]  }
  0x23   : > { %679 = vmatpush1.bf16.msra.mxu0 %v8924_v22  ;;  %752 = vmatpush1.bf16.msra.mxu1 %v8929_v23  ;;  %v8031_v50 = vld [vmem:[%s12264_s3 + $0x368] ss:$16 sps:$4 sm:$0xff]   ;;  %v8036_v51 = vld [vmem:[%s12264_s3 + $0x384] ss:$16 sps:$4 sm:$0xff]   ;;  %v8045_v56 = vld [vmem:[%s12264_s3 + $0x3ac] ss:$16 sps:$4 sm:$0xff]  }
  0x24   : > { %680 = vmatprep.subr.bf16.mxu0 %v8941_v24  ;;  %753 = vmatprep.subr.bf16.mxu1 %v8946_v25  ;;  %v8042_v55 = vld [vmem:[%s12264_s3 + $0x3a4] ss:$16 sps:$4 sm:$0xff]   ;;  %vm2481_vm9 = vsmask.f32 7424  ;;  %s7520_s28 = sshll.u32 %s12477_s14, 4  ;;  %vm6188_vm12 = vcmask 1044480  }
  0x25   : > { %s11816_s18 = scalar_lea.vmem %s12268_s7, %s7520_s28  ;;  %vm5515_vm10 = vsmask.f32 6400  ;;  %vm5953_vm11 = vsmask.f32 5376  ;;  %s6471_s28 = sshll.u32 %s12477_s14, 3 }
  0x26   : > { %s326_s25 = scalar_lea.vmem %s12269_s8, %s6471_s28 }
  0x27   : > { %681 = vmatpush1.bf16.msra.mxu0 %v8951_v26  ;;  %754 = vmatpush1.bf16.msra.mxu1 %v8956_v27 }
  0x28   : > { %682 = vmatprep.subr.bf16.mxu0 %v8961_v28  ;;  %755 = vmatprep.subr.bf16.mxu1 %v8966_v29 }
  0x2b   : > { %683 = vmatpush1.bf16.msra.mxu0 %v8996_v35  ;;  %756 = vmatpush1.bf16.msra.mxu1 %v9001_v36 }
  0x2c   : > { %6516 = vmatprep.subr.msk.bf16.mxu0 %vm655_vm1, %v6513_v37  ;;  %6521 = vmatprep.subr.msk.bf16.mxu1 %vm655_vm1, %v6515_v38  ;;  %v8010_v37 = vld [vmem:[%s12264_s3 + $0x300] ss:$16 sps:$4 sm:$0xff]   ;;  %v8013_v38 = vld [vmem:[%s12264_s3 + $0x308] ss:$16 sps:$4 sm:$0xff]  }
  0x2f   : > { %685 = vmatpush1.bf16.msra.mxu0 %v657_v41  ;;  %758 = vmatpush1.bf16.msra.mxu1 %v663_v42  ;;  %v8016_v41 = vld [vmem:[%s12264_s3 + $0x320] ss:$16 sps:$4 sm:$0xff]   ;;  %v8019_v42 = vld [vmem:[%s12264_s3 + $0x328] ss:$16 sps:$4 sm:$0xff]  }
  0x30   : > { %1191 = vmatprep.subr.bf16.mxu0 %v8792_v0  ;;  %1264 = vmatprep.subr.bf16.mxu1 %v8797_v1  ;;  %v7959_v0 = vld [vmem:[%s8934_s20 + $0x74] ss:$8 sps:$4 sm:$0xff]   ;;  %v7961_v1 = vld [vmem:[%s8934_s20 + $0x70] ss:$8 sps:$4 sm:$0xff]  }
  0x32   : > { %701 = vmatmul.mubr.bf16.vlgmr.msra.gmra.mrb[0].mxu0 %v7934_v43  ;;  %774 = vmatmul.mubr.bf16.vlgmr.msra.gmra.mrb[0].mxu1 %v7934_v43  ;;  %v8024_v43 = vld [vmem:[%s12264_s3 + $0x344] ss:$16 sps:$4 sm:$0xff]  }
  0x33   : > { %1192 = vmatpush1.bf16.msra.mxu0 %v8803_v2  ;;  %1265 = vmatpush1.bf16.msra.mxu1 %v8808_v3  ;;  %v7964_v2 = vld [vmem:[%s12264_s3 + $0x204] ss:$16 sps:$4 sm:$0xff]   ;;  %v7967_v3 = vld [vmem:[%s12264_s3 + $0x20c] ss:$16 sps:$4 sm:$0xff]  }
  0x34   : > { %1193 = vmatprep.subr.bf16.mxu0 %v8814_v4  ;;  %1266 = vmatprep.subr.bf16.mxu1 %v8821_v5  ;;  %v7962_v4 = vld [vmem:[%s12264_s3 + $0x200] ss:$16 sps:$4 sm:$0xff]   ;;  %v7965_v5 = vld [vmem:[%s12264_s3 + $0x208] ss:$16 sps:$4 sm:$0xff]  }
  0x35   : > { %6518 = vmatprep.mubr.msk.bf16.mxu0 %vm642_vm0, %v7937_v44  ;;  %6523 = vmatprep.mubr.msk.bf16.mxu1 %vm642_vm0, %v7937_v44  ;;  %v8027_v44 = vld [vmem:[%s12264_s3 + $0x34c] ss:$16 sps:$4 sm:$0xff]  }
  0x37   : > { %1194 = vmatpush1.bf16.msra.mxu0 %v8826_v6  ;;  %1267 = vmatpush1.bf16.msra.mxu1 %v8832_v7  ;;  %v7970_v6 = vld [vmem:[%s12264_s3 + $0x224] ss:$16 sps:$4 sm:$0xff]   ;;  %v7973_v7 = vld [vmem:[%s12264_s3 + $0x22c] ss:$16 sps:$4 sm:$0xff]  }
  0x38   : > { %1195 = vmatprep.subr.bf16.mxu0 %v8838_v8  ;;  %1268 = vmatprep.subr.bf16.mxu1 %v8845_v9  ;;  %v7968_v8 = vld [vmem:[%s12264_s3 + $0x220] ss:$16 sps:$4 sm:$0xff]   ;;  %v7971_v9 = vld [vmem:[%s12264_s3 + $0x228] ss:$16 sps:$4 sm:$0xff]  }
  0x3a   : > { %711 = vmatmul.mubr.bf16.gmra.mrb[4].mxu0 %v7939_v45  ;;  %784 = vmatmul.mubr.bf16.gmra.mrb[4].mxu1 %v7939_v45  ;;  %v8022_v45 = vld [vmem:[%s12264_s3 + $0x340] ss:$16 sps:$4 sm:$0xff]  }
  0x3b   : > { %1196 = vmatpush1.bf16.msra.mxu0 %v8850_v10  ;;  %1269 = vmatpush1.bf16.msra.mxu1 %v8855_v11  ;;  %v7976_v10 = vld [vmem:[%s12264_s3 + $0x244] ss:$16 sps:$4 sm:$0xff]   ;;  %v7979_v11 = vld [vmem:[%s12264_s3 + $0x24c] ss:$16 sps:$4 sm:$0xff]  }
  0x3c   : > { %1197 = vmatprep.subr.bf16.mxu0 %v8862_v12  ;;  %1270 = vmatprep.subr.bf16.mxu1 %v8869_v13  ;;  %v7974_v12 = vld [vmem:[%s12264_s3 + $0x240] ss:$16 sps:$4 sm:$0xff]   ;;  %v7977_v13 = vld [vmem:[%s12264_s3 + $0x248] ss:$16 sps:$4 sm:$0xff]  }
  0x3d   : > { %6519 = vmatprep.mubr.msk.bf16.mxu0 %vm642_vm0, %v7940_v46  ;;  %6524 = vmatprep.mubr.msk.bf16.mxu1 %vm642_vm0, %v7940_v46  ;;  %v8025_v46 = vld [vmem:[%s12264_s3 + $0x348] ss:$16 sps:$4 sm:$0xff]  }
  0x3f   : > { %1198 = vmatpush1.bf16.msra.mxu0 %v8874_v14  ;;  %1271 = vmatpush1.bf16.msra.mxu1 %v8881_v15  ;;  %v7982_v14 = vld [vmem:[%s12264_s3 + $0x264] ss:$16 sps:$4 sm:$0xff]   ;;  %v7985_v15 = vld [vmem:[%s12264_s3 + $0x26c] ss:$16 sps:$4 sm:$0xff]  }
  0x40   : > { %1199 = vmatprep.subr.bf16.mxu0 %v8886_v16  ;;  %1272 = vmatprep.subr.bf16.mxu1 %v8893_v17  ;;  %v7980_v16 = vld [vmem:[%s12264_s3 + $0x260] ss:$16 sps:$4 sm:$0xff]   ;;  %v7983_v17 = vld [vmem:[%s12264_s3 + $0x268] ss:$16 sps:$4 sm:$0xff]  }
  0x42   : > { %721 = vmatmul.mubr.bf16.gmra.mrb[8].mxu0 %v7942_v47  ;;  %794 = vmatmul.mubr.bf16.gmra.mrb[8].mxu1 %v7942_v47  ;;  %v8030_v47 = vld [vmem:[%s12264_s3 + $0x364] ss:$16 sps:$4 sm:$0xff]  }
  0x43   : > { %1200 = vmatpush1.bf16.msra.mxu0 %v8898_v18  ;;  %1273 = vmatpush1.bf16.msra.mxu1 %v8903_v19  ;;  %v7988_v18 = vld [vmem:[%s12264_s3 + $0x284] ss:$16 sps:$4 sm:$0xff]   ;;  %v7991_v19 = vld [vmem:[%s12264_s3 + $0x28c] ss:$16 sps:$4 sm:$0xff]  }
  0x44   : > { %1201 = vmatprep.subr.bf16.mxu0 %v8910_v20  ;;  %1274 = vmatprep.subr.bf16.mxu1 %v8917_v21  ;;  %v7986_v20 = vld [vmem:[%s12264_s3 + $0x280] ss:$16 sps:$4 sm:$0xff]   ;;  %v7989_v21 = vld [vmem:[%s12264_s3 + $0x288] ss:$16 sps:$4 sm:$0xff]  }
  0x45   : > { %6520 = vmatprep.mubr.msk.bf16.mxu0 %vm642_vm0, %v7943_v48  ;;  %6525 = vmatprep.mubr.msk.bf16.mxu1 %vm642_vm0, %v7943_v48  ;;  %v8033_v48 = vld [vmem:[%s12264_s3 + $0x36c] ss:$16 sps:$4 sm:$0xff]  }
  0x47   : > { %1202 = vmatpush1.bf16.msra.mxu0 %v8924_v22  ;;  %1275 = vmatpush1.bf16.msra.mxu1 %v8929_v23  ;;  %v7994_v22 = vld [vmem:[%s12264_s3 + $0x2a4] ss:$16 sps:$4 sm:$0xff]   ;;  %v7997_v23 = vld [vmem:[%s12264_s3 + $0x2ac] ss:$16 sps:$4 sm:$0xff]  }
  0x48   : > { %1203 = vmatprep.subr.bf16.mxu0 %v8941_v24  ;;  %1276 = vmatprep.subr.bf16.mxu1 %v8946_v25  ;;  %v7992_v24 = vld [vmem:[%s12264_s3 + $0x2a0] ss:$16 sps:$4 sm:$0xff]   ;;  %v7995_v25 = vld [vmem:[%s12264_s3 + $0x2a8] ss:$16 sps:$4 sm:$0xff]  }
  0x4a   : > { %731 = vmatmul.mubr.bf16.gmra.mrb[12].mxu0 %v7945_v49  ;;  %804 = vmatmul.mubr.bf16.gmra.mrb[12].mxu1 %v7945_v49  ;;  %v8028_v49 = vld [vmem:[%s12264_s3 + $0x360] ss:$16 sps:$4 sm:$0xff]  }
  0x4b   : > { %1204 = vmatpush1.bf16.msra.mxu0 %v8951_v26  ;;  %1277 = vmatpush1.bf16.msra.mxu1 %v8956_v27  ;;  %v8000_v26 = vld [vmem:[%s12264_s3 + $0x2c4] ss:$16 sps:$4 sm:$0xff]   ;;  %v8003_v27 = vld [vmem:[%s12264_s3 + $0x2cc] ss:$16 sps:$4 sm:$0xff]  }
  0x4c   : > { %1205 = vmatprep.subr.bf16.mxu0 %v8961_v28  ;;  %1278 = vmatprep.subr.bf16.mxu1 %v8966_v29  ;;  %v7998_v28 = vld [vmem:[%s12264_s3 + $0x2c0] ss:$16 sps:$4 sm:$0xff]   ;;  %v8001_v29 = vld [vmem:[%s12264_s3 + $0x2c8] ss:$16 sps:$4 sm:$0xff]  }
  0x4d   : > { %6575 = vmatprep.mubr.msk.bf16.mxu0 %vm642_vm0, %v7952_v52  ;;  %6580 = vmatprep.mubr.msk.bf16.mxu1 %vm642_vm0, %v7952_v52  ;;  %v8039_v52 = vld [vmem:[%s12264_s3 + $0x38c] ss:$16 sps:$4 sm:$0xff]  }
  0x4f   : > { %1206 = vmatpush1.bf16.msra.mxu0 %v8996_v35  ;;  %1279 = vmatpush1.bf16.msra.mxu1 %v9001_v36  ;;  %v8012_v35 = vld [vmem:[%s12264_s3 + $0x304] ss:$16 sps:$4 sm:$0xff]   ;;  %v8015_v36 = vld [vmem:[%s12264_s3 + $0x30c] ss:$16 sps:$4 sm:$0xff]  }
  0x50   : > { %6574 = vmatprep.subr.msk.bf16.mxu0 %vm655_vm1, %v6571_v53  ;;  %6579 = vmatprep.subr.msk.bf16.mxu1 %vm655_vm1, %v6573_v54  ;;  %v8034_v53 = vld [vmem:[%s12264_s3 + $0x380] ss:$16 sps:$4 sm:$0xff]   ;;  %v8037_v54 = vld [vmem:[%s12264_s3 + $0x388] ss:$16 sps:$4 sm:$0xff]  }
  0x53   : > { %1208 = vmatpush1.bf16.msra.mxu0 %v1180_v57  ;;  %1281 = vmatpush1.bf16.msra.mxu1 %v1186_v58  ;;  %v8040_v57 = vld [vmem:[%s12264_s3 + $0x3a0] ss:$16 sps:$4 sm:$0xff]   ;;  %v8043_v58 = vld [vmem:[%s12264_s3 + $0x3a8] ss:$16 sps:$4 sm:$0xff]  }
  0x54   : > { %1903 = vmatprep.subr.bf16.mxu0 %v7964_v2  ;;  %1956 = vmatprep.subr.bf16.mxu1 %v7967_v3  ;;  %v8055_v2 = vld [vmem:[%s12264_s3 + $0x3e8] ss:$16 sps:$4 sm:$0xff]   ;;  %v8060_v3 = vld [vmem:[%s12264_s3 + $0x4] ss:$16 sps:$4 sm:$0xff]  }
  0x56   : > { %1224 = vmatmul.mubr.bf16.vlgmr.msra.gmra.mrb[16].mxu0 %v7950_v59  ;;  %1297 = vmatmul.mubr.bf16.vlgmr.msra.gmra.mrb[16].mxu1 %v7950_v59  ;;  %v8048_v59 = vld [vmem:[%s12264_s3 + $0x3c4] ss:$16 sps:$4 sm:$0xff]  }
  0x57   : > { %6576 = vmatprep.mubr.msk.bf16.mxu0 %vm642_vm0, %v7953_v60  ;;  %6581 = vmatprep.mubr.msk.bf16.mxu1 %vm642_vm0, %v7953_v60  ;;  %v8051_v60 = vld [vmem:[%s12264_s3 + $0x3cc] ss:$16 sps:$4 sm:$0xff]  }
  0x58   : > { %1904 = vmatpush1.bf16.msra.mxu0 %v7962_v4  ;;  %1957 = vmatpush1.bf16.msra.mxu1 %v7965_v5  ;;  %v8063_v4 = vld [vmem:[%s12264_s3 + $0xc] ss:$16 sps:$4 sm:$0xff]   ;;  %v329_v5 = vlaneseq }
  0x59   : > { %1905 = vmatprep.subr.bf16.mxu0 %v7970_v6  ;;  %1958 = vmatprep.subr.bf16.mxu1 %v7973_v7 }
  0x5a   : > { %v330_v6 = vshrl.u32 %v329_v5, 7 }
  0x5c   : > { %1906 = vmatpush1.bf16.msra.mxu0 %v7968_v8  ;;  %1959 = vmatpush1.bf16.msra.mxu1 %v7971_v9  ;;  %v338_v34 = vand.u32 7, %v330_v6 }
  0x5d   : > { %1907 = vmatprep.subr.bf16.mxu0 %v7976_v10  ;;  %1960 = vmatprep.subr.bf16.mxu1 %v7979_v11  ;;  %v9288_v11 = vsub.s32 0, %v330_v6 }
  0x5e   : > { %1234 = vmatmul.mubr.bf16.gmra.mrb[20].mxu0 %v7955_v61  ;;  %1307 = vmatmul.mubr.bf16.gmra.mrb[20].mxu1 %v7955_v61  ;;  %v8046_v61 = vld [vmem:[%s12264_s3 + $0x3c0] ss:$16 sps:$4 sm:$0xff]   ;;  %vm9316_vm2 = vcmp.ne.s32.totalorder %v338_v34, 0 }
  0x5f   : > { %6577 = vmatprep.mubr.msk.bf16.mxu0 %vm642_vm0, %v7956_v62  ;;  %6582 = vmatprep.mubr.msk.bf16.mxu1 %vm642_vm0, %v7956_v62  ;;  %v8049_v62 = vld [vmem:[%s12264_s3 + $0x3c8] ss:$16 sps:$4 sm:$0xff]   ;;  %12340 = vst [vmem:[#allocation5_spill] sm:$0xff] %v9288_v11 }
  0x60   : > { %1908 = vmatpush1.bf16.msra.mxu0 %v7974_v12  ;;  %1961 = vmatpush1.bf16.msra.mxu1 %v7977_v13  ;;  %v9290_v12 = vsub.s32 1, %v330_v6  ;;  %v331_v13 = vadd.s32 8, %v330_v6 }
  0x61   : > { %1909 = vmatprep.subr.bf16.mxu0 %v7982_v14  ;;  %1962 = vmatprep.subr.bf16.mxu1 %v7985_v15 }
  0x62   : > { %12341 = vst [vmem:[#allocation6_spill] sm:$0xff] %v9290_v12 }
  0x64   : > { %1910 = vmatpush1.bf16.msra.mxu0 %v7980_v16  ;;  %1963 = vmatpush1.bf16.msra.mxu1 %v7983_v17 }
  0x65   : > { %1911 = vmatprep.subr.bf16.mxu0 %v7988_v18  ;;  %1964 = vmatprep.subr.bf16.mxu1 %v7991_v19 }
  0x66   : > { %1244 = vmatmul.mubr.bf16.gmra.mrb[24].mxu0 %v7958_v63  ;;  %1317 = vmatmul.mubr.bf16.gmra.mrb[24].mxu1 %v7958_v63  ;;  %v8054_v63 = vld [vmem:[%s12264_s3 + $0x3e4] ss:$16 sps:$4 sm:$0xff]  }
  0x67   : > { %6578 = vmatprep.mubr.msk.bf16.mxu0 %vm642_vm0, %v7959_v0  ;;  %6583 = vmatprep.mubr.msk.bf16.mxu1 %vm642_vm0, %v7959_v0  ;;  %v8057_v0 = vld [vmem:[%s12264_s3 + $0x3ec] ss:$16 sps:$4 sm:$0xff]  }
  0x68   : > { %1912 = vmatpush1.bf16.msra.mxu0 %v7986_v20  ;;  %1965 = vmatpush1.bf16.msra.mxu1 %v7989_v21 }
  0x69   : > { %1913 = vmatprep.subr.bf16.mxu0 %v7994_v22  ;;  %1966 = vmatprep.subr.bf16.mxu1 %v7997_v23 }
  0x6c   : > { %1914 = vmatpush1.bf16.msra.mxu0 %v7992_v24  ;;  %1967 = vmatpush1.bf16.msra.mxu1 %v7995_v25 }
  0x6d   : > { %1915 = vmatprep.subr.bf16.mxu0 %v8000_v26  ;;  %1968 = vmatprep.subr.bf16.mxu1 %v8003_v27  ;;  %v838_v26 = vld [vmem:[%s12263_s2] sm:$0x3] }
  0x6e   : > { %1254 = vmatmul.mubr.bf16.gmra.mrb[28].mxu0 %v7961_v1  ;;  %1327 = vmatmul.mubr.bf16.gmra.mrb[28].mxu1 %v7961_v1  ;;  %v8052_v1 = vld [vmem:[%s12264_s3 + $0x3e0] ss:$16 sps:$4 sm:$0xff]  }
  0x70   : > { %1916 = vmatpush1.bf16.msra.mxu0 %v7998_v28  ;;  %1969 = vmatpush1.bf16.msra.mxu1 %v8001_v29 }
  0x71   : > { %1917 = vmatprep.subr.bf16.mxu0 %v8006_v30  ;;  %1970 = vmatprep.subr.bf16.mxu1 %v8009_v31  ;;  %v9308_v31 = vrot.slane %v838_v26, %v9288_v11 }
  0x74   : > { %1918 = vmatpush1.bf16.msra.mxu0 %v8004_v32  ;;  %1971 = vmatpush1.bf16.msra.mxu1 %v8007_v33 }
  0x75   : > { %1919 = vmatprep.subr.bf16.mxu0 %v8012_v35  ;;  %1972 = vmatprep.subr.bf16.mxu1 %v8015_v36 }
  0x78   : > { %1920 = vmatpush1.bf16.msra.mxu0 %v8010_v37  ;;  %1973 = vmatpush1.bf16.msra.mxu1 %v8013_v38  ;;  %v9311_v37 = vrot.slane %v838_v26, %v9290_v12 }
  0x79   : > { %1921 = vmatprep.subr.bf16.mxu0 %v8018_v39  ;;  %1974 = vmatprep.subr.bf16.mxu1 %v8021_v40 }
  0x7c   : > { %1922 = vmatpush1.bf16.msra.mxu0 %v8016_v41  ;;  %1975 = vmatpush1.bf16.msra.mxu1 %v8019_v42  ;;  %v345_v42 = vand.u32 7, %v331_v13 }
  0x7d   : > { %1923 = vmatprep.subr.bf16.mxu0 %v8024_v43  ;;  %1976 = vmatprep.subr.bf16.mxu1 %v8027_v44 }
  0x7e   : > { %vm9324_vm3 = vcmp.ne.s32.totalorder %v345_v42, 0 }
  0x7f   : > { %vm9451_vm6 = vmpackc.low %vm9324_vm3, %vm9316_vm2 }
  0x80   : > { %1924 = vmatpush1.bf16.msra.mxu0 %v8022_v45  ;;  %1977 = vmatpush1.bf16.msra.mxu1 %v8025_v46 }
  0x81   : > { %1925 = vmatprep.subr.bf16.mxu0 %v8030_v47  ;;  %1978 = vmatprep.subr.bf16.mxu1 %v8033_v48 }
  0x84   : > { %1926 = vmatpush1.bf16.msra.mxu0 %v8028_v49  ;;  %1979 = vmatpush1.bf16.msra.mxu1 %v8031_v50  ;;  %v332_v49 = vadd.s32 16, %v330_v6 }
  0x85   : > { %1927 = vmatprep.subr.bf16.mxu0 %v8036_v51  ;;  %1980 = vmatprep.subr.bf16.mxu1 %v8039_v52 }
  0x88   : > { %1928 = vmatpush1.bf16.msra.mxu0 %v8034_v53  ;;  %1981 = vmatpush1.bf16.msra.mxu1 %v8037_v54 }
  0x89   : > { %1929 = vmatprep.subr.bf16.mxu0 %v8042_v55  ;;  %1982 = vmatprep.subr.bf16.mxu1 %v8045_v56 }
  0x8c   : > { %1930 = vmatpush1.bf16.msra.mxu0 %v8040_v57  ;;  %1983 = vmatpush1.bf16.msra.mxu1 %v8043_v58 }
  0x8d   : > { %1931 = vmatprep.subr.bf16.mxu0 %v8048_v59  ;;  %1984 = vmatprep.subr.bf16.mxu1 %v8051_v60 }
  0x90   : > { %1932 = vmatpush1.bf16.msra.mxu0 %v8046_v61  ;;  %1985 = vmatpush1.bf16.msra.mxu1 %v8049_v62  ;;  %v352_v61 = vand.u32 7, %v332_v49 }
  0x91   : > { %1933 = vmatprep.subr.bf16.mxu0 %v8054_v63  ;;  %1986 = vmatprep.subr.bf16.mxu1 %v8057_v0  ;;  %v333_v63 = vadd.s32 24, %v330_v6 }
  0x92   : > { %vm9362_vm4 = vcmp.ne.s32.totalorder %v352_v61, 0 }
  0x94   : > { %1934 = vmatpush1.bf16.msra.mxu0 %v8052_v1  ;;  %1987 = vmatpush1.bf16.msra.mxu1 %v8055_v2 }
  0x95   : > { %2349 = vmatprep.subr.bf16.mxu0 %v8060_v3  ;;  %2402 = vmatprep.subr.bf16.mxu1 %v8063_v4 }
 0x105   : > { %v702_v7 = vpop.f32.mrb[0].mxu0  ;;  %v775_v8 = vpop.f32.mrb[0].mxu1 }
 0x106   : > { %v704_v9 = vpop.f32.mrb[1].mxu0  ;;  %v777_v10 = vpop.f32.mrb[1].mxu1 }
 0x107   : > { %v706_v14 = vpop.f32.mrb[2].mxu0  ;;  %v779_v15 = vpop.f32.mrb[2].mxu1 }
 0x108   : > { %v708_v16 = vpop.f32.mrb[3].mxu0  ;;  %v781_v17 = vpop.f32.mrb[3].mxu1 }
 0x10d   : > { %v712_v18 = vpop.f32.mrb[4].mxu0  ;;  %v785_v19 = vpop.f32.mrb[4].mxu1 }
 0x10e   : > { %v9292_v20 = vpop.f32.mrb[5].mxu0  ;;  %v9294_v21 = vpop.f32.mrb[5].mxu1 }
 0x10f   : > { %v9296_v22 = vpop.f32.mrb[6].mxu0  ;;  %v9298_v23 = vpop.f32.mrb[6].mxu1 }
 0x110   : > { %v9300_v24 = vpop.f32.mrb[7].mxu0  ;;  %v9302_v25 = vpop.f32.mrb[7].mxu1 }
 0x115   : > { %v722_v27 = vpop.f32.mrb[8].mxu0  ;;  %v795_v28 = vpop.f32.mrb[8].mxu1 }
 0x116   : > { %v814_v29 = vmax.f32 %v702_v7, %v722_v27  ;;  %v816_v30 = vmax.f32 %v775_v8, %v795_v28  ;;  %v724_v32 = vpop.f32.mrb[9].mxu0  ;;  %v797_v33 = vpop.f32.mrb[9].mxu1 }
 0x117   : > { %v815_v35 = vmax.f32 %v704_v9, %v724_v32  ;;  %v817_v36 = vmax.f32 %v777_v10, %v797_v33  ;;  %v726_v38 = vpop.f32.mrb[10].mxu0  ;;  %v799_v39 = vpop.f32.mrb[10].mxu1  ;;  %v9534_v32 = vld [vmem:[%s12264_s3 + $0x64] ss:$16 sps:$4 sm:$0xff]  }
 0x118   : > { %v830_v40 = vmax.f32 %v814_v29, %v816_v30  ;;  %v818_v41 = vmax.f32 %v706_v14, %v726_v38  ;;  %v820_v43 = vmax.f32 %v779_v15, %v799_v39  ;;  %v728_v44 = vpop.f32.mrb[11].mxu0  ;;  %v801_v45 = vpop.f32.mrb[11].mxu1  ;;  %v359_v30 = vand.u32 7, %v333_v63  ;;  %v9539_v38 = vld [vmem:[%s12264_s3 + $0x6c] ss:$16 sps:$4 sm:$0xff]  }
 0x119   : > { %v831_v46 = vmax.f32 %v815_v35, %v817_v36  ;;  %v819_v47 = vmax.f32 %v708_v16, %v728_v44  ;;  %v821_v48 = vmax.f32 %v781_v17, %v801_v45 }
 0x11a   : > { %v9314_v50 = vadd.f32 %v9308_v31, %v830_v40  ;;  %v832_v51 = vmax.f32 %v818_v41, %v820_v43  ;;  %vm9378_vm5 = vcmp.ne.s32.totalorder %v359_v30, 0 }
 0x11b   : > { %v9321_v53 = vadd.f32 %v9311_v37, %v831_v46  ;;  %v833_v54 = vmax.f32 %v819_v47, %v821_v48  ;;  %vm9519_vm7 = vmpackc.low %vm9378_vm5, %vm9362_vm4 }
 0x11c   : > { %v12275_v55 = vmax.f32 %v9314_v50, 0.0  ;;  %v9329_v57 = vadd.f32 %v9308_v31, %v832_v51 }
 0x11d   : > { %v859_v58 = vmax.f32 %v9321_v53, 0.0  ;;  %v9333_v59 = vadd.f32 %v9311_v37, %v833_v54  ;;  %v732_v60 = vpop.f32.mrb[12].mxu0  ;;  %v805_v62 = vpop.f32.mrb[12].mxu1 }
 0x11e   : > { %v874_v0 = vsel %vm9316_vm2, %v12275_v55, 0.0  ;;  %v12274_v1 = vmax.f32 %v9329_v57, 0.0  ;;  %v822_v2 = vmax.f32 %v712_v18, %v732_v60  ;;  %v824_v3 = vmax.f32 %v785_v19, %v805_v62  ;;  %v734_v4 = vpop.f32.mrb[13].mxu0  ;;  %v807_v5 = vpop.f32.mrb[13].mxu1  ;;  %v9746_v55 = vld [vmem:[%s12264_s3 + $0x144] ss:$16 sps:$4 sm:$0xff]  }
 0x11f   : > { %v875_v7 = vsel %vm9316_vm2, %v859_v58, 0.0  ;;  %v861_v8 = vmax.f32 %v9333_v59, 0.0  ;;  %v823_v6 = vmax.f32 %v9292_v20, %v734_v4  ;;  %v825_v9 = vmax.f32 %v9294_v21, %v807_v5  ;;  %v736_v10 = vpop.f32.mrb[14].mxu0  ;;  %v809_v13 = vpop.f32.mrb[14].mxu1 }
 0x120   : > { %v7521_v14 = vpack.c.bf16 %v875_v7, %v874_v0  ;;  %v876_v15 = vsel %vm9324_vm3, %v12274_v1, 0.0  ;;  %v834_v16 = vmax.f32 %v822_v2, %v824_v3  ;;  %v826_v17 = vmax.f32 %v9296_v22, %v736_v10  ;;  %v738_v18 = vpop.f32.mrb[15].mxu0  ;;  %v811_v19 = vpop.f32.mrb[15].mxu1  ;;  %v1361_v7 = vld [vmem:[%s12263_s2] sm:$0x3] }
 0x121   : > { %v877_v20 = vsel %vm9324_vm3, %v861_v8, 0.0  ;;  %v835_v26 = vmax.f32 %v823_v6, %v825_v9  ;;  %v828_v21 = vmax.f32 %v9298_v23, %v809_v13  ;;  %v827_v27 = vmax.f32 %v9300_v24, %v738_v18  ;;  %v9739_v1 = vld [vmem:[%s12264_s3 + $0x128] ss:$16 sps:$4 sm:$0xff]  }
 0x122   : > { %906 = vst [vmem:[#allocation2] sm:$0xff] %v7521_v14  ;;  %v7522_v28 = vpack.c.bf16 %v877_v20, %v876_v15  ;;  %v9359_v29 = vadd.f32 %v9308_v31, %v834_v16  ;;  %v829_v22 = vmax.f32 %v9302_v25, %v811_v19  ;;  %v1366_v14 = vrot.slane %v1361_v7, %v9288_v11  ;;  %v9758_v11 = vld [vmem:[%s12264_s3 + $0x140] ss:$16 sps:$4 sm:$0xff]  }
 0x123   : > { %v9367_v33 = vadd.f32 %v9311_v37, %v835_v26  ;;  %v836_v34 = vmax.f32 %v826_v17, %v828_v21  ;;  %v1370_v19 = vrot.slane %v1361_v7, %v9290_v12  ;;  %v9751_v12 = vld [vmem:[%s12264_s3 + $0x14c] ss:$16 sps:$4 sm:$0xff]  }
 0x124   : > { %907 = vst [vmem:[#allocation2 + $0x8] sm:$0xff] %v7522_v28  ;;  %v12271_v23 = vmax.f32 %v9359_v29, 0.0  ;;  %v837_v24 = vmax.f32 %v827_v27, %v829_v22 }
 0x125   : > { %v12273_v35 = vmax.f32 %v9367_v33, 0.0  ;;  %v9372_v36 = vadd.f32 %v9308_v31, %v836_v34 }
 0x126   : > { %v878_v25 = vsel %vm9362_vm4, %v12271_v23, 0.0  ;;  %v9383_v39 = vadd.f32 %v9311_v37, %v837_v24  ;;  %v9722_v23 = vld [vmem:[%s12264_s3 + $0x124] ss:$16 sps:$4 sm:$0xff]  }
 0x127   : > { %v879_v40 = vsel %vm9362_vm4, %v12273_v35, 0.0  ;;  %v12270_v31 = vmax.f32 %v9372_v36, 0.0  ;;  %v9734_v35 = vld [vmem:[%s12264_s3 + $0x120] ss:$16 sps:$4 sm:$0xff]  }
 0x128   : > { %v12272_v41 = vmax.f32 %v9383_v39, 0.0 }
 0x129   : > { %v880_v42 = vsel %vm9378_vm5, %v12270_v31, 0.0  ;;  %v1225_v43 = vpop.f32.mrb[16].mxu0  ;;  %v1298_v44 = vpop.f32.mrb[16].mxu1  ;;  %v9715_v31 = vld [vmem:[%s12264_s3 + $0x108] ss:$16 sps:$4 sm:$0xff]  }
 0x12a   : > { %v881_v37 = vsel %vm9378_vm5, %v12272_v41, 0.0  ;;  %v1227_v45 = vpop.f32.mrb[17].mxu0  ;;  %v1300_v46 = vpop.f32.mrb[17].mxu1  ;;  %v9401_v60 = vpack.c.bf16 %v880_v42, %v878_v25  ;;  %v9727_v41 = vld [vmem:[%s12264_s3 + $0x12c] ss:$16 sps:$4 sm:$0xff]  }
 0x12b   : > { %v1229_v47 = vpop.f32.mrb[18].mxu0  ;;  %v1302_v48 = vpop.f32.mrb[18].mxu1  ;;  %v9399_v54 = vpack.c.bf16 %v881_v37, %v879_v40 }
 0x12c   : > { %v1231_v49 = vpop.f32.mrb[19].mxu0  ;;  %v1304_v51 = vpop.f32.mrb[19].mxu1  ;;  %12351 = vst [vmem:[#allocation8_spill] sm:$0xff] %v9401_v60 }
 0x12d   : > { %12350 = vst [vmem:[#allocation7_spill] sm:$0xff] %v9399_v54 }
 0x131   : > { %v1235_v61 = vpop.f32.mrb[20].mxu0  ;;  %v1308_v62 = vpop.f32.mrb[20].mxu1 }
 0x132   : > { %v1237_v63 = vpop.f32.mrb[21].mxu0  ;;  %v1310_v0 = vpop.f32.mrb[21].mxu1 }
 0x133   : > { %v9403_v2 = vpop.f32.mrb[22].mxu0  ;;  %v1312_v3 = vpop.f32.mrb[22].mxu1 }
 0x134   : > { %v9405_v4 = vpop.f32.mrb[23].mxu0  ;;  %v9407_v5 = vpop.f32.mrb[23].mxu1 }
 0x139   : > { %v1245_v6 = vpop.f32.mrb[24].mxu0  ;;  %v1318_v9 = vpop.f32.mrb[24].mxu1 }
 0x13a   : > { %v1337_v10 = vmax.f32 %v1225_v43, %v1245_v6  ;;  %v1339_v13 = vmax.f32 %v1298_v44, %v1318_v9  ;;  %v1247_v15 = vpop.f32.mrb[25].mxu0  ;;  %v1320_v16 = vpop.f32.mrb[25].mxu1 }
 0x13b   : > { %v1338_v17 = vmax.f32 %v1227_v45, %v1247_v15  ;;  %v1340_v18 = vmax.f32 %v1300_v46, %v1320_v16  ;;  %v1249_v20 = vpop.f32.mrb[26].mxu0  ;;  %v1322_v26 = vpop.f32.mrb[26].mxu1 }
 0x13c   : > { %v1353_v21 = vmax.f32 %v1337_v10, %v1339_v13  ;;  %v1341_v27 = vmax.f32 %v1229_v47, %v1249_v20  ;;  %v1343_v28 = vmax.f32 %v1302_v48, %v1322_v26  ;;  %v1251_v30 = vpop.f32.mrb[27].mxu0  ;;  %v1324_v22 = vpop.f32.mrb[27].mxu1 }
 0x13d   : > { %v1354_v34 = vmax.f32 %v1338_v17, %v1340_v18  ;;  %v1342_v24 = vmax.f32 %v1231_v49, %v1251_v30  ;;  %v1344_v25 = vmax.f32 %v1304_v51, %v1324_v22 }
 0x13e   : > { %v1373_v40 = vadd.f32 %v1366_v14, %v1353_v21  ;;  %v1355_v42 = vmax.f32 %v1341_v27, %v1343_v28 }
 0x13f   : > { %v1374_v43 = vadd.f32 %v1370_v19, %v1354_v34  ;;  %v1356_v44 = vmax.f32 %v1342_v24, %v1344_v25 }
 0x140   : > { %v1381_v37 = vmax.f32 %v1373_v40, 0.0  ;;  %v1375_v6 = vadd.f32 %v1366_v14, %v1355_v42 }
 0x141   : > { %v1382_v45 = vmax.f32 %v1374_v43, 0.0  ;;  %v1376_v46 = vadd.f32 %v1370_v19, %v1356_v44  ;;  %v1255_v9 = vpop.f32.mrb[28].mxu0  ;;  %v1328_v7 = vpop.f32.mrb[28].mxu1 }
 0x142   : > { %v1389_v10 = vsel %vm9316_vm2, %v1381_v37, 0.0  ;;  %v1383_v47 = vmax.f32 %v1375_v6, 0.0  ;;  %v1345_v48 = vmax.f32 %v1235_v61, %v1255_v9  ;;  %v1347_v13 = vmax.f32 %v1308_v62, %v1328_v7  ;;  %v1257_v15 = vpop.f32.mrb[29].mxu0  ;;  %v1330_v16 = vpop.f32.mrb[29].mxu1  ;;  %v9443_v9 = vld [vmem:[%s12264_s3 + $0x2c] ss:$16 sps:$4 sm:$0xff]  }
 0x143   : > { %v1390_v49 = vsel %vm9316_vm2, %v1382_v45, 0.0  ;;  %v1384_v51 = vmax.f32 %v1376_v46, 0.0  ;;  %v1346_v17 = vmax.f32 %v1237_v63, %v1257_v15  ;;  %v1348_v18 = vmax.f32 %v1310_v0, %v1330_v16  ;;  %v1259_v20 = vpop.f32.mrb[30].mxu0  ;;  %v1332_v26 = vpop.f32.mrb[30].mxu1  ;;  %v9478_v15 = vld [vmem:[%s12264_s3 + $0x20] ss:$16 sps:$4 sm:$0xff]  }
 0x144   : > { %v7525_v21 = vpack.c.bf16 %v1390_v49, %v1389_v10  ;;  %v1391_v27 = vsel %vm9324_vm3, %v1383_v47, 0.0  ;;  %v1357_v28 = vmax.f32 %v1345_v48, %v1347_v13  ;;  %v1349_v30 = vmax.f32 %v9403_v2, %v1259_v20  ;;  %v1261_v22 = vpop.f32.mrb[31].mxu0  ;;  %v1334_v61 = vpop.f32.mrb[31].mxu1  ;;  %v9428_v2 = vld [vmem:[%s12264_s3] ss:$16 sps:$4 sm:$0xff]  }
 0x145   : > { %v1392_v62 = vsel %vm9324_vm3, %v1384_v51, 0.0  ;;  %v1358_v34 = vmax.f32 %v1346_v17, %v1348_v18  ;;  %v1351_v24 = vmax.f32 %v1312_v3, %v1332_v26  ;;  %v1350_v25 = vmax.f32 %v9405_v4, %v1261_v22  ;;  %v9433_v3 = vld [vmem:[%s12264_s3 + $0x8] ss:$16 sps:$4 sm:$0xff]   ;;  %v9492_v16 = vld [vmem:[%s12264_s3 + $0x44] ss:$16 sps:$4 sm:$0xff]  }
 0x146   : > { %1421 = vst [vmem:[#allocation3] sm:$0xff] %v7525_v21  ;;  %v7526_v63 = vpack.c.bf16 %v1392_v62, %v1391_v27  ;;  %v1377_v0 = vadd.f32 %v1366_v14, %v1357_v28  ;;  %v1352_v40 = vmax.f32 %v9407_v5, %v1334_v61  ;;  %v9438_v5 = vld [vmem:[%s12264_s3 + $0x24] ss:$16 sps:$4 sm:$0xff]   ;;  %v9455_v48 = vpack.c.bf16 %v1384_v51, %v1382_v45  ;;  %v9497_v49 = vld [vmem:[%s12264_s3 + $0x4c] ss:$16 sps:$4 sm:$0xff]  }
 0x147   : > { %v1378_v42 = vadd.f32 %v1370_v19, %v1358_v34  ;;  %v1359_v43 = vmax.f32 %v1349_v30, %v1351_v24  ;;  %v9465_v13 = vpack.c.bf16 %v1383_v47, %v1381_v37  ;;  %v9483_v37 = vld [vmem:[%s12264_s3 + $0x28] ss:$16 sps:$4 sm:$0xff]   ;;  %v9506_v18 = vld [vmem:[%s12264_s3 + $0x40] ss:$16 sps:$4 sm:$0xff]   ;;  %v8676_v34 = vpack.c.bf16 %v861_v8, %v859_v58  ;;  %v9576_v24 = vld [vmem:[%s12264_s3 + $0x84] ss:$16 sps:$4 sm:$0xff]  }
 0x148   : > { %1422 = vst [vmem:[#allocation3 + $0x8] sm:$0xff] %v7526_v63  ;;  %v1385_v44 = vmax.f32 %v1377_v0, 0.0  ;;  %v1360_v6 = vmax.f32 %v1350_v25, %v1352_v40  ;;  %8651 = vmatprep.mubr.msk.bf16.mxu0 %vm9451_vm6, %v9455_v48  ;;  %8654 = vmatprep.mubr.msk.bf16.mxu1 %vm9451_vm6, %v9455_v48  ;;  %v9512_v20 = vld [vmem:[%s12264_s3 + $0x48] ss:$16 sps:$4 sm:$0xff]   ;;  %v9556_v22 = vld [vmem:[%s12264_s3 + $0x60] ss:$16 sps:$4 sm:$0xff]  }
 0x149   : > { %v1386_v4 = vmax.f32 %v1378_v42, 0.0  ;;  %v1379_v46 = vadd.f32 %v1366_v14, %v1359_v43  ;;  %12354 = vst [vmem:[#allocation9_spill] sm:$0xff] %v9465_v13  ;;  %8657 = vmatmul.mubr.msk.bf16.vlgmr.msra.gmra.mrb[32].mxu0 %vm9451_vm6, %v9465_v13  ;;  %8660 = vmatmul.mubr.msk.bf16.vlgmr.msra.gmra.mrb[32].mxu1 %vm9451_vm6, %v9465_v13  ;;  %v3249_v26 = vld [vmem:[#allocation3 + $0x20] sm:$0x11]  ;;  %v9598_v40 = vld [vmem:[%s12264_s3 + $0x80] ss:$16 sps:$4 sm:$0xff]  }
 0x14a   : > { %v1393_v7 = vsel %vm9362_vm4, %v1385_v44, 0.0  ;;  %v1380_v10 = vadd.f32 %v1370_v19, %v1360_v6  ;;  %2350 = vmatpush1.bf16.msra.mxu0 %v9428_v2  ;;  %2403 = vmatpush1.bf16.msra.mxu1 %v9433_v3  ;;  %v9561_v61 = vld [vmem:[%s12264_s3 + $0x68] ss:$16 sps:$4 sm:$0xff]   ;;  %v9563_v62 = vcombine.high %v3249_v26, %v3249_v26  ;;  %v9581_v25 = vld [vmem:[%s12264_s3 + $0x8c] ss:$16 sps:$4 sm:$0xff]   ;;  %v9583_v53 = vcombine.low %v3249_v26, %v3249_v26 }
 0x14b   : > { %v1394_v19 = vsel %vm9362_vm4, %v1386_v4, 0.0  ;;  %v1387_v52 = vmax.f32 %v1379_v46, 0.0  ;;  %2351 = vmatprep.subr.bf16.mxu0 %v9438_v5  ;;  %2404 = vmatprep.subr.bf16.mxu1 %v9443_v9  ;;  %v9603_v42 = vld [vmem:[%s12264_s3 + $0x88] ss:$16 sps:$4 sm:$0xff]   ;;  %v9616_v6 = vld [vmem:[%s12264_s3 + $0xac] ss:$16 sps:$4 sm:$0xff]  }
 0x14c   : > { %v7527_v56 = vpack.c.bf16 %v1394_v19, %v1393_v7  ;;  %v1388_v45 = vmax.f32 %v1380_v10, 0.0  ;;  %12360 = vst [vmem:[#allocation13_spill] sm:$0xff] %v9563_v62  ;;  %12361 = vst [vmem:[#allocation14_spill] sm:$0xff] %v9583_v53  ;;  %v4608_v43 = vrot.slane %v9563_v62, 1  ;;  %v9652_v26 = vld [vmem:[%s12264_s3 + $0xcc] ss:$16 sps:$4 sm:$0xff]  }
 0x14d   : > { %v1395_v47 = vsel %vm9378_vm5, %v1387_v52, 0.0  ;;  %v9541_v28 = vpack.c.bf16 %v1387_v52, %v1385_v44  ;;  %v4594_v59 = vld [vmem:[#allocation3] sm:$0xee]  ;;  %v9611_v44 = vld [vmem:[%s12264_s3 + $0xa4] ss:$16 sps:$4 sm:$0xff]  }
 0x14e   : > { %1423 = vst [vmem:[#allocation3 + $0x10] sm:$0xff] %v7527_v56  ;;  %v1396_v51 = vsel %vm9378_vm5, %v1388_v45, 0.0  ;;  %2352 = vmatpush1.bf16.msra.mxu0 %v9478_v15  ;;  %2405 = vmatpush1.bf16.msra.mxu1 %v9483_v37  ;;  %v9523_v27 = vpack.c.bf16 %v1388_v45, %v1386_v4  ;;  %v4606_v4 = vrot.slane %v9583_v53, 1  ;;  %v9626_v52 = vld [vmem:[%s12264_s3 + $0xa0] ss:$16 sps:$4 sm:$0xff]  }
 0x14f   : > { %v7528_v17 = vpack.c.bf16 %v1396_v51, %v1395_v47  ;;  %2353 = vmatprep.subr.bf16.mxu0 %v9492_v16  ;;  %2406 = vmatprep.subr.bf16.mxu1 %v9497_v49  ;;  %12358 = vst [vmem:[#allocation11_spill] sm:$0xff] %v9541_v28  ;;  %v9549_v30 = vld [vmem:[#allocation3 + $0x8] sm:$0xff]  ;;  %v9631_v56 = vld [vmem:[%s12264_s3 + $0xa8] ss:$16 sps:$4 sm:$0xff]  }
 0x150   : > { %12357 = vst [vmem:[#allocation10_spill] sm:$0xff] %v9523_v27  ;;  %8665 = vmatprep.mubr.msk.bf16.mxu0 %vm9519_vm7, %v9523_v27  ;;  %8668 = vmatprep.mubr.msk.bf16.mxu1 %vm9519_vm7, %v9523_v27  ;;  %12359 = vst [vmem:[#allocation12_spill] sm:$0xff] %v9549_v30  ;;  %v7186_v58 = vcombine.low %v4594_v59, %v9549_v30  ;;  %v7187_v8 = vcombine.high %v4594_v59, %v9549_v30  ;;  %v9662_v59 = vld [vmem:[%s12264_s3 + $0xc0] ss:$16 sps:$4 sm:$0xff]   ;;  %v9787_v53 = vld [vmem:[%s12264_s3 + $0x168] ss:$16 sps:$4 sm:$0xff]  }
 0x151   : > { %1424 = vst [vmem:[#allocation3 + $0x18] sm:$0xff] %v7528_v17  ;;  %8671 = vmatmul.mubr.msk.bf16.gmra.mrb[36].mxu0 %vm9519_vm7, %v9541_v28  ;;  %8674 = vmatmul.mubr.msk.bf16.gmra.mrb[36].mxu1 %vm9519_vm7, %v9541_v28  ;;  %v9647_v17 = vld [vmem:[%s12264_s3 + $0xc4] ss:$16 sps:$4 sm:$0xff]   ;;  %12372 = vst [vmem:[#allocation25_spill] sm:$0xff] %v9787_v53  ;;  %v9811_v30 = vld [vmem:[%s12264_s3 + $0x188] ss:$16 sps:$4 sm:$0xff]  }
 0x152   : > { %2354 = vmatpush1.bf16.msra.mxu0 %v9506_v18  ;;  %2407 = vmatpush1.bf16.msra.mxu1 %v9512_v20  ;;  %v4600_v46 = vrot.slane %v7186_v58, 1  ;;  %v4603_v7 = vrot.slane %v7187_v8, 1  ;;  %v9667_v58 = vld [vmem:[%s12264_s3 + $0xc8] ss:$16 sps:$4 sm:$0xff]   ;;  %v9674_v8 = vld [vmem:[%s12264_s3 + $0xe4] ss:$16 sps:$4 sm:$0xff]  }
 0x153   : > { %8677 = vmatprep.mubr.msk.bf16.mxu0 %vm9451_vm6, %v8676_v34  ;;  %8680 = vmatprep.mubr.msk.bf16.mxu1 %vm9451_vm6, %v8676_v34  ;;  %v9794_v62 = vld [vmem:[%s12264_s3 + $0x184] ss:$16 sps:$4 sm:$0xff]   ;;  %12376 = vst [vmem:[#allocation29_spill] sm:$0xff] %v9811_v30  ;;  %v9823_v27 = vld [vmem:[%s12264_s3 + $0x1ac] ss:$16 sps:$4 sm:$0xff]  }
 0x154   : > { %2355 = vmatprep.subr.bf16.mxu0 %v9534_v32  ;;  %2408 = vmatprep.subr.bf16.mxu1 %v9539_v38  ;;  %12373 = vst [vmem:[#allocation26_spill] sm:$0xff] %v9794_v62  ;;  %v9818_v28 = vld [vmem:[%s12264_s3 + $0x1a4] ss:$16 sps:$4 sm:$0xff]   ;;  %12378 = vst [vmem:[#allocation31_spill] sm:$0xff] %v9823_v27  ;;  %v9830_v13 = vld [vmem:[%s12264_s3 + $0x1a0] ss:$16 sps:$4 sm:$0xff]  }
 0x155   : > { %12377 = vst [vmem:[#allocation30_spill] sm:$0xff] %v9818_v28  ;;  %12379 = vst [vmem:[#allocation32_spill] sm:$0xff] %v9830_v13  ;;  %v10275_v14 = vld [vmem:[%s12264_s3 + $0x428] ss:$16 sps:$4 sm:$0xff]   ;;  %v10338_v21 = vld [vmem:[%s12264_s3 + $0x484] ss:$16 sps:$4 sm:$0xff]  }
 0x156   : > { %2356 = vmatpush1.bf16.msra.mxu0 %v9556_v22  ;;  %2409 = vmatpush1.bf16.msra.mxu1 %v9561_v61 }
 0x157   : > { %2357 = vmatprep.subr.bf16.mxu0 %v9576_v24  ;;  %2410 = vmatprep.subr.bf16.mxu1 %v9581_v25 }
 0x158   : > { %v9589_v63 = vld [vmem:[#allocation3 + $0x10] ss:$8 sps:$4 sm:$0xff]   ;;  %v9591_v0 = vld [vmem:[#allocation3 + $0x14] ss:$8 sps:$4 sm:$0xff]  }
 0x159   : > { %12362 = vst [vmem:[#allocation15_spill] sm:$0xff] %v9589_v63  ;;  %12363 = vst [vmem:[#allocation16_spill] sm:$0xff] %v9591_v0  ;;  %v4604_v10 = vrot.slane %v9591_v0, 1  ;;  %v4601_v19 = vrot.slane %v9589_v63, 1  ;;  %v9799_v63 = vld [vmem:[%s12264_s3 + $0x18c] ss:$16 sps:$4 sm:$0xff]  }
 0x15a   : > { %2358 = vmatpush1.bf16.msra.mxu0 %v9598_v40  ;;  %2411 = vmatpush1.bf16.msra.mxu1 %v9603_v42  ;;  %12374 = vst [vmem:[#allocation27_spill] sm:$0xff] %v9799_v63  ;;  %v9806_v0 = vld [vmem:[%s12264_s3 + $0x180] ss:$16 sps:$4 sm:$0xff]  }
 0x15b   : > { %v9634_v45 = vsel %vm3950_vm8, %v4603_v7, %v4604_v10  ;;  %v9637_v47 = vsel %vm3950_vm8, %v4600_v46, %v4601_v19  ;;  %v9640_v51 = vsel %vm3950_vm8, %v4604_v10, %v4608_v43  ;;  %2359 = vmatprep.subr.bf16.mxu0 %v9611_v44  ;;  %2412 = vmatprep.subr.bf16.mxu1 %v9616_v6  ;;  %v9679_v43 = vld [vmem:[%s12264_s3 + $0xec] ss:$16 sps:$4 sm:$0xff]   ;;  %v9691_v46 = vld [vmem:[%s12264_s3 + $0xe8] ss:$16 sps:$4 sm:$0xff]   ;;  %v9698_v7 = vld [vmem:[%s12264_s3 + $0x104] ss:$16 sps:$4 sm:$0xff]  }
 0x15c   : > { %12364 = vst [vmem:[#allocation17_spill] sm:$0xff] %v9634_v45  ;;  %12365 = vst [vmem:[#allocation18_spill] sm:$0xff] %v9637_v47  ;;  %v9655_v34 = vsel %vm3950_vm8, %v4601_v19, %v4606_v4  ;;  %v9686_v4 = vld [vmem:[%s12264_s3 + $0xe0] ss:$16 sps:$4 sm:$0xff]   ;;  %v9703_v10 = vld [vmem:[%s12264_s3 + $0x10c] ss:$16 sps:$4 sm:$0xff]  }
 0x15d   : > { %12366 = vst [vmem:[#allocation19_spill] sm:$0xff] %v9640_v51  ;;  %12367 = vst [vmem:[#allocation20_spill] sm:$0xff] %v9655_v34  ;;  %v9710_v19 = vld [vmem:[%s12264_s3 + $0x100] ss:$16 sps:$4 sm:$0xff]   ;;  %v9763_v34 = vld [vmem:[%s12264_s3 + $0x148] ss:$16 sps:$4 sm:$0xff]  }
 0x15e   : > { %2360 = vmatpush1.bf16.msra.mxu0 %v9626_v52  ;;  %2413 = vmatpush1.bf16.msra.mxu1 %v9631_v56  ;;  %12368 = vst [vmem:[#allocation21_spill] sm:$0xff] %v9763_v34  ;;  %v9770_v51 = vld [vmem:[%s12264_s3 + $0x164] ss:$16 sps:$4 sm:$0xff]   ;;  %v9775_v47 = vld [vmem:[%s12264_s3 + $0x16c] ss:$16 sps:$4 sm:$0xff]   ;;  %12375 = vst [vmem:[#allocation28_spill] sm:$0xff] %v9806_v0 }
 0x15f   : > { %2361 = vmatprep.subr.bf16.mxu0 %v9647_v17  ;;  %2414 = vmatprep.subr.bf16.mxu1 %v9652_v26  ;;  %12369 = vst [vmem:[#allocation22_spill] sm:$0xff] %v9770_v51  ;;  %12370 = vst [vmem:[#allocation23_spill] sm:$0xff] %v9775_v47  ;;  %v9782_v45 = vld [vmem:[%s12264_s3 + $0x160] ss:$16 sps:$4 sm:$0xff]  }
 0x160   : > { %12371 = vst [vmem:[#allocation24_spill] sm:$0xff] %v9782_v45 }
 0x162   : > { %2362 = vmatpush1.bf16.msra.mxu0 %v9662_v59  ;;  %2415 = vmatpush1.bf16.msra.mxu1 %v9667_v58 }
 0x163   : > { %2363 = vmatprep.subr.bf16.mxu0 %v9674_v8  ;;  %2416 = vmatprep.subr.bf16.mxu1 %v9679_v43 }
 0x166   : > { %2364 = vmatpush1.bf16.msra.mxu0 %v9686_v4  ;;  %2417 = vmatpush1.bf16.msra.mxu1 %v9691_v46 }
 0x167   : > { %2365 = vmatprep.subr.bf16.mxu0 %v9698_v7  ;;  %2418 = vmatprep.subr.bf16.mxu1 %v9703_v10 }
 0x16a   : > { %2366 = vmatpush1.bf16.msra.mxu0 %v9710_v19  ;;  %2419 = vmatpush1.bf16.msra.mxu1 %v9715_v31 }
 0x16b   : > { %2367 = vmatprep.subr.bf16.mxu0 %v9722_v23  ;;  %2420 = vmatprep.subr.bf16.mxu1 %v9727_v41 }
 0x16e   : > { %2368 = vmatpush1.bf16.msra.mxu0 %v9734_v35  ;;  %2421 = vmatpush1.bf16.msra.mxu1 %v9739_v1 }
 0x16f   : > { %2369 = vmatprep.subr.bf16.mxu0 %v9746_v55  ;;  %2422 = vmatprep.subr.bf16.mxu1 %v9751_v12 }
 0x172   : > { %2370 = vmatpush1.bf16.msra.mxu0 %v9758_v11  ;;  %2423 = vmatpush1.bf16.msra.mxu1 %v9763_v34 }
 0x173   : > { %2371 = vmatprep.subr.bf16.mxu0 %v9770_v51  ;;  %2424 = vmatprep.subr.bf16.mxu1 %v9775_v47  ;;  %v12389_v51 = vmax.f32 %v9314_v50, 0.0  ;;  %v8577_v50 = vld [vmem:[%s12264_s3 + $0x200] ss:$16 sps:$4 sm:$0xff]  }
 0x176   : > { %2372 = vmatpush1.bf16.msra.mxu0 %v9782_v45  ;;  %2425 = vmatpush1.bf16.msra.mxu1 %v9787_v53  ;;  %v9875_v53 = vld [vmem:[#allocation2] sm:$0xff] }
 0x177   : > { %2373 = vmatprep.subr.bf16.mxu0 %v9794_v62  ;;  %2426 = vmatprep.subr.bf16.mxu1 %v9799_v63  ;;  %v9835_v63 = vld [vmem:[%s12264_s3 + $0x1a8] ss:$16 sps:$4 sm:$0xff]  }
 0x178   : > { %12380 = vst [vmem:[#allocation33_spill] sm:$0xff] %v9835_v63  ;;  %v9861_v62 = vld [vmem:[#allocation2 + $0x8] sm:$0xff] }
 0x179   : > { %v6789_v45 = vcombine.high %v9875_v53, %v9861_v62 }
 0x17a   : > { %2374 = vmatpush1.bf16.msra.mxu0 %v9806_v0  ;;  %2427 = vmatpush1.bf16.msra.mxu1 %v9811_v30  ;;  %v9842_v0 = vld [vmem:[%s12264_s3 + $0x1c4] ss:$16 sps:$4 sm:$0xff]   ;;  %v9847_v30 = vld [vmem:[%s12264_s3 + $0x1cc] ss:$16 sps:$4 sm:$0xff]  }
 0x17b   : > { %2375 = vmatprep.subr.bf16.mxu0 %v9818_v28  ;;  %2428 = vmatprep.subr.bf16.mxu1 %v9823_v27  ;;  %12381 = vst [vmem:[#allocation34_spill] sm:$0xff] %v9842_v0  ;;  %12382 = vst [vmem:[#allocation35_spill] sm:$0xff] %v9847_v30  ;;  %v9854_v28 = vld [vmem:[%s12264_s3 + $0x1c0] ss:$16 sps:$4 sm:$0xff]   ;;  %v9859_v27 = vld [vmem:[%s12264_s3 + $0x1c8] ss:$16 sps:$4 sm:$0xff]  }
 0x17c   : > { %12383 = vst [vmem:[#allocation36_spill] sm:$0xff] %v9854_v28  ;;  %12384 = vst [vmem:[#allocation37_spill] sm:$0xff] %v9859_v27  ;;  %v2497_v47 = vshll.u32 %v6789_v45, 16 }
 0x17e   : > { %2376 = vmatpush1.bf16.msra.mxu0 %v9830_v13  ;;  %2429 = vmatpush1.bf16.msra.mxu1 %v9835_v63  ;;  %v9868_v63 = vld [vmem:[%s12264_s3 + $0x1e4] ss:$16 sps:$4 sm:$0xff]   ;;  %v9873_v13 = vld [vmem:[%s12264_s3 + $0x1ec] ss:$16 sps:$4 sm:$0xff]  }
 0x17f   : > { %2377 = vmatprep.subr.bf16.mxu0 %v9842_v0  ;;  %2430 = vmatprep.subr.bf16.mxu1 %v9847_v30  ;;  %12385 = vst [vmem:[#allocation38_spill] sm:$0xff] %v9868_v63  ;;  %12386 = vst [vmem:[#allocation39_spill] sm:$0xff] %v9873_v13  ;;  %v9884_v30 = vld [vmem:[%s12264_s3 + $0x1e0] ss:$16 sps:$4 sm:$0xff]   ;;  %v9889_v0 = vld [vmem:[%s12264_s3 + $0x1e8] ss:$16 sps:$4 sm:$0xff]  }
 0x180   : > { %12387 = vst [vmem:[#allocation40_spill] sm:$0xff] %v9884_v30  ;;  %12388 = vst [vmem:[#allocation41_spill] sm:$0xff] %v9889_v0 }
 0x182   : > { %2378 = vmatpush1.bf16.msra.mxu0 %v9854_v28  ;;  %2431 = vmatpush1.bf16.msra.mxu1 %v9859_v27  ;;  %v8575_v27 = vld [vmem:[%s12264_s3 + $0x204] ss:$16 sps:$4 sm:$0xff]   ;;  %v8576_v28 = vld [vmem:[%s12264_s3 + $0x20c] ss:$16 sps:$4 sm:$0xff]  }
 0x183   : > { %2379 = vmatprep.subr.bf16.mxu0 %v9868_v63  ;;  %2432 = vmatprep.subr.bf16.mxu1 %v9873_v13  ;;  %v12390_v63 = vmax.f32 %v9329_v57, 0.0  ;;  %v8578_v57 = vld [vmem:[%s12264_s3 + $0x208] ss:$16 sps:$4 sm:$0xff]  }
 0x185   : > { %v8682_v13 = vpack.c.bf16 %v12390_v63, %v12389_v51  ;;  %v8581_v63 = vld [vmem:[%s12264_s3 + $0x220] ss:$16 sps:$4 sm:$0xff]   ;;  %v8583_v51 = vld [vmem:[%s12264_s3 + $0x244] ss:$16 sps:$4 sm:$0xff]  }
 0x186   : > { %2380 = vmatpush1.bf16.msra.mxu0 %v9884_v30  ;;  %2433 = vmatpush1.bf16.msra.mxu1 %v9889_v0  ;;  %v2499_v0 = vrot.slane %v2497_v47, 1  ;;  %v12391_v30 = vmax.f32 %v9367_v33, 0.0  ;;  %v2495_v33 = vshrl.u32 %v6789_v45, 16  ;;  %v8582_v45 = vld [vmem:[%s12264_s3 + $0x228] ss:$16 sps:$4 sm:$0xff]  }
 0x187   : > { %2526 = vmatprep.subr.bf16.mxu0 %v8575_v27  ;;  %2579 = vmatprep.subr.bf16.mxu1 %v8576_v28  ;;  %v12392_v27 = vmax.f32 %v9383_v39, 0.0  ;;  %v2502_v39 = vshll.u32 %v9399_v54, 16  ;;  %v8580_v28 = vld [vmem:[%s12264_s3 + $0x22c] ss:$16 sps:$4 sm:$0xff]  }
 0x189   : > { %8683 = vmatmul.mubr.msk.bf16.vlgmr.msra.gmra.mrb[32].mxu0 %vm9451_vm6, %v8682_v13  ;;  %8686 = vmatmul.mubr.msk.bf16.vlgmr.msra.gmra.mrb[32].mxu1 %vm9451_vm6, %v8682_v13  ;;  %v8688_v34 = vpack.c.bf16 %v12392_v27, %v12391_v30  ;;  %v8579_v13 = vld [vmem:[%s12264_s3 + $0x224] ss:$16 sps:$4 sm:$0xff]   ;;  %v2500_v30 = vor.u32 %v2499_v0, %v2495_v33  ;;  %v9936_v47 = vrot.slane %v2502_v39, 1  ;;  %v8584_v0 = vld [vmem:[%s12264_s3 + $0x24c] ss:$16 sps:$4 sm:$0xff]   ;;  %v12394_v27 = vmax.f32 %v9372_v36, 0.0 }
 0x18a   : > { %2527 = vmatpush1.bf16.msra.mxu0 %v8577_v50  ;;  %2580 = vmatpush1.bf16.msra.mxu1 %v8578_v57  ;;  %v8586_v36 = vld [vmem:[%s12264_s3 + $0x248] ss:$16 sps:$4 sm:$0xff]   ;;  %v8587_v33 = vld [vmem:[%s12264_s3 + $0x264] ss:$16 sps:$4 sm:$0xff]   ;;  %v8588_v39 = vld [vmem:[%s12264_s3 + $0x26c] ss:$16 sps:$4 sm:$0xff]  }
 0x18b   : > { %8689 = vmatprep.mubr.msk.bf16.mxu0 %vm9519_vm7, %v8688_v34  ;;  %8692 = vmatprep.mubr.msk.bf16.mxu1 %vm9519_vm7, %v8688_v34  ;;  %v12393_v34 = vmax.f32 %v9359_v29, 0.0  ;;  %v9954_v57 = vsel %vm2481_vm9, %v2500_v30, %v9936_v47  ;;  %v8585_v29 = vld [vmem:[%s12264_s3 + $0x240] ss:$16 sps:$4 sm:$0xff]   ;;  %v8591_v30 = vld [vmem:[%s12264_s3 + $0x284] ss:$16 sps:$4 sm:$0xff]  }
 0x18c   : > { %2528 = vmatprep.subr.bf16.mxu0 %v8579_v13  ;;  %2581 = vmatprep.subr.bf16.mxu1 %v8580_v28  ;;  %v8589_v13 = vld [vmem:[%s12264_s3 + $0x260] ss:$16 sps:$4 sm:$0xff]   ;;  %v8590_v28 = vld [vmem:[%s12264_s3 + $0x268] ss:$16 sps:$4 sm:$0xff]  }
 0x18d   : > { %v8694_v50 = vpack.c.bf16 %v12394_v27, %v12393_v34  ;;  %v8596_v34 = vld [vmem:[%s12264_s3 + $0x2ac] ss:$16 sps:$4 sm:$0xff]   ;;  %v8597_v27 = vld [vmem:[%s12264_s3 + $0x2a0] ss:$16 sps:$4 sm:$0xff]  }
 0x18e   : > { %2529 = vmatpush1.bf16.msra.mxu0 %v8581_v63  ;;  %2582 = vmatpush1.bf16.msra.mxu1 %v8582_v45  ;;  %v8592_v63 = vld [vmem:[%s12264_s3 + $0x28c] ss:$16 sps:$4 sm:$0xff]   ;;  %v8593_v45 = vld [vmem:[%s12264_s3 + $0x280] ss:$16 sps:$4 sm:$0xff]  }
 0x18f   : > { %2530 = vmatprep.subr.bf16.mxu0 %v8583_v51  ;;  %2583 = vmatprep.subr.bf16.mxu1 %v8584_v0  ;;  %v8594_v51 = vld [vmem:[%s12264_s3 + $0x288] ss:$16 sps:$4 sm:$0xff]   ;;  %v8595_v0 = vld [vmem:[%s12264_s3 + $0x2a4] ss:$16 sps:$4 sm:$0xff]  }
 0x191   : > { %8695 = vmatmul.mubr.msk.bf16.gmra.mrb[36].mxu0 %vm9519_vm7, %v8694_v50  ;;  %8698 = vmatmul.mubr.msk.bf16.gmra.mrb[36].mxu1 %vm9519_vm7, %v8694_v50  ;;  %v8598_v50 = vld [vmem:[%s12264_s3 + $0x2a8] ss:$16 sps:$4 sm:$0xff]  }
 0x192   : > { %2558 = vmatprep.mubr.bf16.mxu0 %v9954_v57  ;;  %2611 = vmatprep.mubr.bf16.mxu1 %v9954_v57 }
 0x193   : > { %2531 = vmatpush1.bf16.msra.mxu0 %v8585_v29  ;;  %2584 = vmatpush1.bf16.msra.mxu1 %v8586_v36  ;;  %v8599_v29 = vld [vmem:[%s12264_s3 + $0x2c4] ss:$16 sps:$4 sm:$0xff]   ;;  %v8600_v36 = vld [vmem:[%s12264_s3 + $0x2cc] ss:$16 sps:$4 sm:$0xff]  }
 0x194   : > { %2532 = vmatprep.subr.bf16.mxu0 %v8587_v33  ;;  %2585 = vmatprep.subr.bf16.mxu1 %v8588_v39  ;;  %v8601_v33 = vld [vmem:[%s12264_s3 + $0x2c0] ss:$16 sps:$4 sm:$0xff]   ;;  %v8602_v39 = vld [vmem:[%s12264_s3 + $0x2c8] ss:$16 sps:$4 sm:$0xff]  }
 0x197   : > { %2533 = vmatpush1.bf16.msra.mxu0 %v8589_v13  ;;  %2586 = vmatpush1.bf16.msra.mxu1 %v8590_v28  ;;  %v8603_v13 = vld [vmem:[%s12264_s3 + $0x2e4] ss:$16 sps:$4 sm:$0xff]   ;;  %v8604_v28 = vld [vmem:[%s12264_s3 + $0x2ec] ss:$16 sps:$4 sm:$0xff]  }
 0x198   : > { %2534 = vmatprep.subr.bf16.mxu0 %v8591_v30  ;;  %2587 = vmatprep.subr.bf16.mxu1 %v8592_v63  ;;  %v8605_v30 = vld [vmem:[%s12264_s3 + $0x2e0] ss:$16 sps:$4 sm:$0xff]   ;;  %v8606_v63 = vld [vmem:[%s12264_s3 + $0x2e8] ss:$16 sps:$4 sm:$0xff]  }
 0x19b   : > { %2535 = vmatpush1.bf16.msra.mxu0 %v8593_v45  ;;  %2588 = vmatpush1.bf16.msra.mxu1 %v8594_v51  ;;  %v8607_v45 = vld [vmem:[%s12264_s3 + $0x304] ss:$16 sps:$4 sm:$0xff]   ;;  %v8608_v51 = vld [vmem:[%s12264_s3 + $0x30c] ss:$16 sps:$4 sm:$0xff]  }
 0x19c   : > { %2536 = vmatprep.subr.bf16.mxu0 %v8595_v0  ;;  %2589 = vmatprep.subr.bf16.mxu1 %v8596_v34  ;;  %v8609_v0 = vld [vmem:[%s12264_s3 + $0x300] ss:$16 sps:$4 sm:$0xff]   ;;  %v8610_v34 = vld [vmem:[%s12264_s3 + $0x308] ss:$16 sps:$4 sm:$0xff]  }
 0x19f   : > { %2537 = vmatpush1.bf16.msra.mxu0 %v8597_v27  ;;  %2590 = vmatpush1.bf16.msra.mxu1 %v8598_v50  ;;  %v8611_v27 = vld [vmem:[%s12264_s3 + $0x324] ss:$16 sps:$4 sm:$0xff]   ;;  %v8612_v50 = vld [vmem:[%s12264_s3 + $0x32c] ss:$16 sps:$4 sm:$0xff]  }
 0x1a0   : > { %2538 = vmatprep.subr.bf16.mxu0 %v8599_v29  ;;  %2591 = vmatprep.subr.bf16.mxu1 %v8600_v36  ;;  %v8613_v29 = vld [vmem:[%s12264_s3 + $0x320] ss:$16 sps:$4 sm:$0xff]   ;;  %v8614_v36 = vld [vmem:[%s12264_s3 + $0x328] ss:$16 sps:$4 sm:$0xff]  }
 0x1a3   : > { %2539 = vmatpush1.bf16.msra.mxu0 %v8601_v33  ;;  %2592 = vmatpush1.bf16.msra.mxu1 %v8602_v39  ;;  %v8615_v33 = vld [vmem:[%s12264_s3 + $0x344] ss:$16 sps:$4 sm:$0xff]   ;;  %v8616_v39 = vld [vmem:[%s12264_s3 + $0x34c] ss:$16 sps:$4 sm:$0xff]  }
 0x1a4   : > { %2540 = vmatprep.subr.bf16.mxu0 %v8603_v13  ;;  %2593 = vmatprep.subr.bf16.mxu1 %v8604_v28  ;;  %v8617_v13 = vld [vmem:[%s12264_s3 + $0x340] ss:$16 sps:$4 sm:$0xff]   ;;  %v8618_v28 = vld [vmem:[%s12264_s3 + $0x348] ss:$16 sps:$4 sm:$0xff]  }
 0x1a7   : > { %2541 = vmatpush1.bf16.msra.mxu0 %v8605_v30  ;;  %2594 = vmatpush1.bf16.msra.mxu1 %v8606_v63  ;;  %v8619_v30 = vld [vmem:[%s12264_s3 + $0x364] ss:$16 sps:$4 sm:$0xff]   ;;  %v8620_v63 = vld [vmem:[%s12264_s3 + $0x36c] ss:$16 sps:$4 sm:$0xff]  }
 0x1a8   : > { %2542 = vmatprep.subr.bf16.mxu0 %v8607_v45  ;;  %2595 = vmatprep.subr.bf16.mxu1 %v8608_v51  ;;  %v8621_v45 = vld [vmem:[%s12264_s3 + $0x360] ss:$16 sps:$4 sm:$0xff]   ;;  %v8622_v51 = vld [vmem:[%s12264_s3 + $0x368] ss:$16 sps:$4 sm:$0xff]  }
 0x1ab   : > { %2543 = vmatpush1.bf16.msra.mxu0 %v8609_v0  ;;  %2596 = vmatpush1.bf16.msra.mxu1 %v8610_v34  ;;  %v8623_v0 = vld [vmem:[%s12264_s3 + $0x384] ss:$16 sps:$4 sm:$0xff]   ;;  %v8624_v34 = vld [vmem:[%s12264_s3 + $0x38c] ss:$16 sps:$4 sm:$0xff]  }
 0x1ac   : > { %2544 = vmatprep.subr.bf16.mxu0 %v8611_v27  ;;  %2597 = vmatprep.subr.bf16.mxu1 %v8612_v50  ;;  %v6788_v27 = vcombine.low %v9875_v53, %v9861_v62  ;;  %v8625_v50 = vld [vmem:[%s12264_s3 + $0x380] ss:$16 sps:$4 sm:$0xff]  }
 0x1ad   : > { %v2459_v53 = vld [vmem:[#allocation2 + $0x20] sm:$0x11] }
 0x1ae   : > { %v2485_v62 = vshll.u32 %v6788_v27, 16 }
 0x1af   : > { %2545 = vmatpush1.bf16.msra.mxu0 %v8613_v29  ;;  %2598 = vmatpush1.bf16.msra.mxu1 %v8614_v36  ;;  %v8626_v29 = vld [vmem:[%s12264_s3 + $0x388] ss:$16 sps:$4 sm:$0xff]   ;;  %v8627_v36 = vld [vmem:[%s12264_s3 + $0x3a4] ss:$16 sps:$4 sm:$0xff]  }
 0x1b0   : > { %2546 = vmatprep.subr.bf16.mxu0 %v8615_v33  ;;  %2599 = vmatprep.subr.bf16.mxu1 %v8616_v39  ;;  %v8628_v33 = vld [vmem:[%s12264_s3 + $0x3ac] ss:$16 sps:$4 sm:$0xff]   ;;  %v8629_v39 = vld [vmem:[%s12264_s3 + $0x3a0] ss:$16 sps:$4 sm:$0xff]  }
 0x1b3   : > { %2547 = vmatpush1.bf16.msra.mxu0 %v8617_v13  ;;  %2600 = vmatpush1.bf16.msra.mxu1 %v8618_v28  ;;  %v8630_v13 = vld [vmem:[%s12264_s3 + $0x3a8] ss:$16 sps:$4 sm:$0xff]   ;;  %v8631_v28 = vld [vmem:[%s12264_s3 + $0x3c4] ss:$16 sps:$4 sm:$0xff]  }
 0x1b4   : > { %2548 = vmatprep.subr.bf16.mxu0 %v8619_v30  ;;  %2601 = vmatprep.subr.bf16.mxu1 %v8620_v63  ;;  %v8632_v30 = vld [vmem:[%s12264_s3 + $0x3cc] ss:$16 sps:$4 sm:$0xff]   ;;  %v10104_v63 = vcombine.high %v2459_v53, %v2459_v53 }
 0x1b6   : > { %12395 = vst [vmem:[#allocation42_spill] sm:$0xff] %v10104_v63 }
 0x1b7   : > { %2549 = vmatpush1.bf16.msra.mxu0 %v8621_v45  ;;  %2602 = vmatpush1.bf16.msra.mxu1 %v8622_v51  ;;  %v2487_v45 = vrot.slane %v2485_v62, 1  ;;  %v2518_v51 = vshll.u32 %v10104_v63, 16  ;;  %v2514_v62 = vshrl.u32 %v9399_v54, 16  ;;  %v10590_v63 = vld [vmem:[%s12264_s3 + $0x5c0] ss:$16 sps:$4 sm:$0xff]  }
 0x1b8   : > { %2550 = vmatprep.subr.bf16.mxu0 %v8623_v0  ;;  %2603 = vmatprep.subr.bf16.mxu1 %v8624_v34  ;;  %v8633_v0 = vld [vmem:[%s12264_s3 + $0x3c0] ss:$16 sps:$4 sm:$0xff]   ;;  %v8634_v34 = vld [vmem:[%s12264_s3 + $0x3c8] ss:$16 sps:$4 sm:$0xff]   ;;  %v10602_v54 = vld [vmem:[%s12264_s3 + $0x5e4] ss:$16 sps:$4 sm:$0xff]  }
 0x1bb   : > { %2551 = vmatpush1.bf16.msra.mxu0 %v8625_v50  ;;  %2604 = vmatpush1.bf16.msra.mxu1 %v8626_v29  ;;  %v2483_v50 = vshrl.u32 %v6788_v27, 16  ;;  %v2490_v29 = vshll.u32 %v9401_v60, 16  ;;  %v8637_v27 = vld [vmem:[%s12264_s3 + $0x3e0] ss:$16 sps:$4 sm:$0xff]  }
 0x1bc   : > { %2552 = vmatprep.subr.bf16.mxu0 %v8627_v36  ;;  %2605 = vmatprep.subr.bf16.mxu1 %v8628_v33  ;;  %v8635_v36 = vld [vmem:[%s12264_s3 + $0x3e4] ss:$16 sps:$4 sm:$0xff]   ;;  %v8636_v33 = vld [vmem:[%s12264_s3 + $0x3ec] ss:$16 sps:$4 sm:$0xff]  }
 0x1bf   : > { %2553 = vmatpush1.bf16.msra.mxu0 %v8629_v39  ;;  %2606 = vmatpush1.bf16.msra.mxu1 %v8630_v13  ;;  %v2488_v39 = vor.u32 %v2487_v45, %v2483_v50  ;;  %v2516_v13 = vor.u32 %v2514_v62, %v9936_v47  ;;  %v8639_v45 = vld [vmem:[%s12264_s3 + $0x4] ss:$16 sps:$4 sm:$0xff]   ;;  %v8640_v47 = vld [vmem:[%s12264_s3 + $0xc] ss:$16 sps:$4 sm:$0xff]  }
 0x1c0   : > { %2554 = vmatprep.subr.bf16.mxu0 %v8631_v28  ;;  %2607 = vmatprep.subr.bf16.mxu1 %v8632_v30  ;;  %v2520_v28 = vrot.slane %v2518_v51, 1  ;;  %v8638_v30 = vld [vmem:[%s12264_s3 + $0x3e8] ss:$16 sps:$4 sm:$0xff]  }
 0x1c3   : > { %2555 = vmatpush1.bf16.msra.mxu0 %v8633_v0  ;;  %2608 = vmatpush1.bf16.msra.mxu1 %v8634_v34  ;;  %v2492_v0 = vrot.slane %v2490_v29, 1  ;;  %v10128_v34 = vcombine.low %v2459_v53, %v2459_v53  ;;  %v10143_v53 = vsel %vm2481_vm9, %v2516_v13, %v2520_v28  ;;  %v2506_v29 = vshrl.u32 %v9401_v60, 16  ;;  %v10374_v13 = vld [vmem:[%s12264_s3 + $0x4a0] ss:$16 sps:$4 sm:$0xff]   ;;  %v10379_v28 = vld [vmem:[%s12264_s3 + $0x4a8] ss:$16 sps:$4 sm:$0xff]  }
 0x1c4   : > { %2556 = vmatprep.subr.bf16.mxu0 %v8635_v36  ;;  %2609 = vmatprep.subr.bf16.mxu1 %v8636_v33  ;;  %v10595_v60 = vld [vmem:[%s12264_s3 + $0x5c8] ss:$16 sps:$4 sm:$0xff]  }
 0x1c5   : > { %12396 = vst [vmem:[#allocation43_spill] sm:$0xff] %v10128_v34  ;;  %v10137_v51 = vsel %vm2481_vm9, %v2488_v39, %v2492_v0  ;;  %v2510_v50 = vshll.u32 %v10128_v34, 16  ;;  %v2508_v36 = vor.u32 %v2506_v29, %v2492_v0  ;;  %v10367_v39 = vld [vmem:[%s12264_s3 + $0x4ac] ss:$16 sps:$4 sm:$0xff]   ;;  %v10398_v0 = vld [vmem:[%s12264_s3 + $0x4c0] ss:$16 sps:$4 sm:$0xff]  }
 0x1c6   : > { %v10422_v29 = vld [vmem:[%s12264_s3 + $0x4e0] ss:$16 sps:$4 sm:$0xff]   ;;  %v10583_v34 = vld [vmem:[%s12264_s3 + $0x5cc] ss:$16 sps:$4 sm:$0xff]  }
 0x1c7   : > { %2557 = vmatpush1.bf16.msra.mxu0 %v8637_v27  ;;  %2610 = vmatpush1.bf16.msra.mxu1 %v8638_v30  ;;  %v2512_v33 = vrot.slane %v2510_v50, 1  ;;  %v10386_v27 = vld [vmem:[%s12264_s3 + $0x4c4] ss:$16 sps:$4 sm:$0xff]   ;;  %v10391_v30 = vld [vmem:[%s12264_s3 + $0x4cc] ss:$16 sps:$4 sm:$0xff]  }
 0x1c8   : > { %2632 = vmatprep.subr.bf16.mxu0 %v8639_v45  ;;  %2685 = vmatprep.subr.bf16.mxu1 %v8640_v47  ;;  %v10403_v45 = vld [vmem:[%s12264_s3 + $0x4c8] ss:$16 sps:$4 sm:$0xff]   ;;  %v10410_v47 = vld [vmem:[%s12264_s3 + $0x4e4] ss:$16 sps:$4 sm:$0xff]   ;;  %v10415_v50 = vld [vmem:[%s12264_s3 + $0x4ec] ss:$16 sps:$4 sm:$0xff]  }
 0x1c9   : > { %v10155_v62 = vsel %vm2481_vm9, %v2508_v36, %v2512_v33  ;;  %v10427_v36 = vld [vmem:[%s12264_s3 + $0x4e8] ss:$16 sps:$4 sm:$0xff]   ;;  %v10434_v33 = vld [vmem:[%s12264_s3 + $0x504] ss:$16 sps:$4 sm:$0xff]  }
 0x1ca   : > { %2559 = vmatmul.mubr.bf16.vlgmr.msra.gmra.mrb[40].mxu0 %v10137_v51  ;;  %2612 = vmatmul.mubr.bf16.vlgmr.msra.gmra.mrb[40].mxu1 %v10137_v51 }
 0x1cb   : > { %2568 = vmatprep.mubr.bf16.mxu0 %v10143_v53  ;;  %2621 = vmatprep.mubr.bf16.mxu1 %v10143_v53 }
 0x1cc   : > { %2633 = vmatpush1.bf16.msra.mxu0 %v9428_v2  ;;  %2686 = vmatpush1.bf16.msra.mxu1 %v9433_v3  ;;  %v12397_v2 = vld [vmem:[#allocation21_spill] sm:$0xff]  ;;  %v12398_v3 = vld [vmem:[#allocation22_spill] sm:$0xff] }
 0x1cd   : > { %2634 = vmatprep.subr.bf16.mxu0 %v9438_v5  ;;  %2687 = vmatprep.subr.bf16.mxu1 %v9443_v9  ;;  %v12399_v5 = vld [vmem:[#allocation23_spill] sm:$0xff]  ;;  %v12408_v9 = vld [vmem:[#allocation32_spill] sm:$0xff] }
 0x1d0   : > { %2635 = vmatpush1.bf16.msra.mxu0 %v9478_v15  ;;  %2688 = vmatpush1.bf16.msra.mxu1 %v9483_v37  ;;  %v12410_v15 = vld [vmem:[#allocation34_spill] sm:$0xff]  ;;  %v12411_v37 = vld [vmem:[#allocation35_spill] sm:$0xff] }
 0x1d1   : > { %2636 = vmatprep.subr.bf16.mxu0 %v9492_v16  ;;  %2689 = vmatprep.subr.bf16.mxu1 %v9497_v49  ;;  %v12412_v16 = vld [vmem:[#allocation36_spill] sm:$0xff]  ;;  %v12413_v49 = vld [vmem:[#allocation37_spill] sm:$0xff] }
 0x1d2   : > { %2569 = vmatmul.mubr.bf16.gmra.mrb[44].mxu0 %v10155_v62  ;;  %2622 = vmatmul.mubr.bf16.gmra.mrb[44].mxu1 %v10155_v62 }
 0x1d3   : > { %8701 = vmatprep.mubr.msk.bf16.mxu0 %vm9451_vm6, %v9455_v48  ;;  %8704 = vmatprep.mubr.msk.bf16.mxu1 %vm9451_vm6, %v9455_v48  ;;  %v12409_v48 = vld [vmem:[#allocation33_spill] sm:$0xff] }
 0x1d4   : > { %2637 = vmatpush1.bf16.msra.mxu0 %v9506_v18  ;;  %2690 = vmatpush1.bf16.msra.mxu1 %v9512_v20  ;;  %v12414_v18 = vld [vmem:[#allocation38_spill] sm:$0xff]  ;;  %v12415_v20 = vld [vmem:[#allocation39_spill] sm:$0xff] }
 0x1d5   : > { %2638 = vmatprep.subr.bf16.mxu0 %v9534_v32  ;;  %2691 = vmatprep.subr.bf16.mxu1 %v9539_v38  ;;  %v10222_v32 = vld [vmem:[%s12264_s3 + $0x404] ss:$16 sps:$4 sm:$0xff]   ;;  %v10227_v38 = vld [vmem:[%s12264_s3 + $0x40c] ss:$16 sps:$4 sm:$0xff]  }
 0x1d8   : > { %2639 = vmatpush1.bf16.msra.mxu0 %v9556_v22  ;;  %2692 = vmatpush1.bf16.msra.mxu1 %v9561_v61  ;;  %v12416_v22 = vld [vmem:[#allocation40_spill] sm:$0xff]  ;;  %v12417_v61 = vld [vmem:[#allocation41_spill] sm:$0xff] }
 0x1d9   : > { %2640 = vmatprep.subr.bf16.mxu0 %v9576_v24  ;;  %2693 = vmatprep.subr.bf16.mxu1 %v9581_v25  ;;  %v10234_v24 = vld [vmem:[%s12264_s3 + $0x400] ss:$16 sps:$4 sm:$0xff]   ;;  %v10240_v25 = vld [vmem:[%s12264_s3 + $0x408] ss:$16 sps:$4 sm:$0xff]  }
 0x1dc   : > { %2641 = vmatpush1.bf16.msra.mxu0 %v9598_v40  ;;  %2694 = vmatpush1.bf16.msra.mxu1 %v9603_v42  ;;  %v10246_v40 = vld [vmem:[%s12264_s3 + $0x424] ss:$16 sps:$4 sm:$0xff]   ;;  %v10251_v42 = vld [vmem:[%s12264_s3 + $0x42c] ss:$16 sps:$4 sm:$0xff]  }
 0x1dd   : > { %2642 = vmatprep.subr.bf16.mxu0 %v9611_v44  ;;  %2695 = vmatprep.subr.bf16.mxu1 %v9616_v6  ;;  %v12418_v44 = vld [vmem:[#allocation9_spill] sm:$0xff]  ;;  %v12419_v6 = vld [vmem:[#allocation10_spill] sm:$0xff] }
 0x1e0   : > { %2643 = vmatpush1.bf16.msra.mxu0 %v9626_v52  ;;  %2696 = vmatpush1.bf16.msra.mxu1 %v9631_v56  ;;  %v10270_v52 = vld [vmem:[%s12264_s3 + $0x420] ss:$16 sps:$4 sm:$0xff]   ;;  %v10282_v56 = vld [vmem:[%s12264_s3 + $0x444] ss:$16 sps:$4 sm:$0xff]  }
 0x1e1   : > { %2644 = vmatprep.subr.bf16.mxu0 %v9647_v17  ;;  %2697 = vmatprep.subr.bf16.mxu1 %v9652_v26  ;;  %v10287_v17 = vld [vmem:[%s12264_s3 + $0x44c] ss:$16 sps:$4 sm:$0xff]   ;;  %v10294_v26 = vld [vmem:[%s12264_s3 + $0x440] ss:$16 sps:$4 sm:$0xff]  }
 0x1e4   : > { %2645 = vmatpush1.bf16.msra.mxu0 %v9662_v59  ;;  %2698 = vmatpush1.bf16.msra.mxu1 %v9667_v58  ;;  %v10299_v59 = vld [vmem:[%s12264_s3 + $0x448] ss:$16 sps:$4 sm:$0xff]   ;;  %v10306_v58 = vld [vmem:[%s12264_s3 + $0x464] ss:$16 sps:$4 sm:$0xff]  }
 0x1e5   : > { %2646 = vmatprep.subr.bf16.mxu0 %v9674_v8  ;;  %2699 = vmatprep.subr.bf16.mxu1 %v9679_v43  ;;  %v10311_v8 = vld [vmem:[%s12264_s3 + $0x46c] ss:$16 sps:$4 sm:$0xff]  }
 0x1e6   : > { %v12420_v43 = vld [vmem:[#allocation11_spill] sm:$0xff] }
 0x1e8   : > { %2647 = vmatpush1.bf16.msra.mxu0 %v9686_v4  ;;  %2700 = vmatpush1.bf16.msra.mxu1 %v9691_v46  ;;  %v10326_v4 = vld [vmem:[%s12264_s3 + $0x460] ss:$16 sps:$4 sm:$0xff]   ;;  %v10331_v46 = vld [vmem:[%s12264_s3 + $0x468] ss:$16 sps:$4 sm:$0xff]  }
 0x1e9   : > { %2648 = vmatprep.subr.bf16.mxu0 %v9698_v7  ;;  %2701 = vmatprep.subr.bf16.mxu1 %v9703_v10  ;;  %v10343_v7 = vld [vmem:[%s12264_s3 + $0x48c] ss:$16 sps:$4 sm:$0xff]   ;;  %v10350_v10 = vld [vmem:[%s12264_s3 + $0x480] ss:$16 sps:$4 sm:$0xff]  }
 0x1ec   : > { %2649 = vmatpush1.bf16.msra.mxu0 %v9710_v19  ;;  %2702 = vmatpush1.bf16.msra.mxu1 %v9715_v31  ;;  %v12400_v31 = vld [vmem:[#allocation24_spill] sm:$0xff]  ;;  %v10355_v19 = vld [vmem:[%s12264_s3 + $0x488] ss:$16 sps:$4 sm:$0xff]  }
 0x1ed   : > { %2650 = vmatprep.subr.bf16.mxu0 %v9722_v23  ;;  %2703 = vmatprep.subr.bf16.mxu1 %v9727_v41  ;;  %v12401_v23 = vld [vmem:[#allocation25_spill] sm:$0xff]  ;;  %v12402_v41 = vld [vmem:[#allocation26_spill] sm:$0xff] }
 0x1ee   : > { %12426 = vst [vmem:[#allocation26_spill] sm:$0xff] %v10583_v34 }
 0x1f0   : > { %2651 = vmatpush1.bf16.msra.mxu0 %v9734_v35  ;;  %2704 = vmatpush1.bf16.msra.mxu1 %v9739_v1  ;;  %v12403_v35 = vld [vmem:[#allocation27_spill] sm:$0xff]  ;;  %v12404_v1 = vld [vmem:[#allocation28_spill] sm:$0xff] }
 0x1f1   : > { %2652 = vmatprep.subr.bf16.mxu0 %v9746_v55  ;;  %2705 = vmatprep.subr.bf16.mxu1 %v9751_v12  ;;  %v12405_v55 = vld [vmem:[#allocation29_spill] sm:$0xff]  ;;  %v12406_v12 = vld [vmem:[#allocation30_spill] sm:$0xff]  ;;  %12427 = vst [vmem:[#allocation27_spill] sm:$0xff] %v10590_v63  ;;  %12428 = vst [vmem:[#allocation28_spill] sm:$0xff] %v10595_v60 }
 0x1f2   : > { %12429 = vst [vmem:[#allocation29_spill] sm:$0xff] %v10602_v54 }
 0x1f4   : > { %2653 = vmatpush1.bf16.msra.mxu0 %v9758_v11  ;;  %2706 = vmatpush1.bf16.msra.mxu1 %v12397_v2  ;;  %v12407_v11 = vld [vmem:[#allocation31_spill] sm:$0xff] }
 0x1f5   : > { %2654 = vmatprep.subr.bf16.mxu0 %v12398_v3  ;;  %2707 = vmatprep.subr.bf16.mxu1 %v12399_v5  ;;  %v10439_v2 = vld [vmem:[%s12264_s3 + $0x50c] ss:$16 sps:$4 sm:$0xff]   ;;  %v10446_v3 = vld [vmem:[%s12264_s3 + $0x500] ss:$16 sps:$4 sm:$0xff]   ;;  %v10451_v5 = vld [vmem:[%s12264_s3 + $0x508] ss:$16 sps:$4 sm:$0xff]  }
 0x1f8   : > { %2655 = vmatpush1.bf16.msra.mxu0 %v12400_v31  ;;  %2708 = vmatpush1.bf16.msra.mxu1 %v12401_v23  ;;  %v10458_v31 = vld [vmem:[%s12264_s3 + $0x524] ss:$16 sps:$4 sm:$0xff]   ;;  %v10463_v23 = vld [vmem:[%s12264_s3 + $0x52c] ss:$16 sps:$4 sm:$0xff]  }
 0x1f9   : > { %2656 = vmatprep.subr.bf16.mxu0 %v12402_v41  ;;  %2709 = vmatprep.subr.bf16.mxu1 %v12403_v35  ;;  %v10470_v41 = vld [vmem:[%s12264_s3 + $0x520] ss:$16 sps:$4 sm:$0xff]   ;;  %v10475_v35 = vld [vmem:[%s12264_s3 + $0x528] ss:$16 sps:$4 sm:$0xff]  }
 0x1fc   : > { %2657 = vmatpush1.bf16.msra.mxu0 %v12404_v1  ;;  %2710 = vmatpush1.bf16.msra.mxu1 %v12405_v55  ;;  %v10482_v1 = vld [vmem:[%s12264_s3 + $0x544] ss:$16 sps:$4 sm:$0xff]   ;;  %v10487_v55 = vld [vmem:[%s12264_s3 + $0x54c] ss:$16 sps:$4 sm:$0xff]  }
 0x1fd   : > { %2658 = vmatprep.subr.bf16.mxu0 %v12406_v12  ;;  %2711 = vmatprep.subr.bf16.mxu1 %v12407_v11  ;;  %v10494_v12 = vld [vmem:[%s12264_s3 + $0x540] ss:$16 sps:$4 sm:$0xff]   ;;  %v10499_v11 = vld [vmem:[%s12264_s3 + $0x548] ss:$16 sps:$4 sm:$0xff]  }
 0x200   : > { %2659 = vmatpush1.bf16.msra.mxu0 %v12408_v9  ;;  %2712 = vmatpush1.bf16.msra.mxu1 %v12409_v48  ;;  %v10506_v9 = vld [vmem:[%s12264_s3 + $0x564] ss:$16 sps:$4 sm:$0xff]   ;;  %v10511_v48 = vld [vmem:[%s12264_s3 + $0x56c] ss:$16 sps:$4 sm:$0xff]  }
 0x201   : > { %2660 = vmatprep.subr.bf16.mxu0 %v12410_v15  ;;  %2713 = vmatprep.subr.bf16.mxu1 %v12411_v37  ;;  %v10518_v15 = vld [vmem:[%s12264_s3 + $0x560] ss:$16 sps:$4 sm:$0xff]   ;;  %v10523_v37 = vld [vmem:[%s12264_s3 + $0x568] ss:$16 sps:$4 sm:$0xff]  }
 0x204   : > { %2661 = vmatpush1.bf16.msra.mxu0 %v12412_v16  ;;  %2714 = vmatpush1.bf16.msra.mxu1 %v12413_v49  ;;  %v10530_v16 = vld [vmem:[%s12264_s3 + $0x584] ss:$16 sps:$4 sm:$0xff]   ;;  %v10535_v49 = vld [vmem:[%s12264_s3 + $0x58c] ss:$16 sps:$4 sm:$0xff]  }
 0x205   : > { %2662 = vmatprep.subr.bf16.mxu0 %v12414_v18  ;;  %2715 = vmatprep.subr.bf16.mxu1 %v12415_v20  ;;  %v10542_v18 = vld [vmem:[%s12264_s3 + $0x580] ss:$16 sps:$4 sm:$0xff]   ;;  %v10547_v20 = vld [vmem:[%s12264_s3 + $0x588] ss:$16 sps:$4 sm:$0xff]  }
 0x208   : > { %2663 = vmatpush1.bf16.msra.mxu0 %v12416_v22  ;;  %2716 = vmatpush1.bf16.msra.mxu1 %v12417_v61  ;;  %v10554_v22 = vld [vmem:[%s12264_s3 + $0x5a4] ss:$16 sps:$4 sm:$0xff]   ;;  %v10559_v61 = vld [vmem:[%s12264_s3 + $0x5ac] ss:$16 sps:$4 sm:$0xff]  }
 0x209   : > { %3123 = vmatprep.subr.bf16.mxu0 %v10222_v32  ;;  %3176 = vmatprep.subr.bf16.mxu1 %v10227_v38  ;;  %12421 = vst [vmem:[#allocation21_spill] sm:$0xff] %v10554_v22  ;;  %12422 = vst [vmem:[#allocation22_spill] sm:$0xff] %v10559_v61 }
 0x20b   : > { %8707 = vmatmul.mubr.msk.bf16.vlgmr.msra.gmra.mrb[40].mxu0 %vm9451_vm6, %v12418_v44  ;;  %8710 = vmatmul.mubr.msk.bf16.vlgmr.msra.gmra.mrb[40].mxu1 %vm9451_vm6, %v12418_v44  ;;  %v10566_v44 = vld [vmem:[%s12264_s3 + $0x5a0] ss:$16 sps:$4 sm:$0xff]  }
 0x20c   : > { %8713 = vmatprep.mubr.msk.bf16.mxu0 %vm9519_vm7, %v12419_v6  ;;  %8716 = vmatprep.mubr.msk.bf16.mxu1 %vm9519_vm7, %v12419_v6  ;;  %12423 = vst [vmem:[#allocation23_spill] sm:$0xff] %v10566_v44  ;;  %v10571_v6 = vld [vmem:[%s12264_s3 + $0x5a8] ss:$16 sps:$4 sm:$0xff]  }
 0x20d   : > { %3124 = vmatpush1.bf16.msra.mxu0 %v10234_v24  ;;  %3177 = vmatpush1.bf16.msra.mxu1 %v10240_v25  ;;  %12424 = vst [vmem:[#allocation24_spill] sm:$0xff] %v10571_v6 }
 0x20e   : > { %3125 = vmatprep.subr.bf16.mxu0 %v10246_v40  ;;  %3178 = vmatprep.subr.bf16.mxu1 %v10251_v42 }
 0x211   : > { %3126 = vmatpush1.bf16.msra.mxu0 %v10270_v52  ;;  %3179 = vmatpush1.bf16.msra.mxu1 %v10275_v14 }
 0x212   : > { %3127 = vmatprep.subr.bf16.mxu0 %v10282_v56  ;;  %3180 = vmatprep.subr.bf16.mxu1 %v10287_v17 }
 0x213   : > { %8719 = vmatmul.mubr.msk.bf16.gmra.mrb[44].mxu0 %vm9519_vm7, %v12420_v43  ;;  %8722 = vmatmul.mubr.msk.bf16.gmra.mrb[44].mxu1 %vm9519_vm7, %v12420_v43  ;;  %v10578_v43 = vld [vmem:[%s12264_s3 + $0x5c4] ss:$16 sps:$4 sm:$0xff]  }
 0x214   : > { %3155 = vmatprep.mubr.bf16.mxu0 %v9954_v57  ;;  %3208 = vmatprep.mubr.bf16.mxu1 %v9954_v57  ;;  %v10362_v57 = vld [vmem:[%s12264_s3 + $0x4a4] ss:$16 sps:$4 sm:$0xff]   ;;  %12425 = vst [vmem:[#allocation25_spill] sm:$0xff] %v10578_v43 }
 0x215   : > { %3128 = vmatpush1.bf16.msra.mxu0 %v10294_v26  ;;  %3181 = vmatpush1.bf16.msra.mxu1 %v10299_v59 }
 0x216   : > { %3129 = vmatprep.subr.bf16.mxu0 %v10306_v58  ;;  %3182 = vmatprep.subr.bf16.mxu1 %v10311_v8 }
 0x219   : > { %3130 = vmatpush1.bf16.msra.mxu0 %v10326_v4  ;;  %3183 = vmatpush1.bf16.msra.mxu1 %v10331_v46 }
 0x21a   : > { %3131 = vmatprep.subr.bf16.mxu0 %v10338_v21  ;;  %3184 = vmatprep.subr.bf16.mxu1 %v10343_v7 }
 0x21d   : > { %3132 = vmatpush1.bf16.msra.mxu0 %v10350_v10  ;;  %3185 = vmatpush1.bf16.msra.mxu1 %v10355_v19 }
 0x21e   : > { %3133 = vmatprep.subr.bf16.mxu0 %v10362_v57  ;;  %3186 = vmatprep.subr.bf16.mxu1 %v10367_v39 }
 0x221   : > { %3134 = vmatpush1.bf16.msra.mxu0 %v10374_v13  ;;  %3187 = vmatpush1.bf16.msra.mxu1 %v10379_v28 }
 0x222   : > { %3135 = vmatprep.subr.bf16.mxu0 %v10386_v27  ;;  %3188 = vmatprep.subr.bf16.mxu1 %v10391_v30 }
 0x225   : > { %3136 = vmatpush1.bf16.msra.mxu0 %v10398_v0  ;;  %3189 = vmatpush1.bf16.msra.mxu1 %v10403_v45 }
 0x226   : > { %3137 = vmatprep.subr.bf16.mxu0 %v10410_v47  ;;  %3190 = vmatprep.subr.bf16.mxu1 %v10415_v50 }
 0x229   : > { %3138 = vmatpush1.bf16.msra.mxu0 %v10422_v29  ;;  %3191 = vmatpush1.bf16.msra.mxu1 %v10427_v36 }
 0x22a   : > { %3139 = vmatprep.subr.bf16.mxu0 %v10434_v33  ;;  %3192 = vmatprep.subr.bf16.mxu1 %v10439_v2 }
 0x22d   : > { %3140 = vmatpush1.bf16.msra.mxu0 %v10446_v3  ;;  %3193 = vmatpush1.bf16.msra.mxu1 %v10451_v5 }
 0x22e   : > { %3141 = vmatprep.subr.bf16.mxu0 %v10458_v31  ;;  %3194 = vmatprep.subr.bf16.mxu1 %v10463_v23 }
 0x231   : > { %3142 = vmatpush1.bf16.msra.mxu0 %v10470_v41  ;;  %3195 = vmatpush1.bf16.msra.mxu1 %v10475_v35 }
 0x232   : > { %3143 = vmatprep.subr.bf16.mxu0 %v10482_v1  ;;  %3196 = vmatprep.subr.bf16.mxu1 %v10487_v55 }
 0x235   : > { %3144 = vmatpush1.bf16.msra.mxu0 %v10494_v12  ;;  %3197 = vmatpush1.bf16.msra.mxu1 %v10499_v11 }
 0x236   : > { %3145 = vmatprep.subr.bf16.mxu0 %v10506_v9  ;;  %3198 = vmatprep.subr.bf16.mxu1 %v10511_v48 }
 0x239   : > { %3146 = vmatpush1.bf16.msra.mxu0 %v10518_v15  ;;  %3199 = vmatpush1.bf16.msra.mxu1 %v10523_v37 }
 0x23a   : > { %3147 = vmatprep.subr.bf16.mxu0 %v10530_v16  ;;  %3200 = vmatprep.subr.bf16.mxu1 %v10535_v49 }
 0x23d   : > { %3148 = vmatpush1.bf16.msra.mxu0 %v10542_v18  ;;  %3201 = vmatpush1.bf16.msra.mxu1 %v10547_v20 }
 0x23e   : > { %3149 = vmatprep.subr.bf16.mxu0 %v10554_v22  ;;  %3202 = vmatprep.subr.bf16.mxu1 %v10559_v61  ;;  %v12431_v61 = vld [vmem:[#allocation12_spill] sm:$0xff] }
 0x23f   : > { %v12432_v22 = vld [vmem:[#allocation16_spill] sm:$0xff] }
 0x241   : > { %3150 = vmatpush1.bf16.msra.mxu0 %v10566_v44  ;;  %3203 = vmatpush1.bf16.msra.mxu1 %v10571_v6  ;;  %v10607_v6 = vld [vmem:[%s12264_s3 + $0x5ec] ss:$16 sps:$4 sm:$0xff]  }
 0x242   : > { %3151 = vmatprep.subr.bf16.mxu0 %v10578_v43  ;;  %3204 = vmatprep.subr.bf16.mxu1 %v10583_v34  ;;  %v10614_v43 = vld [vmem:[%s12264_s3 + $0x5e0] ss:$16 sps:$4 sm:$0xff]   ;;  %v10619_v34 = vld [vmem:[%s12264_s3 + $0x5e8] ss:$16 sps:$4 sm:$0xff]  }
 0x243   : > { %12430 = vst [vmem:[#allocation30_spill] sm:$0xff] %v10619_v34  ;;  %v10621_v44 = vld [vmem:[#allocation3] sm:$0xff] }
 0x245   : > { %3152 = vmatpush1.bf16.msra.mxu0 %v10590_v63  ;;  %3205 = vmatpush1.bf16.msra.mxu1 %v10595_v60  ;;  %v6923_v63 = vcombine.high %v10621_v44, %v12431_v61 }
 0x246   : > { %3153 = vmatprep.subr.bf16.mxu0 %v10602_v54  ;;  %3206 = vmatprep.subr.bf16.mxu1 %v10607_v6  ;;  %v3291_v54 = vshll.u32 %v12432_v22, 16 }
 0x247   : > { %v3286_v60 = vshll.u32 %v6923_v63, 16 }
 0x249   : > { %3154 = vmatpush1.bf16.msra.mxu0 %v10614_v43  ;;  %3207 = vmatpush1.bf16.msra.mxu1 %v10619_v34  ;;  %v3288_v34 = vrot.slane %v3286_v60, 1 }
 0x24a   : > { %3315 = vmatprep.subr.bf16.mxu0 %v10222_v32  ;;  %3368 = vmatprep.subr.bf16.mxu1 %v10227_v38  ;;  %v3284_v32 = vshrl.u32 %v6923_v63, 16  ;;  %v10640_v38 = vrot.slane %v3291_v54, 1  ;;  %v6922_v54 = vcombine.low %v10621_v44, %v12431_v61  ;;  %v12433_v63 = vld [vmem:[#allocation21_spill] sm:$0xff]  ;;  %v10877_v61 = vld [vmem:[%s12264_s3 + $0x6c4] ss:$16 sps:$4 sm:$0xff]  }
 0x24b   : > { %v10882_v44 = vld [vmem:[%s12264_s3 + $0x6cc] ss:$16 sps:$4 sm:$0xff]  }
 0x24c   : > { %3156 = vmatmul.mubr.bf16.vlgmr.msra.gmra.mrb[32].mxu0 %v10137_v51  ;;  %3209 = vmatmul.mubr.bf16.vlgmr.msra.gmra.mrb[32].mxu1 %v10137_v51  ;;  %v3289_v51 = vor.u32 %v3288_v34, %v3284_v32  ;;  %v12434_v34 = vld [vmem:[#allocation22_spill] sm:$0xff] }
 0x24d   : > { %3165 = vmatprep.mubr.bf16.mxu0 %v10143_v53  ;;  %3218 = vmatprep.mubr.bf16.mxu1 %v10143_v53  ;;  %v12435_v53 = vld [vmem:[#allocation23_spill] sm:$0xff]  ;;  %v10901_v32 = vld [vmem:[%s12264_s3 + $0x6e4] ss:$16 sps:$4 sm:$0xff]  }
 0x24e   : > { %3316 = vmatpush1.bf16.msra.mxu0 %v10234_v24  ;;  %3369 = vmatpush1.bf16.msra.mxu1 %v10240_v25  ;;  %v10650_v60 = vsel %vm2481_vm9, %v3289_v51, %v10640_v38  ;;  %v3274_v24 = vshll.u32 %v6922_v54, 16  ;;  %v12437_v25 = vld [vmem:[#allocation25_spill] sm:$0xff]  ;;  %v10913_v51 = vld [vmem:[%s12264_s3 + $0x6e0] ss:$16 sps:$4 sm:$0xff]  }
 0x24f   : > { %3317 = vmatprep.subr.bf16.mxu0 %v10246_v40  ;;  %3370 = vmatprep.subr.bf16.mxu1 %v10251_v42  ;;  %v12438_v40 = vld [vmem:[#allocation26_spill] sm:$0xff]  ;;  %v12439_v42 = vld [vmem:[#allocation15_spill] sm:$0xff] }
 0x252   : > { %3318 = vmatpush1.bf16.msra.mxu0 %v10270_v52  ;;  %3371 = vmatpush1.bf16.msra.mxu1 %v10275_v14  ;;  %v3279_v52 = vshll.u32 %v12439_v42, 16  ;;  %v12440_v14 = vld [vmem:[#allocation13_spill] sm:$0xff]  ;;  %v10973_v42 = vld [vmem:[%s12264_s3 + $0x744] ss:$16 sps:$4 sm:$0xff]  }
 0x253   : > { %3319 = vmatprep.subr.bf16.mxu0 %v10282_v56  ;;  %3372 = vmatprep.subr.bf16.mxu1 %v10287_v17  ;;  %v3307_v56 = vshll.u32 %v12440_v14, 16  ;;  %v12441_v17 = vld [vmem:[#allocation27_spill] sm:$0xff]  ;;  %v10985_v14 = vld [vmem:[%s12264_s3 + $0x740] ss:$16 sps:$4 sm:$0xff]  }
 0x254   : > { %3166 = vmatmul.mubr.bf16.gmra.mrb[36].mxu0 %v10155_v62  ;;  %3219 = vmatmul.mubr.bf16.gmra.mrb[36].mxu1 %v10155_v62  ;;  %v12436_v62 = vld [vmem:[#allocation24_spill] sm:$0xff] }
 0x255   : > { %3347 = vmatprep.mubr.bf16.mxu0 %v10650_v60  ;;  %3400 = vmatprep.mubr.bf16.mxu1 %v10650_v60 }
 0x256   : > { %3320 = vmatpush1.bf16.msra.mxu0 %v10294_v26  ;;  %3373 = vmatpush1.bf16.msra.mxu1 %v10299_v59  ;;  %v12442_v26 = vld [vmem:[#allocation28_spill] sm:$0xff]  ;;  %v3276_v59 = vrot.slane %v3274_v24, 1  ;;  %v10954_v24 = vld [vmem:[%s12264_s3 + $0x72c] ss:$16 sps:$4 sm:$0xff]  }
 0x257   : > { %3321 = vmatprep.subr.bf16.mxu0 %v10306_v58  ;;  %3374 = vmatprep.subr.bf16.mxu1 %v10311_v8  ;;  %v12443_v58 = vld [vmem:[#allocation29_spill] sm:$0xff]  ;;  %v10713_v8 = vld [vmem:[%s12264_s3 + $0x604] ss:$16 sps:$4 sm:$0xff]  }
 0x25a   : > { %3322 = vmatpush1.bf16.msra.mxu0 %v10326_v4  ;;  %3375 = vmatpush1.bf16.msra.mxu1 %v10331_v46  ;;  %v10718_v4 = vld [vmem:[%s12264_s3 + $0x60c] ss:$16 sps:$4 sm:$0xff]   ;;  %v3303_v46 = vshrl.u32 %v12432_v22, 16  ;;  %v10870_v22 = vld [vmem:[%s12264_s3 + $0x6a8] ss:$16 sps:$4 sm:$0xff]  }
 0x25b   : > { %3323 = vmatprep.subr.bf16.mxu0 %v10338_v21  ;;  %3376 = vmatprep.subr.bf16.mxu1 %v10343_v7  ;;  %v3272_v21 = vshrl.u32 %v6922_v54, 16  ;;  %v3281_v7 = vrot.slane %v3279_v52, 1  ;;  %v10925_v54 = vld [vmem:[%s12264_s3 + $0x704] ss:$16 sps:$4 sm:$0xff]   ;;  %v10978_v52 = vld [vmem:[%s12264_s3 + $0x74c] ss:$16 sps:$4 sm:$0xff]  }
 0x25e   : > { %3324 = vmatpush1.bf16.msra.mxu0 %v10350_v10  ;;  %3377 = vmatpush1.bf16.msra.mxu1 %v10355_v19  ;;  %v3305_v10 = vor.u32 %v3303_v46, %v10640_v38  ;;  %v3309_v19 = vrot.slane %v3307_v56, 1  ;;  %v10906_v38 = vld [vmem:[%s12264_s3 + $0x6ec] ss:$16 sps:$4 sm:$0xff]   ;;  %v10990_v56 = vld [vmem:[%s12264_s3 + $0x748] ss:$16 sps:$4 sm:$0xff]  }
 0x25f   : > { %3325 = vmatprep.subr.bf16.mxu0 %v10362_v57  ;;  %3378 = vmatprep.subr.bf16.mxu1 %v10367_v39  ;;  %v12444_v57 = vld [vmem:[#allocation30_spill] sm:$0xff]  ;;  %v3277_v39 = vor.u32 %v3276_v59, %v3272_v21  ;;  %v11026_v21 = vld [vmem:[%s12264_s3 + $0x78c] ss:$16 sps:$4 sm:$0xff]  }
 0x260   : > { %v11009_v59 = vld [vmem:[%s12264_s3 + $0x760] ss:$16 sps:$4 sm:$0xff]   ;;  %v11021_v46 = vld [vmem:[%s12264_s3 + $0x784] ss:$16 sps:$4 sm:$0xff]  }
 0x262   : > { %3326 = vmatpush1.bf16.msra.mxu0 %v10374_v13  ;;  %3379 = vmatpush1.bf16.msra.mxu1 %v10379_v28  ;;  %v10727_v13 = vld [vmem:[%s12264_s3 + $0x600] ss:$16 sps:$4 sm:$0xff]   ;;  %v10733_v28 = vld [vmem:[%s12264_s3 + $0x608] ss:$16 sps:$4 sm:$0xff]  }
 0x263   : > { %3327 = vmatprep.subr.bf16.mxu0 %v10386_v27  ;;  %3380 = vmatprep.subr.bf16.mxu1 %v10391_v30  ;;  %v10737_v27 = vsel %vm2481_vm9, %v3277_v39, %v3281_v7  ;;  %v10742_v30 = vld [vmem:[%s12264_s3 + $0x624] ss:$16 sps:$4 sm:$0xff]   ;;  %v11057_v39 = vld [vmem:[%s12264_s3 + $0x7a0] ss:$16 sps:$4 sm:$0xff]  }
 0x266   : > { %3328 = vmatpush1.bf16.msra.mxu0 %v10398_v0  ;;  %3381 = vmatpush1.bf16.msra.mxu1 %v10403_v45  ;;  %v10747_v0 = vld [vmem:[%s12264_s3 + $0x62c] ss:$16 sps:$4 sm:$0xff]   ;;  %v12445_v45 = vld [vmem:[#allocation14_spill] sm:$0xff] }
 0x267   : > { %3329 = vmatprep.subr.bf16.mxu0 %v10410_v47  ;;  %3382 = vmatprep.subr.bf16.mxu1 %v10415_v50  ;;  %v3299_v47 = vshll.u32 %v12445_v45, 16  ;;  %v10753_v50 = vsel %vm2481_vm9, %v3305_v10, %v3309_v19  ;;  %v11038_v10 = vld [vmem:[%s12264_s3 + $0x788] ss:$16 sps:$4 sm:$0xff]   ;;  %v11045_v19 = vld [vmem:[%s12264_s3 + $0x7a4] ss:$16 sps:$4 sm:$0xff]  }
 0x268   : > { %v11062_v45 = vld [vmem:[%s12264_s3 + $0x7a8] ss:$16 sps:$4 sm:$0xff]  }
 0x269   : > { %12446 = vst [vmem:[#allocation31_spill] sm:$0xff] %v11062_v45 }
 0x26a   : > { %3330 = vmatpush1.bf16.msra.mxu0 %v10422_v29  ;;  %3383 = vmatpush1.bf16.msra.mxu1 %v10427_v36  ;;  %v8641_v29 = vld [vmem:[#allocation3 + $0x10] ss:$8 sps:$4 sm:$0xff]  }
 0x26b   : > { %3331 = vmatprep.subr.bf16.mxu0 %v10434_v33  ;;  %3384 = vmatprep.subr.bf16.mxu1 %v10439_v2  ;;  %v3295_v36 = vshrl.u32 %v8641_v29, 16  ;;  %v10762_v33 = vld [vmem:[%s12264_s3 + $0x620] ss:$16 sps:$4 sm:$0xff]   ;;  %v10767_v2 = vld [vmem:[%s12264_s3 + $0x628] ss:$16 sps:$4 sm:$0xff]  }
 0x26c   : > { %v11074_v29 = vld [vmem:[%s12264_s3 + $0x7cc] ss:$16 sps:$4 sm:$0xff]  }
 0x26d   : > { %12448 = vst [vmem:[#allocation33_spill] sm:$0xff] %v11074_v29 }
 0x26e   : > { %3332 = vmatpush1.bf16.msra.mxu0 %v10446_v3  ;;  %3385 = vmatpush1.bf16.msra.mxu1 %v10451_v5  ;;  %v3297_v3 = vor.u32 %v3295_v36, %v3281_v7  ;;  %v3301_v5 = vrot.slane %v3299_v47, 1  ;;  %v11033_v7 = vld [vmem:[%s12264_s3 + $0x780] ss:$16 sps:$4 sm:$0xff]   ;;  %v11069_v47 = vld [vmem:[%s12264_s3 + $0x7c4] ss:$16 sps:$4 sm:$0xff]  }
 0x26f   : > { %3333 = vmatprep.subr.bf16.mxu0 %v10458_v31  ;;  %3386 = vmatprep.subr.bf16.mxu1 %v10463_v23  ;;  %v10774_v31 = vld [vmem:[%s12264_s3 + $0x644] ss:$16 sps:$4 sm:$0xff]   ;;  %v10779_v23 = vld [vmem:[%s12264_s3 + $0x64c] ss:$16 sps:$4 sm:$0xff]   ;;  %12447 = vst [vmem:[#allocation32_spill] sm:$0xff] %v11069_v47 }
 0x270   : > { %v11081_v36 = vld [vmem:[%s12264_s3 + $0x7c0] ss:$16 sps:$4 sm:$0xff]  }
 0x271   : > { %12449 = vst [vmem:[#allocation34_spill] sm:$0xff] %v11081_v36 }
 0x272   : > { %3334 = vmatpush1.bf16.msra.mxu0 %v10470_v41  ;;  %3387 = vmatpush1.bf16.msra.mxu1 %v10475_v35  ;;  %v10786_v41 = vld [vmem:[%s12264_s3 + $0x640] ss:$16 sps:$4 sm:$0xff]   ;;  %v10791_v35 = vld [vmem:[%s12264_s3 + $0x648] ss:$16 sps:$4 sm:$0xff]  }
 0x273   : > { %3335 = vmatprep.subr.bf16.mxu0 %v10482_v1  ;;  %3388 = vmatprep.subr.bf16.mxu1 %v10487_v55  ;;  %v10794_v1 = vsel %vm2481_vm9, %v3297_v3, %v3301_v5  ;;  %v10801_v55 = vld [vmem:[%s12264_s3 + $0x664] ss:$16 sps:$4 sm:$0xff]   ;;  %v11086_v3 = vld [vmem:[%s12264_s3 + $0x7c8] ss:$16 sps:$4 sm:$0xff]  }
 0x274   : > { %12450 = vst [vmem:[#allocation35_spill] sm:$0xff] %v11086_v3  ;;  %v11093_v5 = vld [vmem:[%s12264_s3 + $0x7e4] ss:$16 sps:$4 sm:$0xff]  }
 0x275   : > { %12451 = vst [vmem:[#allocation36_spill] sm:$0xff] %v11093_v5 }
 0x276   : > { %3336 = vmatpush1.bf16.msra.mxu0 %v10494_v12  ;;  %3389 = vmatpush1.bf16.msra.mxu1 %v10499_v11  ;;  %v10806_v12 = vld [vmem:[%s12264_s3 + $0x66c] ss:$16 sps:$4 sm:$0xff]   ;;  %v10817_v11 = vld [vmem:[%s12264_s3 + $0x660] ss:$16 sps:$4 sm:$0xff]  }
 0x277   : > { %3337 = vmatprep.subr.bf16.mxu0 %v10506_v9  ;;  %3390 = vmatprep.subr.bf16.mxu1 %v10511_v48  ;;  %v10822_v9 = vld [vmem:[%s12264_s3 + $0x668] ss:$16 sps:$4 sm:$0xff]   ;;  %v10829_v48 = vld [vmem:[%s12264_s3 + $0x684] ss:$16 sps:$4 sm:$0xff]  }
 0x27a   : > { %3338 = vmatpush1.bf16.msra.mxu0 %v10518_v15  ;;  %3391 = vmatpush1.bf16.msra.mxu1 %v10523_v37  ;;  %v10834_v15 = vld [vmem:[%s12264_s3 + $0x68c] ss:$16 sps:$4 sm:$0xff]   ;;  %v10841_v37 = vld [vmem:[%s12264_s3 + $0x680] ss:$16 sps:$4 sm:$0xff]  }
 0x27b   : > { %3339 = vmatprep.subr.bf16.mxu0 %v10530_v16  ;;  %3392 = vmatprep.subr.bf16.mxu1 %v10535_v49  ;;  %v10846_v16 = vld [vmem:[%s12264_s3 + $0x688] ss:$16 sps:$4 sm:$0xff]   ;;  %v10853_v49 = vld [vmem:[%s12264_s3 + $0x6a4] ss:$16 sps:$4 sm:$0xff]  }
 0x27e   : > { %3340 = vmatpush1.bf16.msra.mxu0 %v10542_v18  ;;  %3393 = vmatpush1.bf16.msra.mxu1 %v10547_v20  ;;  %v10858_v18 = vld [vmem:[%s12264_s3 + $0x6ac] ss:$16 sps:$4 sm:$0xff]   ;;  %v10865_v20 = vld [vmem:[%s12264_s3 + $0x6a0] ss:$16 sps:$4 sm:$0xff]  }
 0x27f   : > { %3341 = vmatprep.subr.bf16.mxu0 %v12433_v63  ;;  %3394 = vmatprep.subr.bf16.mxu1 %v12434_v34  ;;  %v10930_v63 = vld [vmem:[%s12264_s3 + $0x70c] ss:$16 sps:$4 sm:$0xff]   ;;  %v10937_v34 = vld [vmem:[%s12264_s3 + $0x700] ss:$16 sps:$4 sm:$0xff]  }
 0x282   : > { %3342 = vmatpush1.bf16.msra.mxu0 %v12435_v53  ;;  %3395 = vmatpush1.bf16.msra.mxu1 %v12436_v62  ;;  %v10942_v53 = vld [vmem:[%s12264_s3 + $0x708] ss:$16 sps:$4 sm:$0xff]   ;;  %v10949_v62 = vld [vmem:[%s12264_s3 + $0x724] ss:$16 sps:$4 sm:$0xff]  }
 0x283   : > { %3343 = vmatprep.subr.bf16.mxu0 %v12437_v25  ;;  %3396 = vmatprep.subr.bf16.mxu1 %v12438_v40  ;;  %v10961_v25 = vld [vmem:[%s12264_s3 + $0x720] ss:$16 sps:$4 sm:$0xff]   ;;  %v10966_v40 = vld [vmem:[%s12264_s3 + $0x728] ss:$16 sps:$4 sm:$0xff]  }
 0x286   : > { %3344 = vmatpush1.bf16.msra.mxu0 %v12441_v17  ;;  %3397 = vmatpush1.bf16.msra.mxu1 %v12442_v26  ;;  %v10997_v17 = vld [vmem:[%s12264_s3 + $0x764] ss:$16 sps:$4 sm:$0xff]   ;;  %v11002_v26 = vld [vmem:[%s12264_s3 + $0x76c] ss:$16 sps:$4 sm:$0xff]  }
 0x287   : > { %3345 = vmatprep.subr.bf16.mxu0 %v12443_v58  ;;  %3398 = vmatprep.subr.bf16.mxu1 %v10607_v6  ;;  %v10889_v6 = vld [vmem:[%s12264_s3 + $0x6c0] ss:$16 sps:$4 sm:$0xff]   ;;  %v11014_v58 = vld [vmem:[%s12264_s3 + $0x768] ss:$16 sps:$4 sm:$0xff]  }
 0x28a   : > { %3346 = vmatpush1.bf16.msra.mxu0 %v10614_v43  ;;  %3399 = vmatpush1.bf16.msra.mxu1 %v12444_v57  ;;  %v10894_v43 = vld [vmem:[%s12264_s3 + $0x6c8] ss:$16 sps:$4 sm:$0xff]   ;;  %v11050_v57 = vld [vmem:[%s12264_s3 + $0x7ac] ss:$16 sps:$4 sm:$0xff]  }
 0x28b   : > { %3822 = vmatprep.subr.bf16.mxu0 %v10713_v8  ;;  %3875 = vmatprep.subr.bf16.mxu1 %v10718_v4 }
 0x28d   : > { %3348 = vmatmul.mubr.bf16.vlgmr.msra.gmra.mrb[40].mxu0 %v10737_v27  ;;  %3401 = vmatmul.mubr.bf16.vlgmr.msra.gmra.mrb[40].mxu1 %v10737_v27 }
 0x28e   : > { %3357 = vmatprep.mubr.bf16.mxu0 %v10753_v50  ;;  %3410 = vmatprep.mubr.bf16.mxu1 %v10753_v50 }
 0x28f   : > { %3823 = vmatpush1.bf16.msra.mxu0 %v10727_v13  ;;  %3876 = vmatpush1.bf16.msra.mxu1 %v10733_v28 }
 0x290   : > { %3824 = vmatprep.subr.bf16.mxu0 %v10742_v30  ;;  %3877 = vmatprep.subr.bf16.mxu1 %v10747_v0 }
 0x293   : > { %3825 = vmatpush1.bf16.msra.mxu0 %v10762_v33  ;;  %3878 = vmatpush1.bf16.msra.mxu1 %v10767_v2 }
 0x294   : > { %3826 = vmatprep.subr.bf16.mxu0 %v10774_v31  ;;  %3879 = vmatprep.subr.bf16.mxu1 %v10779_v23 }
 0x295   : > { %3358 = vmatmul.mubr.bf16.gmra.mrb[44].mxu0 %v10794_v1  ;;  %3411 = vmatmul.mubr.bf16.gmra.mrb[44].mxu1 %v10794_v1 }
 0x296   : > { %3854 = vmatprep.mubr.bf16.mxu0 %v10650_v60  ;;  %3907 = vmatprep.mubr.bf16.mxu1 %v10650_v60  ;;  %v10918_v60 = vld [vmem:[%s12264_s3 + $0x6e8] ss:$16 sps:$4 sm:$0xff]  }
 0x297   : > { %3827 = vmatpush1.bf16.msra.mxu0 %v10786_v41  ;;  %3880 = vmatpush1.bf16.msra.mxu1 %v10791_v35 }
 0x298   : > { %3828 = vmatprep.subr.bf16.mxu0 %v10801_v55  ;;  %3881 = vmatprep.subr.bf16.mxu1 %v10806_v12 }
 0x29b   : > { %3829 = vmatpush1.bf16.msra.mxu0 %v10817_v11  ;;  %3882 = vmatpush1.bf16.msra.mxu1 %v10822_v9 }
 0x29c   : > { %3830 = vmatprep.subr.bf16.mxu0 %v10829_v48  ;;  %3883 = vmatprep.subr.bf16.mxu1 %v10834_v15 }
 0x29f   : > { %3831 = vmatpush1.bf16.msra.mxu0 %v10841_v37  ;;  %3884 = vmatpush1.bf16.msra.mxu1 %v10846_v16 }
 0x2a0   : > { %3832 = vmatprep.subr.bf16.mxu0 %v10853_v49  ;;  %3885 = vmatprep.subr.bf16.mxu1 %v10858_v18 }
 0x2a3   : > { %3833 = vmatpush1.bf16.msra.mxu0 %v10865_v20  ;;  %3886 = vmatpush1.bf16.msra.mxu1 %v10870_v22 }
 0x2a4   : > { %3834 = vmatprep.subr.bf16.mxu0 %v10877_v61  ;;  %3887 = vmatprep.subr.bf16.mxu1 %v10882_v44 }
 0x2a7   : > { %3835 = vmatpush1.bf16.msra.mxu0 %v10889_v6  ;;  %3888 = vmatpush1.bf16.msra.mxu1 %v10894_v43 }
 0x2a8   : > { %3836 = vmatprep.subr.bf16.mxu0 %v10901_v32  ;;  %3889 = vmatprep.subr.bf16.mxu1 %v10906_v38 }
 0x2ab   : > { %3837 = vmatpush1.bf16.msra.mxu0 %v10913_v51  ;;  %3890 = vmatpush1.bf16.msra.mxu1 %v10918_v60 }
 0x2ac   : > { %3838 = vmatprep.subr.bf16.mxu0 %v10925_v54  ;;  %3891 = vmatprep.subr.bf16.mxu1 %v10930_v63 }
 0x2af   : > { %3839 = vmatpush1.bf16.msra.mxu0 %v10937_v34  ;;  %3892 = vmatpush1.bf16.msra.mxu1 %v10942_v53 }
 0x2b0   : > { %3840 = vmatprep.subr.bf16.mxu0 %v10949_v62  ;;  %3893 = vmatprep.subr.bf16.mxu1 %v10954_v24 }
 0x2b3   : > { %3841 = vmatpush1.bf16.msra.mxu0 %v10961_v25  ;;  %3894 = vmatpush1.bf16.msra.mxu1 %v10966_v40 }
 0x2b4   : > { %3842 = vmatprep.subr.bf16.mxu0 %v10973_v42  ;;  %3895 = vmatprep.subr.bf16.mxu1 %v10978_v52 }
 0x2b7   : > { %3843 = vmatpush1.bf16.msra.mxu0 %v10985_v14  ;;  %3896 = vmatpush1.bf16.msra.mxu1 %v10990_v56 }
 0x2b8   : > { %3844 = vmatprep.subr.bf16.mxu0 %v10997_v17  ;;  %3897 = vmatprep.subr.bf16.mxu1 %v11002_v26 }
 0x2bb   : > { %3845 = vmatpush1.bf16.msra.mxu0 %v11009_v59  ;;  %3898 = vmatpush1.bf16.msra.mxu1 %v11014_v58 }
 0x2bc   : > { %3846 = vmatprep.subr.bf16.mxu0 %v11021_v46  ;;  %3899 = vmatprep.subr.bf16.mxu1 %v11026_v21 }
 0x2bf   : > { %3847 = vmatpush1.bf16.msra.mxu0 %v11033_v7  ;;  %3900 = vmatpush1.bf16.msra.mxu1 %v11038_v10 }
 0x2c0   : > { %3848 = vmatprep.subr.bf16.mxu0 %v11045_v19  ;;  %3901 = vmatprep.subr.bf16.mxu1 %v11050_v57 }
 0x2c3   : > { %3849 = vmatpush1.bf16.msra.mxu0 %v11057_v39  ;;  %3902 = vmatpush1.bf16.msra.mxu1 %v11062_v45  ;;  %v11098_v45 = vld [vmem:[%s12264_s3 + $0x7ec] ss:$16 sps:$4 sm:$0xff]  }
 0x2c4   : > { %3850 = vmatprep.subr.bf16.mxu0 %v11069_v47  ;;  %3903 = vmatprep.subr.bf16.mxu1 %v11074_v29  ;;  %v11105_v47 = vld [vmem:[%s12264_s3 + $0x7e0] ss:$16 sps:$4 sm:$0xff]   ;;  %v11110_v29 = vld [vmem:[%s12264_s3 + $0x7e8] ss:$16 sps:$4 sm:$0xff]  }
 0x2c7   : > { %3851 = vmatpush1.bf16.msra.mxu0 %v11081_v36  ;;  %3904 = vmatpush1.bf16.msra.mxu1 %v11086_v3  ;;  %v11118_v3 = vld [vmem:[#allocation2] sm:$0xee]  ;;  %v11122_v36 = vld [vmem:[#allocation2 + $0x8] sm:$0xff] }
 0x2c8   : > { %3852 = vmatprep.subr.bf16.mxu0 %v11093_v5  ;;  %3905 = vmatprep.subr.bf16.mxu1 %v11098_v45  ;;  %v7057_v5 = vcombine.high %v11118_v3, %v11122_v36 }
 0x2cb   : > { %3853 = vmatpush1.bf16.msra.mxu0 %v11105_v47  ;;  %3906 = vmatpush1.bf16.msra.mxu1 %v11110_v29 }
 0x2cc   : > { %3965 = vmatprep.subr.bf16.mxu0 %v10713_v8  ;;  %4018 = vmatprep.subr.bf16.mxu1 %v10718_v4  ;;  %v3954_v8 = vrot.slane %v7057_v5, 1  ;;  %v12452_v4 = vld [vmem:[#allocation7_spill] sm:$0xff]  ;;  %v11477_v5 = vld [vmem:[%s12264_s3 + $0x940] ss:$16 sps:$4 sm:$0xff]  }
 0x2ce   : > { %3855 = vmatmul.mubr.bf16.vlgmr.msra.gmra.mrb[32].mxu0 %v10737_v27  ;;  %3908 = vmatmul.mubr.bf16.vlgmr.msra.gmra.mrb[32].mxu1 %v10737_v27  ;;  %v3955_v27 = vrot.slane %v12452_v4, 1  ;;  %v11489_v4 = vld [vmem:[%s12264_s3 + $0x964] ss:$16 sps:$4 sm:$0xff]  }
 0x2cf   : > { %3864 = vmatprep.mubr.bf16.mxu0 %v10753_v50  ;;  %3917 = vmatprep.mubr.bf16.mxu1 %v10753_v50  ;;  %v7056_v50 = vcombine.low %v11118_v3, %v11122_v36  ;;  %v11465_v36 = vld [vmem:[%s12264_s3 + $0x944] ss:$16 sps:$4 sm:$0xff]   ;;  %v11470_v3 = vld [vmem:[%s12264_s3 + $0x94c] ss:$16 sps:$4 sm:$0xff]  }
 0x2d0   : > { %3966 = vmatpush1.bf16.msra.mxu0 %v10727_v13  ;;  %4019 = vmatpush1.bf16.msra.mxu1 %v10733_v28  ;;  %v11142_v13 = vsel %vm3950_vm8, %v3954_v8, %v3955_v27  ;;  %v12453_v28 = vld [vmem:[#allocation31_spill] sm:$0xff] }
 0x2d1   : > { %3967 = vmatprep.subr.bf16.mxu0 %v10742_v30  ;;  %4020 = vmatprep.subr.bf16.mxu1 %v10747_v0  ;;  %v12454_v30 = vld [vmem:[#allocation32_spill] sm:$0xff]  ;;  %v12455_v0 = vld [vmem:[#allocation33_spill] sm:$0xff] }
 0x2d2   : > { %v11482_v8 = vld [vmem:[%s12264_s3 + $0x948] ss:$16 sps:$4 sm:$0xff]  }
 0x2d4   : > { %3968 = vmatpush1.bf16.msra.mxu0 %v10762_v33  ;;  %4021 = vmatpush1.bf16.msra.mxu1 %v10767_v2  ;;  %v12456_v33 = vld [vmem:[#allocation34_spill] sm:$0xff]  ;;  %v12457_v2 = vld [vmem:[#allocation35_spill] sm:$0xff] }
 0x2d5   : > { %3969 = vmatprep.subr.bf16.mxu0 %v10774_v31  ;;  %4022 = vmatprep.subr.bf16.mxu1 %v10779_v23  ;;  %v12458_v31 = vld [vmem:[#allocation36_spill] sm:$0xff] }
 0x2d6   : > { %3865 = vmatmul.mubr.bf16.gmra.mrb[36].mxu0 %v10794_v1  ;;  %3918 = vmatmul.mubr.bf16.gmra.mrb[36].mxu1 %v10794_v1  ;;  %v11203_v23 = vld [vmem:[%s12264_s3 + $0x804] ss:$16 sps:$4 sm:$0xff]  }
 0x2d7   : > { %3997 = vmatprep.mubr.bf16.mxu0 %v11142_v13  ;;  %4050 = vmatprep.mubr.bf16.mxu1 %v11142_v13  ;;  %v12459_v1 = vld [vmem:[#allocation8_spill] sm:$0xff] }
 0x2d8   : > { %3970 = vmatpush1.bf16.msra.mxu0 %v10786_v41  ;;  %4023 = vmatpush1.bf16.msra.mxu1 %v10791_v35  ;;  %v11208_v41 = vld [vmem:[%s12264_s3 + $0x80c] ss:$16 sps:$4 sm:$0xff]   ;;  %v3951_v35 = vrot.slane %v7056_v50, 1  ;;  %v11525_v50 = vld [vmem:[%s12264_s3 + $0x980] ss:$16 sps:$4 sm:$0xff]  }
 0x2d9   : > { %3971 = vmatprep.subr.bf16.mxu0 %v10801_v55  ;;  %4024 = vmatprep.subr.bf16.mxu1 %v10806_v12  ;;  %v3952_v55 = vrot.slane %v12459_v1, 1  ;;  %v12460_v12 = vld [vmem:[#allocation42_spill] sm:$0xff]  ;;  %v11554_v1 = vld [vmem:[%s12264_s3 + $0x9a8] ss:$16 sps:$4 sm:$0xff]  }
 0x2da   : > { %12462 = vst [vmem:[#allocation37_spill] sm:$0xff] %v11554_v1 }
 0x2dc   : > { %3972 = vmatpush1.bf16.msra.mxu0 %v10817_v11  ;;  %4025 = vmatpush1.bf16.msra.mxu1 %v10822_v9  ;;  %v3959_v11 = vrot.slane %v12460_v12, 1  ;;  %v11217_v9 = vld [vmem:[%s12264_s3 + $0x800] ss:$16 sps:$4 sm:$0xff]   ;;  %v11566_v12 = vld [vmem:[%s12264_s3 + $0x9cc] ss:$16 sps:$4 sm:$0xff]  }
 0x2dd   : > { %3973 = vmatprep.subr.bf16.mxu0 %v10829_v48  ;;  %4026 = vmatprep.subr.bf16.mxu1 %v10834_v15  ;;  %v11223_v48 = vld [vmem:[%s12264_s3 + $0x808] ss:$16 sps:$4 sm:$0xff]   ;;  %v11227_v15 = vsel %vm3950_vm8, %v3951_v35, %v3952_v55  ;;  %v11549_v35 = vld [vmem:[%s12264_s3 + $0x9a0] ss:$16 sps:$4 sm:$0xff]   ;;  %12464 = vst [vmem:[#allocation39_spill] sm:$0xff] %v11566_v12 }
 0x2e0   : > { %3974 = vmatpush1.bf16.msra.mxu0 %v10841_v37  ;;  %4027 = vmatpush1.bf16.msra.mxu1 %v10846_v16  ;;  %v11232_v37 = vld [vmem:[%s12264_s3 + $0x824] ss:$16 sps:$4 sm:$0xff]   ;;  %v11237_v16 = vld [vmem:[%s12264_s3 + $0x82c] ss:$16 sps:$4 sm:$0xff]  }
 0x2e1   : > { %3975 = vmatprep.subr.bf16.mxu0 %v10853_v49  ;;  %4028 = vmatprep.subr.bf16.mxu1 %v10858_v18  ;;  %v11244_v49 = vsel %vm3950_vm8, %v3955_v27, %v3959_v11  ;;  %v11253_v18 = vld [vmem:[%s12264_s3 + $0x820] ss:$16 sps:$4 sm:$0xff]   ;;  %v11494_v27 = vld [vmem:[%s12264_s3 + $0x96c] ss:$16 sps:$4 sm:$0xff]  }
 0x2e2   : > { %v11573_v11 = vld [vmem:[%s12264_s3 + $0x9c0] ss:$16 sps:$4 sm:$0xff]  }
 0x2e4   : > { %3976 = vmatpush1.bf16.msra.mxu0 %v10865_v20  ;;  %4029 = vmatpush1.bf16.msra.mxu1 %v10870_v22  ;;  %v11258_v20 = vld [vmem:[%s12264_s3 + $0x828] ss:$16 sps:$4 sm:$0xff]  }
 0x2e5   : > { %3977 = vmatprep.subr.bf16.mxu0 %v10877_v61  ;;  %4030 = vmatprep.subr.bf16.mxu1 %v10882_v44  ;;  %v12461_v22 = vld [vmem:[#allocation43_spill] sm:$0xff]  ;;  %v11266_v44 = vld [vmem:[%s12264_s3 + $0x844] ss:$16 sps:$4 sm:$0xff]  }
 0x2e6   : > { %v3957_v61 = vrot.slane %v12461_v22, 1  ;;  %v11578_v22 = vld [vmem:[%s12264_s3 + $0x9c8] ss:$16 sps:$4 sm:$0xff]  }
 0x2e8   : > { %3978 = vmatpush1.bf16.msra.mxu0 %v10889_v6  ;;  %4031 = vmatpush1.bf16.msra.mxu1 %v10894_v43  ;;  %v11271_v6 = vld [vmem:[%s12264_s3 + $0x84c] ss:$16 sps:$4 sm:$0xff]   ;;  %v11278_v43 = vld [vmem:[%s12264_s3 + $0x840] ss:$16 sps:$4 sm:$0xff]  }
 0x2e9   : > { %3979 = vmatprep.subr.bf16.mxu0 %v10901_v32  ;;  %4032 = vmatprep.subr.bf16.mxu1 %v10906_v38  ;;  %v11283_v32 = vld [vmem:[%s12264_s3 + $0x848] ss:$16 sps:$4 sm:$0xff]   ;;  %v11286_v38 = vsel %vm3950_vm8, %v3952_v55, %v3957_v61  ;;  %v11561_v55 = vld [vmem:[%s12264_s3 + $0x9c4] ss:$16 sps:$4 sm:$0xff]  }
 0x2ea   : > { %12463 = vst [vmem:[#allocation38_spill] sm:$0xff] %v11561_v55  ;;  %v11585_v61 = vld [vmem:[%s12264_s3 + $0x9e4] ss:$16 sps:$4 sm:$0xff]  }
 0x2ec   : > { %3980 = vmatpush1.bf16.msra.mxu0 %v10913_v51  ;;  %4033 = vmatpush1.bf16.msra.mxu1 %v10918_v60  ;;  %v11293_v51 = vld [vmem:[%s12264_s3 + $0x864] ss:$16 sps:$4 sm:$0xff]   ;;  %v11298_v60 = vld [vmem:[%s12264_s3 + $0x86c] ss:$16 sps:$4 sm:$0xff]  }
 0x2ed   : > { %3981 = vmatprep.subr.bf16.mxu0 %v10925_v54  ;;  %4034 = vmatprep.subr.bf16.mxu1 %v10930_v63  ;;  %v11309_v54 = vld [vmem:[%s12264_s3 + $0x860] ss:$16 sps:$4 sm:$0xff]   ;;  %v11314_v63 = vld [vmem:[%s12264_s3 + $0x868] ss:$16 sps:$4 sm:$0xff]  }
 0x2f0   : > { %3982 = vmatpush1.bf16.msra.mxu0 %v10937_v34  ;;  %4035 = vmatpush1.bf16.msra.mxu1 %v10942_v53  ;;  %v11321_v34 = vld [vmem:[%s12264_s3 + $0x884] ss:$16 sps:$4 sm:$0xff]   ;;  %v11326_v53 = vld [vmem:[%s12264_s3 + $0x88c] ss:$16 sps:$4 sm:$0xff]  }
 0x2f1   : > { %3983 = vmatprep.subr.bf16.mxu0 %v10949_v62  ;;  %4036 = vmatprep.subr.bf16.mxu1 %v10954_v24  ;;  %v11333_v62 = vld [vmem:[%s12264_s3 + $0x880] ss:$16 sps:$4 sm:$0xff]   ;;  %v11338_v24 = vld [vmem:[%s12264_s3 + $0x888] ss:$16 sps:$4 sm:$0xff]  }
 0x2f4   : > { %3984 = vmatpush1.bf16.msra.mxu0 %v10961_v25  ;;  %4037 = vmatpush1.bf16.msra.mxu1 %v10966_v40  ;;  %v11345_v25 = vld [vmem:[%s12264_s3 + $0x8a4] ss:$16 sps:$4 sm:$0xff]   ;;  %v11350_v40 = vld [vmem:[%s12264_s3 + $0x8ac] ss:$16 sps:$4 sm:$0xff]  }
 0x2f5   : > { %3985 = vmatprep.subr.bf16.mxu0 %v10973_v42  ;;  %4038 = vmatprep.subr.bf16.mxu1 %v10978_v52  ;;  %v11357_v42 = vld [vmem:[%s12264_s3 + $0x8a0] ss:$16 sps:$4 sm:$0xff]   ;;  %v11362_v52 = vld [vmem:[%s12264_s3 + $0x8a8] ss:$16 sps:$4 sm:$0xff]  }
 0x2f8   : > { %3986 = vmatpush1.bf16.msra.mxu0 %v10985_v14  ;;  %4039 = vmatpush1.bf16.msra.mxu1 %v10990_v56  ;;  %v11369_v14 = vld [vmem:[%s12264_s3 + $0x8c4] ss:$16 sps:$4 sm:$0xff]   ;;  %v11374_v56 = vld [vmem:[%s12264_s3 + $0x8cc] ss:$16 sps:$4 sm:$0xff]  }
 0x2f9   : > { %3987 = vmatprep.subr.bf16.mxu0 %v10997_v17  ;;  %4040 = vmatprep.subr.bf16.mxu1 %v11002_v26  ;;  %v11381_v17 = vld [vmem:[%s12264_s3 + $0x8c0] ss:$16 sps:$4 sm:$0xff]   ;;  %v11386_v26 = vld [vmem:[%s12264_s3 + $0x8c8] ss:$16 sps:$4 sm:$0xff]  }
 0x2fc   : > { %3988 = vmatpush1.bf16.msra.mxu0 %v11009_v59  ;;  %4041 = vmatpush1.bf16.msra.mxu1 %v11014_v58  ;;  %v11393_v59 = vld [vmem:[%s12264_s3 + $0x8e4] ss:$16 sps:$4 sm:$0xff]   ;;  %v11398_v58 = vld [vmem:[%s12264_s3 + $0x8ec] ss:$16 sps:$4 sm:$0xff]  }
 0x2fd   : > { %3989 = vmatprep.subr.bf16.mxu0 %v11021_v46  ;;  %4042 = vmatprep.subr.bf16.mxu1 %v11026_v21  ;;  %v11405_v46 = vld [vmem:[%s12264_s3 + $0x8e0] ss:$16 sps:$4 sm:$0xff]   ;;  %v11410_v21 = vld [vmem:[%s12264_s3 + $0x8e8] ss:$16 sps:$4 sm:$0xff]  }
 0x300   : > { %3990 = vmatpush1.bf16.msra.mxu0 %v11033_v7  ;;  %4043 = vmatpush1.bf16.msra.mxu1 %v11038_v10  ;;  %v11417_v7 = vld [vmem:[%s12264_s3 + $0x904] ss:$16 sps:$4 sm:$0xff]   ;;  %v11422_v10 = vld [vmem:[%s12264_s3 + $0x90c] ss:$16 sps:$4 sm:$0xff]  }
 0x301   : > { %3991 = vmatprep.subr.bf16.mxu0 %v11045_v19  ;;  %4044 = vmatprep.subr.bf16.mxu1 %v11050_v57  ;;  %v11429_v19 = vld [vmem:[%s12264_s3 + $0x900] ss:$16 sps:$4 sm:$0xff]   ;;  %v11434_v57 = vld [vmem:[%s12264_s3 + $0x908] ss:$16 sps:$4 sm:$0xff]  }
 0x304   : > { %3992 = vmatpush1.bf16.msra.mxu0 %v11057_v39  ;;  %4045 = vmatpush1.bf16.msra.mxu1 %v12453_v28  ;;  %v11441_v39 = vld [vmem:[%s12264_s3 + $0x924] ss:$16 sps:$4 sm:$0xff]   ;;  %v11506_v28 = vld [vmem:[%s12264_s3 + $0x968] ss:$16 sps:$4 sm:$0xff]  }
 0x305   : > { %3993 = vmatprep.subr.bf16.mxu0 %v12454_v30  ;;  %4046 = vmatprep.subr.bf16.mxu1 %v12455_v0  ;;  %v11513_v30 = vld [vmem:[%s12264_s3 + $0x984] ss:$16 sps:$4 sm:$0xff]   ;;  %v11518_v0 = vld [vmem:[%s12264_s3 + $0x98c] ss:$16 sps:$4 sm:$0xff]  }
 0x308   : > { %3994 = vmatpush1.bf16.msra.mxu0 %v12456_v33  ;;  %4047 = vmatpush1.bf16.msra.mxu1 %v12457_v2  ;;  %v11530_v33 = vld [vmem:[%s12264_s3 + $0x988] ss:$16 sps:$4 sm:$0xff]   ;;  %v11537_v2 = vld [vmem:[%s12264_s3 + $0x9a4] ss:$16 sps:$4 sm:$0xff]  }
 0x309   : > { %3995 = vmatprep.subr.bf16.mxu0 %v12458_v31  ;;  %4048 = vmatprep.subr.bf16.mxu1 %v11098_v45  ;;  %v11446_v45 = vld [vmem:[%s12264_s3 + $0x92c] ss:$16 sps:$4 sm:$0xff]  }
 0x30a   : > { %v11542_v31 = vld [vmem:[%s12264_s3 + $0x9ac] ss:$16 sps:$4 sm:$0xff]  }
 0x30c   : > { %3996 = vmatpush1.bf16.msra.mxu0 %v11105_v47  ;;  %4049 = vmatpush1.bf16.msra.mxu1 %v11110_v29  ;;  %v11453_v47 = vld [vmem:[%s12264_s3 + $0x920] ss:$16 sps:$4 sm:$0xff]   ;;  %v11458_v29 = vld [vmem:[%s12264_s3 + $0x928] ss:$16 sps:$4 sm:$0xff]  }
 0x30d   : > { %4472 = vmatprep.subr.bf16.mxu0 %v11203_v23  ;;  %4525 = vmatprep.subr.bf16.mxu1 %v11208_v41 }
 0x30f   : > { %3998 = vmatmul.mubr.bf16.vlgmr.msra.gmra.mrb[40].mxu0 %v11227_v15  ;;  %4051 = vmatmul.mubr.bf16.vlgmr.msra.gmra.mrb[40].mxu1 %v11227_v15 }
 0x310   : > { %4007 = vmatprep.mubr.bf16.mxu0 %v11244_v49  ;;  %4060 = vmatprep.mubr.bf16.mxu1 %v11244_v49 }
 0x311   : > { %4473 = vmatpush1.bf16.msra.mxu0 %v11217_v9  ;;  %4526 = vmatpush1.bf16.msra.mxu1 %v11223_v48 }
 0x312   : > { %4474 = vmatprep.subr.bf16.mxu0 %v11232_v37  ;;  %4527 = vmatprep.subr.bf16.mxu1 %v11237_v16 }
 0x315   : > { %4475 = vmatpush1.bf16.msra.mxu0 %v11253_v18  ;;  %4528 = vmatpush1.bf16.msra.mxu1 %v11258_v20 }
 0x316   : > { %4476 = vmatprep.subr.bf16.mxu0 %v11266_v44  ;;  %4529 = vmatprep.subr.bf16.mxu1 %v11271_v6 }
 0x317   : > { %4008 = vmatmul.mubr.bf16.gmra.mrb[44].mxu0 %v11286_v38  ;;  %4061 = vmatmul.mubr.bf16.gmra.mrb[44].mxu1 %v11286_v38 }
 0x318   : > { %4504 = vmatprep.mubr.bf16.mxu0 %v11142_v13  ;;  %4557 = vmatprep.mubr.bf16.mxu1 %v11142_v13  ;;  %v11501_v13 = vld [vmem:[%s12264_s3 + $0x960] ss:$16 sps:$4 sm:$0xff]  }
 0x319   : > { %4477 = vmatpush1.bf16.msra.mxu0 %v11278_v43  ;;  %4530 = vmatpush1.bf16.msra.mxu1 %v11283_v32 }
 0x31a   : > { %4478 = vmatprep.subr.bf16.mxu0 %v11293_v51  ;;  %4531 = vmatprep.subr.bf16.mxu1 %v11298_v60 }
 0x31d   : > { %4479 = vmatpush1.bf16.msra.mxu0 %v11309_v54  ;;  %4532 = vmatpush1.bf16.msra.mxu1 %v11314_v63 }
 0x31e   : > { %4480 = vmatprep.subr.bf16.mxu0 %v11321_v34  ;;  %4533 = vmatprep.subr.bf16.mxu1 %v11326_v53 }
 0x321   : > { %4481 = vmatpush1.bf16.msra.mxu0 %v11333_v62  ;;  %4534 = vmatpush1.bf16.msra.mxu1 %v11338_v24 }
 0x322   : > { %4482 = vmatprep.subr.bf16.mxu0 %v11345_v25  ;;  %4535 = vmatprep.subr.bf16.mxu1 %v11350_v40 }
 0x325   : > { %4483 = vmatpush1.bf16.msra.mxu0 %v11357_v42  ;;  %4536 = vmatpush1.bf16.msra.mxu1 %v11362_v52 }
 0x326   : > { %4484 = vmatprep.subr.bf16.mxu0 %v11369_v14  ;;  %4537 = vmatprep.subr.bf16.mxu1 %v11374_v56 }
 0x329   : > { %4485 = vmatpush1.bf16.msra.mxu0 %v11381_v17  ;;  %4538 = vmatpush1.bf16.msra.mxu1 %v11386_v26 }
 0x32a   : > { %4486 = vmatprep.subr.bf16.mxu0 %v11393_v59  ;;  %4539 = vmatprep.subr.bf16.mxu1 %v11398_v58 }
 0x32d   : > { %4487 = vmatpush1.bf16.msra.mxu0 %v11405_v46  ;;  %4540 = vmatpush1.bf16.msra.mxu1 %v11410_v21 }
 0x32e   : > { %4488 = vmatprep.subr.bf16.mxu0 %v11417_v7  ;;  %4541 = vmatprep.subr.bf16.mxu1 %v11422_v10 }
 0x331   : > { %4489 = vmatpush1.bf16.msra.mxu0 %v11429_v19  ;;  %4542 = vmatpush1.bf16.msra.mxu1 %v11434_v57 }
 0x332   : > { %4490 = vmatprep.subr.bf16.mxu0 %v11441_v39  ;;  %4543 = vmatprep.subr.bf16.mxu1 %v11446_v45 }
 0x335   : > { %4491 = vmatpush1.bf16.msra.mxu0 %v11453_v47  ;;  %4544 = vmatpush1.bf16.msra.mxu1 %v11458_v29 }
 0x336   : > { %4492 = vmatprep.subr.bf16.mxu0 %v11465_v36  ;;  %4545 = vmatprep.subr.bf16.mxu1 %v11470_v3 }
 0x339   : > { %4493 = vmatpush1.bf16.msra.mxu0 %v11477_v5  ;;  %4546 = vmatpush1.bf16.msra.mxu1 %v11482_v8 }
 0x33a   : > { %4494 = vmatprep.subr.bf16.mxu0 %v11489_v4  ;;  %4547 = vmatprep.subr.bf16.mxu1 %v11494_v27 }
 0x33d   : > { %4495 = vmatpush1.bf16.msra.mxu0 %v11501_v13  ;;  %4548 = vmatpush1.bf16.msra.mxu1 %v11506_v28 }
 0x33e   : > { %4496 = vmatprep.subr.bf16.mxu0 %v11513_v30  ;;  %4549 = vmatprep.subr.bf16.mxu1 %v11518_v0 }
 0x341   : > { %4497 = vmatpush1.bf16.msra.mxu0 %v11525_v50  ;;  %4550 = vmatpush1.bf16.msra.mxu1 %v11530_v33 }
 0x342   : > { %4498 = vmatprep.subr.bf16.mxu0 %v11537_v2  ;;  %4551 = vmatprep.subr.bf16.mxu1 %v11542_v31 }
 0x345   : > { %4499 = vmatpush1.bf16.msra.mxu0 %v11549_v35  ;;  %4552 = vmatpush1.bf16.msra.mxu1 %v11554_v1  ;;  %v11590_v1 = vld [vmem:[%s12264_s3 + $0x9ec] ss:$16 sps:$4 sm:$0xff]  }
 0x346   : > { %4500 = vmatprep.subr.bf16.mxu0 %v11561_v55  ;;  %4553 = vmatprep.subr.bf16.mxu1 %v11566_v12  ;;  %v11597_v55 = vld [vmem:[%s12264_s3 + $0x9e0] ss:$16 sps:$4 sm:$0xff]   ;;  %v11602_v12 = vld [vmem:[%s12264_s3 + $0x9e8] ss:$16 sps:$4 sm:$0xff]  }
 0x349   : > { %4501 = vmatpush1.bf16.msra.mxu0 %v11573_v11  ;;  %4554 = vmatpush1.bf16.msra.mxu1 %v11578_v22 }
 0x34a   : > { %4502 = vmatprep.subr.bf16.mxu0 %v11585_v61  ;;  %4555 = vmatprep.subr.bf16.mxu1 %v11590_v1 }
 0x34d   : > { %4503 = vmatpush1.bf16.msra.mxu0 %v11597_v55  ;;  %4556 = vmatpush1.bf16.msra.mxu1 %v11602_v12 }
 0x34e   : > { %4614 = vmatprep.subr.bf16.mxu0 %v11203_v23  ;;  %4667 = vmatprep.subr.bf16.mxu1 %v11208_v41  ;;  %v12465_v23 = vld [vmem:[#allocation17_spill] sm:$0xff] }
 0x34f   : > { %v12466_v41 = vld [vmem:[#allocation37_spill] sm:$0xff] }
 0x350   : > { %4505 = vmatmul.mubr.bf16.vlgmr.msra.gmra.mrb[32].mxu0 %v11227_v15  ;;  %4558 = vmatmul.mubr.bf16.vlgmr.msra.gmra.mrb[32].mxu1 %v11227_v15  ;;  %v12469_v15 = vld [vmem:[#allocation18_spill] sm:$0xff] }
 0x351   : > { %4514 = vmatprep.mubr.bf16.mxu0 %v11244_v49  ;;  %4567 = vmatprep.mubr.bf16.mxu1 %v11244_v49  ;;  %v8457_v49 = vld [vmem:[%s12266_s5 + $0x40] sm:$0xff]  }
 0x352   : > { %4615 = vmatpush1.bf16.msra.mxu0 %v11217_v9  ;;  %4668 = vmatpush1.bf16.msra.mxu1 %v11223_v48  ;;  %v12467_v9 = vld [vmem:[#allocation38_spill] sm:$0xff]  ;;  %v12468_v48 = vld [vmem:[#allocation39_spill] sm:$0xff] }
 0x353   : > { %4616 = vmatprep.subr.bf16.mxu0 %v11232_v37  ;;  %4669 = vmatprep.subr.bf16.mxu1 %v11237_v16  ;;  %v12470_v37 = vld [vmem:[#allocation19_spill] sm:$0xff]  ;;  %v12471_v16 = vld [vmem:[#allocation20_spill] sm:$0xff] }
 0x356   : > { %4617 = vmatpush1.bf16.msra.mxu0 %v11253_v18  ;;  %4670 = vmatpush1.bf16.msra.mxu1 %v11258_v20  ;;  %v8458_v18 = vld [vmem:[%s12266_s5] sm:$0xff]   ;;  %v8459_v20 = vld [vmem:[%s12266_s5 + $0x48] sm:$0xff]  }
 0x357   : > { %4618 = vmatprep.subr.bf16.mxu0 %v11266_v44  ;;  %4671 = vmatprep.subr.bf16.mxu1 %v11271_v6  ;;  %v8460_v44 = vld [vmem:[%s12266_s5 + $0x8] sm:$0xff]   ;;  %v8461_v6 = vld [vmem:[%s12266_s5 + $0x50] sm:$0xff]  }
 0x358   : > { %4515 = vmatmul.mubr.bf16.gmra.mrb[36].mxu0 %v11286_v38  ;;  %4568 = vmatmul.mubr.bf16.gmra.mrb[36].mxu1 %v11286_v38  ;;  %v8464_v38 = vld [vmem:[%s12266_s5 + $0xc0] sm:$0xff]  }
 0x359   : > { %4646 = vmatprep.mubr.bf16.mxu0 %v12465_v23  ;;  %4699 = vmatprep.mubr.bf16.mxu1 %v12465_v23 }
 0x35a   : > { %4619 = vmatpush1.bf16.msra.mxu0 %v11278_v43  ;;  %4672 = vmatpush1.bf16.msra.mxu1 %v11283_v32  ;;  %v8462_v43 = vld [vmem:[%s12266_s5 + $0x10] sm:$0xff]   ;;  %v8463_v32 = vld [vmem:[%s12266_s5 + $0x58] sm:$0xff]  }
 0x35b   : > { %4620 = vmatprep.subr.bf16.mxu0 %v11293_v51  ;;  %4673 = vmatprep.subr.bf16.mxu1 %v11298_v60  ;;  %v8465_v51 = vld [vmem:[%s12266_s5 + $0x18] sm:$0xff]   ;;  %v8466_v60 = vld [vmem:[%s12266_s5 + $0x80] sm:$0xff]  }
 0x35e   : > { %4621 = vmatpush1.bf16.msra.mxu0 %v11309_v54  ;;  %4674 = vmatpush1.bf16.msra.mxu1 %v11314_v63  ;;  %v8467_v54 = vld [vmem:[%s12266_s5 + $0x60] sm:$0xff]   ;;  %v8468_v63 = vld [vmem:[%s12266_s5 + $0xc8] sm:$0xff]  }
 0x35f   : > { %4622 = vmatprep.subr.bf16.mxu0 %v11321_v34  ;;  %4675 = vmatprep.subr.bf16.mxu1 %v11326_v53  ;;  %v8469_v34 = vld [vmem:[%s12266_s5 + $0x20] sm:$0xff]   ;;  %v8470_v53 = vld [vmem:[%s12266_s5 + $0x88] sm:$0xff]  }
 0x362   : > { %4623 = vmatpush1.bf16.msra.mxu0 %v11333_v62  ;;  %4676 = vmatpush1.bf16.msra.mxu1 %v11338_v24  ;;  %v8471_v62 = vld [vmem:[%s12266_s5 + $0x68] sm:$0xff]   ;;  %v8472_v24 = vld [vmem:[%s12266_s5 + $0xd0] sm:$0xff]  }
 0x363   : > { %4624 = vmatprep.subr.bf16.mxu0 %v11345_v25  ;;  %4677 = vmatprep.subr.bf16.mxu1 %v11350_v40  ;;  %v8473_v25 = vld [vmem:[%s12266_s5 + $0x28] sm:$0xff]   ;;  %v8474_v40 = vld [vmem:[%s12266_s5 + $0x90] sm:$0xff]  }
 0x366   : > { %4625 = vmatpush1.bf16.msra.mxu0 %v11357_v42  ;;  %4678 = vmatpush1.bf16.msra.mxu1 %v11362_v52  ;;  %v8475_v42 = vld [vmem:[%s12266_s5 + $0x70] sm:$0xff]   ;;  %v8476_v52 = vld [vmem:[%s12266_s5 + $0xd8] sm:$0xff]  }
 0x367   : > { %4626 = vmatprep.subr.bf16.mxu0 %v11369_v14  ;;  %4679 = vmatprep.subr.bf16.mxu1 %v11374_v56  ;;  %v8477_v14 = vld [vmem:[%s12266_s5 + $0x30] sm:$0xff]   ;;  %v8478_v56 = vld [vmem:[%s12266_s5 + $0x98] sm:$0xff]  }
 0x36a   : > { %4627 = vmatpush1.bf16.msra.mxu0 %v11381_v17  ;;  %4680 = vmatpush1.bf16.msra.mxu1 %v11386_v26  ;;  %v8479_v17 = vld [vmem:[%s12266_s5 + $0x78] sm:$0xff]   ;;  %v8480_v26 = vld [vmem:[%s12266_s5 + $0xe0] sm:$0xff]  }
 0x36b   : > { %4628 = vmatprep.subr.bf16.mxu0 %v11393_v59  ;;  %4681 = vmatprep.subr.bf16.mxu1 %v11398_v58  ;;  %v8481_v59 = vld [vmem:[%s12266_s5 + $0x38] sm:$0xff]   ;;  %v8482_v58 = vld [vmem:[%s12266_s5 + $0xa0] sm:$0xff]  }
 0x36e   : > { %4629 = vmatpush1.bf16.msra.mxu0 %v11405_v46  ;;  %4682 = vmatpush1.bf16.msra.mxu1 %v11410_v21  ;;  %v8483_v46 = vld [vmem:[%s12266_s5 + $0x1c0] sm:$0xff]   ;;  %v8484_v21 = vld [vmem:[%s12266_s5 + $0xe8] sm:$0xff]  }
 0x36f   : > { %4630 = vmatprep.subr.bf16.mxu0 %v11417_v7  ;;  %4683 = vmatprep.subr.bf16.mxu1 %v11422_v10  ;;  %v8486_v7 = vld [vmem:[%s12266_s5 + $0xa8] sm:$0xff]   ;;  %v8488_v10 = vld [vmem:[%s12266_s5 + $0xf0] sm:$0xff]  }
 0x372   : > { %4631 = vmatpush1.bf16.msra.mxu0 %v11429_v19  ;;  %4684 = vmatpush1.bf16.msra.mxu1 %v11434_v57  ;;  %v8490_v19 = vld [vmem:[%s12266_s5 + $0xb0] sm:$0xff]   ;;  %v8492_v57 = vld [vmem:[%s12266_s5 + $0xf8] sm:$0xff]  }
 0x373   : > { %4632 = vmatprep.subr.bf16.mxu0 %v11441_v39  ;;  %4685 = vmatprep.subr.bf16.mxu1 %v11446_v45  ;;  %v8494_v39 = vld [vmem:[%s12266_s5 + $0xb8] sm:$0xff]   ;;  %v8496_v45 = vld [vmem:[%s12266_s5 + $0x140] sm:$0xff]  }
 0x376   : > { %4633 = vmatpush1.bf16.msra.mxu0 %v11453_v47  ;;  %4686 = vmatpush1.bf16.msra.mxu1 %v11458_v29 }
 0x377   : > { %4634 = vmatprep.subr.bf16.mxu0 %v11465_v36  ;;  %4687 = vmatprep.subr.bf16.mxu1 %v11470_v3 }
 0x37a   : > { %4635 = vmatpush1.bf16.msra.mxu0 %v11477_v5  ;;  %4688 = vmatpush1.bf16.msra.mxu1 %v11482_v8 }
 0x37b   : > { %4636 = vmatprep.subr.bf16.mxu0 %v11489_v4  ;;  %4689 = vmatprep.subr.bf16.mxu1 %v11494_v27 }
 0x37e   : > { %4637 = vmatpush1.bf16.msra.mxu0 %v11501_v13  ;;  %4690 = vmatpush1.bf16.msra.mxu1 %v11506_v28 }
 0x37f   : > { %4638 = vmatprep.subr.bf16.mxu0 %v11513_v30  ;;  %4691 = vmatprep.subr.bf16.mxu1 %v11518_v0 }
 0x382   : > { %4639 = vmatpush1.bf16.msra.mxu0 %v11525_v50  ;;  %4692 = vmatpush1.bf16.msra.mxu1 %v11530_v33 }
 0x383   : > { %4640 = vmatprep.subr.bf16.mxu0 %v11537_v2  ;;  %4693 = vmatprep.subr.bf16.mxu1 %v11542_v31 }
 0x386   : > { %4641 = vmatpush1.bf16.msra.mxu0 %v11549_v35  ;;  %4694 = vmatpush1.bf16.msra.mxu1 %v12466_v41  ;;  %v4760_v35 = vld [vmem:[%s12265_s4] sm:$0x3] }
 0x387   : > { %4642 = vmatprep.subr.bf16.mxu0 %v12467_v9  ;;  %4695 = vmatprep.subr.bf16.mxu1 %v12468_v48 }
 0x38a   : > { %4643 = vmatpush1.bf16.msra.mxu0 %v11573_v11  ;;  %4696 = vmatpush1.bf16.msra.mxu1 %v11578_v22  ;;  %v12472_v22 = vld [vmem:[#allocation5_spill] sm:$0xff] }
 0x38b   : > { %4644 = vmatprep.subr.bf16.mxu0 %v11585_v61  ;;  %4697 = vmatprep.subr.bf16.mxu1 %v11590_v1  ;;  %v11808_v61 = vrot.slane %v4760_v35, %v12472_v22 }
 0x38e   : > { %4645 = vmatpush1.bf16.msra.mxu0 %v11597_v55  ;;  %4698 = vmatpush1.bf16.msra.mxu1 %v11602_v12 }
 0x38f   : > { %7561 = vmatprep.subr.bf16.mxu1 %v8457_v49  ;;  %7533 = vmatprep.subr.bf16.mxu0 %v8464_v38 }
 0x391   : > { %4647 = vmatmul.mubr.bf16.vlgmr.msra.gmra.mrb[40].mxu0 %v12469_v15  ;;  %4700 = vmatmul.mubr.bf16.vlgmr.msra.gmra.mrb[40].mxu1 %v12469_v15  ;;  %v12473_v15 = vld [vmem:[#allocation6_spill] sm:$0xff] }
 0x392   : > { %4656 = vmatprep.mubr.bf16.mxu0 %v12470_v37  ;;  %4709 = vmatprep.mubr.bf16.mxu1 %v12470_v37  ;;  %v4769_v37 = vrot.slane %v4760_v35, %v12473_v15  ;;  %v8489_v15 = vld [vmem:[%s12266_s5 + $0x188] sm:$0xff]  }
 0x393   : > { %7562 = vmatpush3.bf16.msra.mxu1 %v8458_v18  ;;  %7534 = vmatpush3.bf16.msra.mxu0 %v8466_v60 }
 0x394   : > { %7563 = vmatprep.subr.bf16.mxu1 %v8459_v20  ;;  %7535 = vmatprep.subr.bf16.mxu0 %v8468_v63 }
 0x397   : > { %7564 = vmatpush3.bf16.msra.mxu1 %v8460_v44  ;;  %7536 = vmatpush3.bf16.msra.mxu0 %v8470_v53 }
 0x398   : > { %7565 = vmatprep.subr.bf16.mxu1 %v8461_v6  ;;  %7537 = vmatprep.subr.bf16.mxu0 %v8472_v24 }
 0x399   : > { %4657 = vmatmul.mubr.bf16.gmra.mrb[44].mxu0 %v12471_v16  ;;  %4710 = vmatmul.mubr.bf16.gmra.mrb[44].mxu1 %v12471_v16 }
 0x39b   : > { %7566 = vmatpush3.bf16.msra.mxu1 %v8462_v43  ;;  %7538 = vmatpush3.bf16.msra.mxu0 %v8474_v40 }
 0x39c   : > { %7567 = vmatprep.subr.bf16.mxu1 %v8463_v32  ;;  %7539 = vmatprep.subr.bf16.mxu0 %v8476_v52 }
 0x39f   : > { %7568 = vmatpush3.bf16.msra.mxu1 %v8465_v51  ;;  %7540 = vmatpush3.bf16.msra.mxu0 %v8478_v56 }
 0x3a0   : > { %7569 = vmatprep.subr.bf16.mxu1 %v8467_v54  ;;  %7541 = vmatprep.subr.bf16.mxu0 %v8480_v26 }
 0x3a3   : > { %7570 = vmatpush3.bf16.msra.mxu1 %v8469_v34  ;;  %7542 = vmatpush3.bf16.msra.mxu0 %v8482_v58 }
 0x3a4   : > { %7571 = vmatprep.subr.bf16.mxu1 %v8471_v62  ;;  %7543 = vmatprep.subr.bf16.mxu0 %v8484_v21 }
 0x3a7   : > { %7572 = vmatpush3.bf16.msra.mxu1 %v8473_v25  ;;  %7544 = vmatpush3.bf16.msra.mxu0 %v8486_v7 }
 0x3a8   : > { %7573 = vmatprep.subr.bf16.mxu1 %v8475_v42  ;;  %7545 = vmatprep.subr.bf16.mxu0 %v8488_v10 }
 0x3ab   : > { %7574 = vmatpush3.bf16.msra.mxu1 %v8477_v14  ;;  %7546 = vmatpush3.bf16.msra.mxu0 %v8490_v19  ;;  %v4865_v19 = vld [vmem:[#allocation4 + $0x20] sm:$0x11] }
 0x3ac   : > { %7575 = vmatprep.subr.bf16.mxu1 %v8479_v17  ;;  %7547 = vmatprep.subr.bf16.mxu0 %v8492_v57 }
 0x3af   : > { %7576 = vmatpush3.bf16.msra.mxu1 %v8481_v59  ;;  %7548 = vmatpush3.bf16.msra.mxu0 %v8494_v39 }
 0x3b0   : > { %7617 = vmatprep.subr.bf16.mxu1 %v8483_v46  ;;  %7589 = vmatprep.subr.bf16.mxu0 %v8496_v45 }
 0x423   : > { %v4506_v47 = vpop.f32.mrb[32].mxu0  ;;  %v4559_v29 = vpop.f32.mrb[32].mxu1 }
 0x424   : > { %v4508_v36 = vpop.f32.mrb[33].mxu0  ;;  %v4561_v3 = vpop.f32.mrb[33].mxu1 }
 0x425   : > { %v4510_v5 = vpop.f32.mrb[34].mxu0  ;;  %v4563_v8 = vpop.f32.mrb[34].mxu1 }
 0x426   : > { %v4512_v4 = vpop.f32.mrb[35].mxu0  ;;  %v4565_v27 = vpop.f32.mrb[35].mxu1 }
 0x42b   : > { %v4516_v13 = vpop.f32.mrb[36].mxu0  ;;  %v4569_v28 = vpop.f32.mrb[36].mxu1 }
 0x42c   : > { %v11788_v30 = vpop.f32.mrb[37].mxu0  ;;  %v11790_v0 = vpop.f32.mrb[37].mxu1 }
 0x42d   : > { %v11792_v50 = vpop.f32.mrb[38].mxu0  ;;  %v11794_v33 = vpop.f32.mrb[38].mxu1 }
 0x42e   : > { %v11796_v2 = vpop.f32.mrb[39].mxu0  ;;  %v11798_v31 = vpop.f32.mrb[39].mxu1 }
 0x464   : > { %v4648_v1 = vpop.f32.mrb[40].mxu0  ;;  %v4701_v55 = vpop.f32.mrb[40].mxu1 }
 0x465   : > { %v4736_v12 = vmax.f32 %v4506_v47, %v4648_v1  ;;  %v4738_v11 = vmax.f32 %v4559_v29, %v4701_v55  ;;  %v4650_v23 = vpop.f32.mrb[41].mxu0  ;;  %v4703_v41 = vpop.f32.mrb[41].mxu1  ;;  %v11841_v1 = vcombine.low %v4865_v19, %v4865_v19 }
 0x466   : > { %v4737_v9 = vmax.f32 %v4508_v36, %v4650_v23  ;;  %v4739_v48 = vmax.f32 %v4561_v3, %v4703_v41  ;;  %v4652_v16 = vpop.f32.mrb[42].mxu0  ;;  %v4705_v49 = vpop.f32.mrb[42].mxu1  ;;  %v11844_v23 = vld [vmem:[#allocation4 + $0x20] sm:$0x33] }
 0x467   : > { %v4752_v18 = vmax.f32 %v4736_v12, %v4738_v11  ;;  %v4740_v20 = vmax.f32 %v4510_v5, %v4652_v16  ;;  %v4742_v44 = vmax.f32 %v4563_v8, %v4705_v49  ;;  %v4654_v6 = vpop.f32.mrb[43].mxu0  ;;  %v4707_v43 = vpop.f32.mrb[43].mxu1 }
 0x468   : > { %v4753_v32 = vmax.f32 %v4737_v9, %v4739_v48  ;;  %v4741_v38 = vmax.f32 %v4512_v4, %v4654_v6  ;;  %v4743_v51 = vmax.f32 %v4565_v27, %v4707_v43  ;;  %v11858_v6 = vcombine.high %v11844_v23, %v11844_v23 }
 0x469   : > { %v4772_v60 = vadd.f32 %v11808_v61, %v4752_v18  ;;  %v4754_v54 = vmax.f32 %v4740_v20, %v4742_v44 }
 0x46a   : > { %v4773_v63 = vadd.f32 %v4769_v37, %v4753_v32  ;;  %v4755_v34 = vmax.f32 %v4741_v38, %v4743_v51 }
 0x46b   : > { %v4780_v53 = vmax.f32 %v4772_v60, 0.0  ;;  %v4774_v62 = vadd.f32 %v11808_v61, %v4754_v54 }
 0x46c   : > { %v4781_v24 = vmax.f32 %v4773_v63, 0.0  ;;  %v4775_v25 = vadd.f32 %v4769_v37, %v4755_v34  ;;  %v4658_v40 = vpop.f32.mrb[44].mxu0  ;;  %v4711_v42 = vpop.f32.mrb[44].mxu1 }
 0x46d   : > { %4788 = vst [vmem:[%s11816_s18] sm:$0xff] %v4780_v53  ;;  %v4782_v52 = vmax.f32 %v4774_v62, 0.0  ;;  %v4744_v14 = vmax.f32 %v4516_v13, %v4658_v40  ;;  %v4746_v56 = vmax.f32 %v4569_v28, %v4711_v42  ;;  %v4660_v17 = vpop.f32.mrb[45].mxu0  ;;  %v4713_v26 = vpop.f32.mrb[45].mxu1  ;;  %v11832_v13 = vcombine.high %v4865_v19, %v4865_v19  ;;  %v8493_v62 = vld [vmem:[%s12266_s5 + $0x190] sm:$0xff]   ;;  %v8495_v40 = vld [vmem:[%s12266_s5 + $0x1d8] sm:$0xff]  }
 0x46e   : > { %4789 = vst [vmem:[%s11816_s18 + $0x8] sm:$0xff] %v4781_v24  ;;  %v7529_v59 = vpack.c.bf16 %v4781_v24, %v4780_v53  ;;  %v4783_v58 = vmax.f32 %v4775_v25, 0.0  ;;  %v4745_v46 = vmax.f32 %v11788_v30, %v4660_v17  ;;  %v4747_v21 = vmax.f32 %v11790_v0, %v4713_v26  ;;  %v4662_v7 = vpop.f32.mrb[46].mxu0  ;;  %v4715_v10 = vpop.f32.mrb[46].mxu1 }
 0x46f   : > { %4790 = vst [vmem:[%s11816_s18 + $0x10] sm:$0xff] %v4782_v52  ;;  %v4756_v57 = vmax.f32 %v4744_v14, %v4746_v56  ;;  %v4748_v39 = vmax.f32 %v11792_v50, %v4662_v7  ;;  %v4750_v45 = vmax.f32 %v11794_v33, %v4715_v10  ;;  %v4664_v47 = vpop.f32.mrb[47].mxu0  ;;  %v4717_v29 = vpop.f32.mrb[47].mxu1  ;;  %v8723_v0 = vpack.c.bf16 %v4782_v52, %v4780_v53  ;;  %v8485_v33 = vld [vmem:[%s12266_s5 + $0x180] sm:$0xff]  }
 0x470   : > { %4820 = vst [vmem:[#allocation4] sm:$0xff] %v7529_v59  ;;  %4791 = vst [vmem:[%s11816_s18 + $0x18] sm:$0xff] %v4783_v58  ;;  %v11827_v36 = vpack.c.bf16 %v4783_v58, %v4782_v52  ;;  %v4757_v3 = vmax.f32 %v4745_v46, %v4747_v21  ;;  %v4749_v5 = vmax.f32 %v11796_v2, %v4664_v47  ;;  %v4956_v22 = vshll.u32 %v11832_v13, 16 }
 0x471   : > { %v4751_v8 = vmax.f32 %v11798_v31, %v4717_v29  ;;  %v4776_v4 = vadd.f32 %v11808_v61, %v4756_v57  ;;  %v4758_v27 = vmax.f32 %v4748_v39, %v4750_v45  ;;  %v8724_v50 = vpack.c.bf16 %v4783_v58, %v4781_v24  ;;  %v8487_v31 = vld [vmem:[%s12266_s5 + $0x1c8] sm:$0xff]   ;;  %v8497_v57 = vld [vmem:[%s12266_s5 + $0x198] sm:$0xff]   ;;  %v8498_v29 = vld [vmem:[%s12266_s5 + $0x100] sm:$0xff]  }
 0x472   : > { %v4777_v28 = vadd.f32 %v4769_v37, %v4757_v3  ;;  %v4923_v9 = vshll.u32 %v8723_v0, 16  ;;  %v4921_v18 = vshrl.u32 %v8723_v0, 16  ;;  %v4958_v32 = vrot.slane %v4956_v22, 1  ;;  %v8502_v22 = vld [vmem:[%s12266_s5 + $0x1a0] sm:$0xff]  }
 0x473   : > { %v4759_v30 = vmax.f32 %v4749_v5, %v4751_v8  ;;  %v4784_v35 = vmax.f32 %v4776_v4, 0.0  ;;  %v4778_v2 = vadd.f32 %v11808_v61, %v4758_v27  ;;  %5257 = vmatprep.mubr.bf16.mxu1 %v8724_v50  ;;  %v4935_v11 = vshll.u32 %v8724_v50, 16 }
 0x474   : > { %v4785_v55 = vmax.f32 %v4777_v28, 0.0  ;;  %5258 = vmatmul.mubr.bf16.vlgmr.msra.gmra.mrb[48].mxu1 %v8723_v0  ;;  %v4948_v61 = vshll.u32 %v11841_v1, 16  ;;  %v4933_v16 = vshrl.u32 %v8724_v50, 16  ;;  %v4925_v20 = vrot.slane %v4923_v9, 1  ;;  %v8500_v50 = vld [vmem:[%s12266_s5 + $0x1e0] sm:$0xff]  }
 0x475   : > { %v4779_v12 = vadd.f32 %v4769_v37, %v4759_v30  ;;  %4792 = vst [vmem:[%s11816_s18 + $0x20] sm:$0xff] %v4784_v35  ;;  %v4786_v41 = vmax.f32 %v4778_v2, 0.0  ;;  %7618 = vmatpush3.bf16.msra.mxu1 %v8485_v33  ;;  %v8491_v37 = vld [vmem:[%s12266_s5 + $0x1d0] sm:$0xff]   ;;  %v4937_v49 = vrot.slane %v4935_v11, 1  ;;  %v8501_v33 = vld [vmem:[%s12266_s5 + $0x148] sm:$0xff]  }
 0x476   : > { %4793 = vst [vmem:[%s11816_s18 + $0x28] sm:$0xff] %v4785_v55  ;;  %7619 = vmatprep.subr.bf16.mxu1 %v8487_v31  ;;  %v4926_v54 = vor.u32 %v4925_v20, %v4921_v18  ;;  %v5550_v31 = vshrl.u32 %v11858_v6, 16  ;;  %v8505_v20 = vld [vmem:[%s12266_s5 + $0x150] sm:$0xff]  }
 0x477   : > { %v4787_v48 = vmax.f32 %v4779_v12, 0.0  ;;  %4794 = vst [vmem:[%s11816_s18 + $0x30] sm:$0xff] %v4786_v41  ;;  %v5274_v44 = vld [vmem:[#allocation4] sm:$0xee]  ;;  %v4938_v60 = vor.u32 %v4937_v49, %v4933_v16  ;;  %v11870_v53 = vpack.c.bf16 %v4786_v41, %v4784_v35  ;;  %v4950_v35 = vrot.slane %v4948_v61, 1 }
 0x478   : > { %v5711_v43 = vld [vmem:[#allocation4] sm:$0xcc]  ;;  %v11862_v38 = vcombine.low %v5274_v44, %v11827_v36  ;;  %v7299_v51 = vcombine.high %v5274_v44, %v11827_v36 }
 0x479   : > { %4795 = vst [vmem:[%s11816_s18 + $0x38] sm:$0xff] %v4787_v48  ;;  %v11866_v63 = vcombine.high %v5711_v43, %v11827_v36  ;;  %7620 = vmatpush3.bf16.msra.mxu1 %v8489_v15  ;;  %v11868_v34 = vpack.c.bf16 %v4787_v48, %v4785_v55  ;;  %v11884_v26 = vshll.u32 %v11870_v53, 16  ;;  %v11889_v21 = vshrl.u32 %v11870_v53, 16  ;;  %v11929_v61 = vld [vmem:[#allocation4] sm:$0x88]  ;;  %v8503_v48 = vld [vmem:[%s12266_s5 + $0x108] sm:$0xff]  }
 0x47a   : > { %v5529_v24 = vshrl.u32 %v7299_v51, 16  ;;  %v5532_v25 = vshll.u32 %v7299_v51, 16  ;;  %7621 = vmatprep.subr.bf16.mxu1 %v8491_v37  ;;  %v5316_v42 = vrot.slane %v7299_v51, 1  ;;  %v5517_v52 = vshrl.u32 %v11862_v38, 16  ;;  %v8504_v15 = vld [vmem:[%s12266_s5 + $0x1e8] sm:$0xff]  }
 0x47b   : > { %v5520_v14 = vshll.u32 %v11862_v38, 16  ;;  %v5967_v56 = vshrl.u32 %v11866_v63, 16  ;;  %5265 = vmatprep.mubr.bf16.mxu1 %v11868_v34  ;;  %v4940_v17 = vshll.u32 %v11868_v34, 16  ;;  %v4952_v59 = vshrl.u32 %v11868_v34, 16 }
 0x47c   : > { %v5531_v58 = vrot.slane %v5529_v24, 1  ;;  %5266 = vmatmul.mubr.bf16.gmra.mrb[52].mxu1 %v11870_v53  ;;  %v5534_v46 = vrot.slane %v5532_v25, 2  ;;  %v5317_v7 = vrot.slane %v11868_v34, 1  ;;  %v5519_v10 = vrot.slane %v5517_v52, 1  ;;  %v8506_v24 = vld [vmem:[%s12266_s5 + $0x1a8] sm:$0xff]   ;;  %v8508_v52 = vld [vmem:[%s12266_s5 + $0x110] sm:$0xff]  }
 0x47d   : > { %7622 = vmatpush3.bf16.msra.mxu1 %v8493_v62  ;;  %v4942_v19 = vrot.slane %v4940_v17, 1  ;;  %v4930_v39 = vrot.slane %v11884_v26, 1  ;;  %v5536_v45 = vrot.slane %v4952_v59, 1  ;;  %v5537_v47 = vrot.slane %v4940_v17, 2 }
 0x47e   : > { %7623 = vmatprep.subr.bf16.mxu1 %v8495_v40  ;;  %v5535_v3 = vor.u32 %v5534_v46, %v5531_v58  ;;  %v11902_v5 = vsel %vm3950_vm8, %v5316_v42, %v5317_v7  ;;  %v5522_v8 = vrot.slane %v5520_v14, 2  ;;  %v5524_v4 = vrot.slane %v11889_v21, 1  ;;  %v8510_v58 = vld [vmem:[%s12266_s5 + $0x158] sm:$0xff]  }
 0x47f   : > { %v4943_v27 = vsel %vm2481_vm9, %v4938_v60, %v4942_v19  ;;  %v4931_v28 = vsel %vm2481_vm9, %v4926_v54, %v4930_v39  ;;  %v4954_v30 = vor.u32 %v4952_v59, %v4942_v19  ;;  %v11907_v0 = vor.u32 %v5537_v47, %v5536_v45  ;;  %v8511_v45 = vld [vmem:[%s12266_s5 + $0x1b0] sm:$0xff]  }
 0x480   : > { %5092 = vmatprep.mubr.bf16.mxu0 %v4943_v27  ;;  %v5525_v2 = vrot.slane %v11884_v26, 2  ;;  %v11920_v55 = vcombine.low %v5711_v43, %v11827_v36  ;;  %v5969_v41 = vrot.slane %v5967_v56, 2  ;;  %v5970_v9 = vshll.u32 %v11866_v63, 16  ;;  %v8513_v27 = vld [vmem:[%s12266_s5 + $0x1f8] sm:$0xff]  }
 0x481   : > { %7624 = vmatpush3.bf16.msra.mxu1 %v8497_v57  ;;  %5093 = vmatmul.mubr.bf16.vlgmr.msra.gmra.mrb[48].mxu0 %v4931_v28  ;;  %v4959_v12 = vsel %vm2481_vm9, %v4954_v30, %v4958_v32  ;;  %v5539_v11 = vsel %vm5515_vm10, %v5535_v3, %v11907_v0  ;;  %v5523_v37 = vor.u32 %v5522_v8, %v5519_v10  ;;  %v5974_v49 = vrot.slane %v4952_v59, 2 }
 0x482   : > { %7590 = vmatpush3.bf16.msra.mxu0 %v8498_v29  ;;  %5100 = vmatprep.mubr.bf16.mxu0 %v4959_v12  ;;  %v11937_v16 = vor.u32 %v5525_v2, %v5524_v4  ;;  %v5975_v18 = vrot.slane %v4940_v17, 3  ;;  %v5972_v44 = vrot.slane %v5970_v9, 3  ;;  %v5313_v43 = vrot.slane %v11862_v38, 1  ;;  %v8512_v4 = vld [vmem:[%s12266_s5 + $0x118] sm:$0xff]   ;;  %v8518_v9 = vld [vmem:[%s12266_s5 + $0x168] sm:$0xff]  }
 0x483   : > { %5690 = vmatprep.mubr.bf16.mxu1 %v5539_v11  ;;  %7625 = vmatprep.subr.bf16.mxu1 %v8500_v50  ;;  %v5314_v32 = vrot.slane %v11870_v53, 1  ;;  %v4946_v51 = vor.u32 %v11889_v21, %v4930_v39  ;;  %v7498_v62 = vcombine.low %v11929_v61, %v11827_v36  ;;  %v5754_v40 = vrot.slane %v11866_v63, 2  ;;  %v8509_v63 = vld [vmem:[%s12266_s5 + $0x1f0] sm:$0xff]  }
 0x484   : > { %7591 = vmatprep.subr.bf16.mxu0 %v8501_v33  ;;  %v11947_v60 = vsel %vm5515_vm10, %v5523_v37, %v11937_v16  ;;  %v11949_v54 = vor.u32 %v5975_v18, %v5974_v49  ;;  %v5973_v38 = vor.u32 %v5972_v44, %v5969_v41  ;;  %v5755_v42 = vrot.slane %v11868_v34, 2  ;;  %v8517_v41 = vld [vmem:[%s12266_s5 + $0x2c0] sm:$0xff]   ;;  %v8521_v49 = vld [vmem:[%s12266_s5 + $0x128] sm:$0xff]  }
 0x485   : > { %7626 = vmatpush3.bf16.msra.mxu1 %v8502_v22  ;;  %v11959_v25 = vsel %vm3950_vm8, %v5313_v43, %v5314_v32  ;;  %v5955_v14 = vshrl.u32 %v11920_v55, 16  ;;  %v5958_v56 = vshll.u32 %v11920_v55, 16  ;;  %v5962_v17 = vrot.slane %v11889_v21, 2  ;;  %v8520_v37 = vld [vmem:[%s12266_s5 + $0x280] sm:$0xff]   ;;  %v8522_v18 = vld [vmem:[%s12266_s5 + $0x2c8] sm:$0xff]  }
 0x486   : > { %7592 = vmatpush3.bf16.msra.mxu0 %v8503_v48  ;;  %7627 = vmatprep.subr.bf16.mxu1 %v8504_v15  ;;  %v5963_v59 = vrot.slane %v11884_v26, 3  ;;  %v5553_v46 = vshll.u32 %v11858_v6, 16  ;;  %v11979_v10 = vsel %vm5953_vm11, %v5973_v38, %v11949_v54  ;;  %v11984_v21 = vsel %vm655_vm1, %v5754_v40, %v5755_v42  ;;  %v8527_v38 = vld [vmem:[%s12266_s5 + $0x2d0] sm:$0xff]  }
 0x487   : > { %7593 = vmatprep.subr.bf16.mxu0 %v8505_v20  ;;  %v4951_v26 = vsel %vm2481_vm9, %v4946_v51, %v4950_v35  ;;  %v5957_v19 = vrot.slane %v5955_v14, 2  ;;  %v5960_v57 = vrot.slane %v5958_v56, 3  ;;  %v6193_v47 = vrot.slane %v11868_v34, 3  ;;  %v8523_v20 = vld [vmem:[%s12266_s5 + $0x170] sm:$0xff]   ;;  %v8531_v14 = vld [vmem:[%s12266_s5 + $0x2d8] sm:$0xff]   ;;  %v8570_v34 = vld [vmem:[%s12266_s5 + $0x328] sm:$0xff]  }
 0x488   : > { %v11987_v39 = vor.u32 %v5963_v59, %v5962_v17  ;;  %v5751_v29 = vrot.slane %v11920_v55, 2  ;;  %v5752_v3 = vrot.slane %v11870_v53, 2  ;;  %v7499_v8 = vcombine.high %v11929_v61, %v11827_v36  ;;  %v8514_v36 = vld [vmem:[%s12266_s5 + $0x160] sm:$0xff]   ;;  %v8529_v40 = vld [vmem:[%s12266_s5 + $0x290] sm:$0xff]   ;;  %v8533_v59 = vld [vmem:[%s12266_s5 + $0x298] sm:$0xff]  }
 0x489   : > { %7628 = vmatpush3.bf16.msra.mxu1 %v8506_v24  ;;  %5101 = vmatmul.mubr.bf16.gmra.mrb[52].mxu0 %v4951_v26  ;;  %v5961_v28 = vor.u32 %v5960_v57, %v5957_v19  ;;  %v6189_v30 = vrot.slane %v7498_v62, 3  ;;  %v6190_v50 = vrot.slane %v11870_v53, 3  ;;  %v5552_v2 = vrot.slane %v5550_v31, 1  ;;  %v8516_v31 = vld [vmem:[%s12266_s5 + $0x120] sm:$0xff]   ;;  %v8524_v62 = vld [vmem:[%s12266_s5 + $0x288] sm:$0xff]   ;;  %v8525_v24 = vld [vmem:[%s12266_s5 + $0x130] sm:$0xff]  }
 0x48a   : > { %7594 = vmatpush3.bf16.msra.mxu0 %v8508_v52  ;;  %5455 = vmatprep.mubr.bf16.mxu0 %v11902_v5  ;;  %v12010_v5 = vcombine.low %v11844_v23, %v11844_v23  ;;  %v12015_v33 = vsel %vm655_vm1, %v5751_v29, %v5752_v3  ;;  %v6192_v35 = vrot.slane %v7499_v8, 3  ;;  %v5555_v55 = vrot.slane %v5553_v46, 2  ;;  %v8515_v23 = vld [vmem:[%s12266_s5 + $0x1b8] sm:$0xff]   ;;  %v8532_v17 = vld [vmem:[%s12266_s5 + $0x240] sm:$0xff]   ;;  %v8536_v46 = vld [vmem:[%s12266_s5 + $0x248] sm:$0xff]  }
 0x48b   : > { %7629 = vmatprep.subr.bf16.mxu1 %v8509_v63  ;;  %7595 = vmatprep.subr.bf16.mxu0 %v8510_v58  ;;  %v12021_v12 = vsel %vm5953_vm11, %v5961_v28, %v11987_v39  ;;  %v12026_v11 = vsel %vm6188_vm12, %v6189_v30, %v6190_v50  ;;  %v8530_v52 = vld [vmem:[%s12266_s5 + $0x138] sm:$0xff]   ;;  %v5321_v63 = vrot.slane %v11832_v13, 1  ;;  %v8535_v58 = vld [vmem:[%s12266_s5 + $0x2e0] sm:$0xff]   ;;  %v5914_v26 = vld [vmem:[#allocation4 + $0x20] sm:$0x77]  ;;  %v5319_v57 = vrot.slane %v11841_v1, 1 }
 0x48c   : > { %v12034_v22 = vsel %vm6188_vm12, %v6192_v35, %v6193_v47  ;;  %v5541_v61 = vshrl.u32 %v12010_v5, 16  ;;  %v5544_v48 = vshll.u32 %v12010_v5, 16  ;;  %v5556_v15 = vor.u32 %v5555_v55, %v5552_v2  ;;  %v8538_v19 = vld [vmem:[%s12266_s5 + $0x208] sm:$0xff]   ;;  %v8542_v8 = vld [vmem:[%s12266_s5 + $0x210] sm:$0xff]   ;;  %v8544_v1 = vld [vmem:[%s12266_s5 + $0x258] sm:$0xff]  }
 0x48d   : > { %7630 = vmatpush3.bf16.msra.mxu1 %v8511_v45  ;;  %v5322_v13 = vsel %vm3950_vm8, %v5317_v7, %v5321_v63  ;;  %v8540_v7 = vld [vmem:[%s12266_s5 + $0x250] sm:$0xff]   ;;  %v12119_v45 = vcombine.high %v5914_v26, %v5914_v26  ;;  %v8541_v29 = vld [vmem:[%s12266_s5 + $0x2a8] sm:$0xff]   ;;  %v8546_v35 = vld [vmem:[%s12266_s5 + $0x218] sm:$0xff]   ;;  %v12151_v55 = vcombine.low %v5914_v26, %v5914_v26  ;;  %v5759_v63 = vrot.slane %v11858_v6, 2 }
 0x48e   : > { %7596 = vmatpush3.bf16.msra.mxu0 %v8512_v4  ;;  %7631 = vmatprep.subr.bf16.mxu1 %v8513_v27  ;;  %v5543_v44 = vrot.slane %v5541_v61, 1  ;;  %v5546_v43 = vrot.slane %v5544_v48, 2  ;;  %v5557_v51 = vsel %vm5515_vm10, %v11907_v0, %v5556_v15  ;;  %v8528_v0 = vld [vmem:[%s12266_s5 + $0x178] sm:$0xff]   ;;  %v8543_v4 = vld [vmem:[%s12266_s5 + $0x2f0] sm:$0xff]   ;;  %v5320_v27 = vsel %vm3950_vm8, %v5314_v32, %v5319_v57  ;;  %v8548_v2 = vld [vmem:[%s12266_s5 + $0x260] sm:$0xff]  }
 0x48f   : > { %7597 = vmatprep.subr.bf16.mxu0 %v8514_v36  ;;  %v5988_v28 = vshrl.u32 %v12119_v45, 16  ;;  %v5991_v30 = vshll.u32 %v12119_v45, 16  ;;  %v8545_v36 = vld [vmem:[%s12266_s5 + $0x2b0] sm:$0xff]   ;;  %v8547_v32 = vld [vmem:[%s12266_s5 + $0x2f8] sm:$0xff]   ;;  %v8552_v61 = vld [vmem:[%s12266_s5 + $0x268] sm:$0xff]   ;;  %v5979_v48 = vshrl.u32 %v12151_v55, 16 }
 0x490   : > { %v5982_v15 = vshll.u32 %v12151_v55, 16  ;;  %v8569_v6 = vld [vmem:[%s12266_s5 + $0x368] sm:$0xff]  }
 0x491   : > { %7632 = vmatpush3.bf16.msra.mxu1 %v8515_v23  ;;  %v5990_v23 = vrot.slane %v5988_v28, 2 }
 0x492   : > { %7598 = vmatpush3.bf16.msra.mxu0 %v8516_v31  ;;  %7673 = vmatprep.subr.bf16.mxu1 %v8517_v41  ;;  %v5993_v31 = vrot.slane %v5991_v30, 3  ;;  %v8550_v41 = vld [vmem:[%s12266_s5 + $0x220] sm:$0xff]  }
 0x493   : > { %7599 = vmatprep.subr.bf16.mxu0 %v8518_v9  ;;  %v8551_v9 = vld [vmem:[%s12266_s5 + $0x340] sm:$0xff]  }
 0x494   : > { %5691 = vmatmul.mubr.bf16.vlgmr.msra.gmra.mrb[56].mxu1 %v11947_v60  ;;  %v5547_v60 = vor.u32 %v5546_v43, %v5543_v44  ;;  %v8557_v44 = vld [vmem:[%s12266_s5 + $0x270] sm:$0xff]   ;;  %v5981_v43 = vrot.slane %v5979_v48, 2 }
 0x495   : > { %5698 = vmatprep.mubr.bf16.mxu1 %v5557_v51  ;;  %7674 = vmatpush3.bf16.msra.mxu1 %v8520_v37  ;;  %v5994_v37 = vor.u32 %v5993_v31, %v5990_v23  ;;  %v5984_v51 = vrot.slane %v5982_v15, 3 }
 0x496   : > { %7600 = vmatpush3.bf16.msra.mxu0 %v8521_v49  ;;  %7675 = vmatprep.subr.bf16.mxu1 %v8522_v18  ;;  %v5548_v56 = vsel %vm5515_vm10, %v11937_v16, %v5547_v60  ;;  %v8534_v16 = vld [vmem:[%s12266_s5 + $0x200] sm:$0xff]   ;;  %v8555_v18 = vld [vmem:[%s12266_s5 + $0x228] sm:$0xff]   ;;  %v8561_v60 = vld [vmem:[%s12266_s5 + $0x350] sm:$0xff]  }
 0x497   : > { %7601 = vmatprep.subr.bf16.mxu0 %v8523_v20  ;;  %v8554_v49 = vld [vmem:[%s12266_s5 + $0x300] sm:$0xff]   ;;  %v8556_v20 = vld [vmem:[%s12266_s5 + $0x348] sm:$0xff]  }
 0x499   : > { %7676 = vmatpush3.bf16.msra.mxu1 %v8524_v62  ;;  %v5995_v62 = vsel %vm5953_vm11, %v11949_v54, %v5994_v37  ;;  %v8562_v54 = vld [vmem:[%s12266_s5 + $0x278] sm:$0xff]  }
 0x49a   : > { %7602 = vmatpush3.bf16.msra.mxu0 %v8525_v24  ;;  %7677 = vmatprep.subr.bf16.mxu1 %v8527_v38  ;;  %v8558_v24 = vld [vmem:[%s12266_s5 + $0x308] sm:$0xff]   ;;  %v8559_v38 = vld [vmem:[%s12266_s5 + $0x230] sm:$0xff]  }
 0x49b   : > { %7603 = vmatprep.subr.bf16.mxu0 %v8528_v0  ;;  %v6197_v0 = vrot.slane %v12119_v45, 3 }
 0x49c   : > { %5699 = vmatmul.mubr.bf16.gmra.mrb[60].mxu1 %v5548_v56 }
 0x49d   : > { %7678 = vmatpush3.bf16.msra.mxu1 %v8529_v40  ;;  %6128 = vmatprep.mubr.bf16.mxu1 %v11979_v10  ;;  %v8537_v10 = vld [vmem:[%s12266_s5 + $0x2a0] sm:$0xff]   ;;  %v8563_v40 = vld [vmem:[%s12266_s5 + $0x310] sm:$0xff]  }
 0x49e   : > { %7604 = vmatpush3.bf16.msra.mxu0 %v8530_v52  ;;  %7679 = vmatprep.subr.bf16.mxu1 %v8531_v14  ;;  %v8564_v52 = vld [vmem:[%s12266_s5 + $0x238] sm:$0xff]  }
 0x49f   : > { %7645 = vmatprep.subr.bf16.mxu0 %v8532_v17  ;;  %v8565_v14 = vld [vmem:[%s12266_s5 + $0x358] sm:$0xff]   ;;  %v6198_v17 = vsel %vm6188_vm12, %v6193_v47, %v6197_v0  ;;  %v5760_v47 = vsel %vm655_vm1, %v5755_v42, %v5759_v63  ;;  %v8571_v42 = vld [vmem:[%s12266_s5 + $0x370] sm:$0xff]  }
 0x4a1   : > { %5456 = vmatmul.mubr.bf16.vlgmr.msra.gmra.mrb[56].mxu0 %v11959_v25  ;;  %7680 = vmatpush3.bf16.msra.mxu1 %v8533_v59  ;;  %v8539_v25 = vld [vmem:[%s12266_s5 + $0x2e8] sm:$0xff]   ;;  %v8566_v59 = vld [vmem:[%s12266_s5 + $0x318] sm:$0xff]  }
 0x4a2   : > { %5463 = vmatprep.mubr.bf16.mxu0 %v5322_v13  ;;  %7646 = vmatpush3.bf16.msra.mxu0 %v8534_v16  ;;  %v8568_v16 = vld [vmem:[%s12266_s5 + $0x320] sm:$0xff]   ;;  %v6195_v13 = vrot.slane %v12151_v55, 3 }
 0x4a3   : > { %7681 = vmatprep.subr.bf16.mxu1 %v8535_v58  ;;  %7647 = vmatprep.subr.bf16.mxu0 %v8536_v46  ;;  %v5757_v58 = vrot.slane %v12010_v5, 2  ;;  %v8572_v5 = vld [vmem:[%s12266_s5 + $0x330] sm:$0xff]   ;;  %v8573_v46 = vld [vmem:[%s12266_s5 + $0x378] sm:$0xff]  }
 0x4a5   : > { %7682 = vmatpush3.bf16.msra.mxu1 %v8537_v10 }
 0x4a6   : > { %7648 = vmatpush3.bf16.msra.mxu0 %v8538_v19  ;;  %7683 = vmatprep.subr.bf16.mxu1 %v8539_v25 }
 0x4a7   : > { %7649 = vmatprep.subr.bf16.mxu0 %v8540_v7 }
 0x4a9   : > { %5464 = vmatmul.mubr.bf16.gmra.mrb[60].mxu0 %v5320_v27  ;;  %7684 = vmatpush3.bf16.msra.mxu1 %v8541_v29 }
 0x4aa   : > { %7650 = vmatpush3.bf16.msra.mxu0 %v8542_v8  ;;  %5893 = vmatprep.mubr.bf16.mxu0 %v11984_v21  ;;  %v8549_v21 = vld [vmem:[%s12266_s5 + $0x2b8] sm:$0xff]  }
 0x4ab   : > { %7685 = vmatprep.subr.bf16.mxu1 %v8543_v4  ;;  %7651 = vmatprep.subr.bf16.mxu0 %v8544_v1 }
 0x4ad   : > { %7686 = vmatpush3.bf16.msra.mxu1 %v8545_v36 }
 0x4ae   : > { %7652 = vmatpush3.bf16.msra.mxu0 %v8546_v35  ;;  %7687 = vmatprep.subr.bf16.mxu1 %v8547_v32 }
 0x4af   : > { %7653 = vmatprep.subr.bf16.mxu0 %v8548_v2 }
 0x4b1   : > { %7688 = vmatpush3.bf16.msra.mxu1 %v8549_v21 }
 0x4b2   : > { %7654 = vmatpush3.bf16.msra.mxu0 %v8550_v41  ;;  %7729 = vmatprep.subr.bf16.mxu1 %v8551_v9 }
 0x4b3   : > { %7655 = vmatprep.subr.bf16.mxu0 %v8552_v61 }
 0x4b4   : > { %6129 = vmatmul.mubr.bf16.vlgmr.msra.gmra.mrb[64].mxu1 %v12021_v12  ;;  %v5985_v12 = vor.u32 %v5984_v51, %v5981_v43 }
 0x4b5   : > { %6136 = vmatprep.mubr.bf16.mxu1 %v5995_v62  ;;  %7737 = vmatpush3.bf16.msra.mxu1 %v8554_v49 }
 0x4b6   : > { %7656 = vmatpush3.bf16.msra.mxu0 %v8555_v18  ;;  %7730 = vmatprep.subr.bf16.mxu1 %v8556_v20  ;;  %v5986_v56 = vsel %vm5953_vm11, %v11987_v39, %v5985_v12  ;;  %v8567_v39 = vld [vmem:[%s12266_s5 + $0x360] sm:$0xff]  }
 0x4b7   : > { %7657 = vmatprep.subr.bf16.mxu0 %v8557_v44 }
 0x4b9   : > { %7738 = vmatpush3.bf16.msra.mxu1 %v8558_v24 }
 0x4ba   : > { %7658 = vmatpush3.bf16.msra.mxu0 %v8559_v38  ;;  %7731 = vmatprep.subr.bf16.mxu1 %v8561_v60 }
 0x4bb   : > { %7659 = vmatprep.subr.bf16.mxu0 %v8562_v54 }
 0x4bc   : > { %6137 = vmatmul.mubr.bf16.gmra.mrb[68].mxu1 %v5986_v56 }
 0x4bd   : > { %7739 = vmatpush3.bf16.msra.mxu1 %v8563_v40  ;;  %6339 = vmatprep.mubr.bf16.mxu1 %v6198_v17 }
 0x4be   : > { %7660 = vmatpush3.bf16.msra.mxu0 %v8564_v52  ;;  %7732 = vmatprep.subr.bf16.mxu1 %v8565_v14 }
 0x4bf   : > { %7701 = vmatprep.subr.bf16.mxu0 %v8551_v9 }
 0x4c1   : > { %5894 = vmatmul.mubr.bf16.vlgmr.msra.gmra.mrb[64].mxu0 %v12015_v33  ;;  %7740 = vmatpush3.bf16.msra.mxu1 %v8566_v59  ;;  %v5758_v33 = vsel %vm655_vm1, %v5752_v3, %v5757_v58  ;;  %v8574_v3 = vld [vmem:[%s12266_s5 + $0x338] sm:$0xff]  }
 0x4c2   : > { %5901 = vmatprep.mubr.bf16.mxu0 %v5760_v47  ;;  %7702 = vmatpush3.bf16.msra.mxu0 %v8554_v49 }
 0x4c3   : > { %7733 = vmatprep.subr.bf16.mxu1 %v8567_v39  ;;  %7703 = vmatprep.subr.bf16.mxu0 %v8556_v20 }
 0x4c5   : > { %7741 = vmatpush3.bf16.msra.mxu1 %v8568_v16 }
 0x4c6   : > { %7704 = vmatpush3.bf16.msra.mxu0 %v8558_v24  ;;  %7734 = vmatprep.subr.bf16.mxu1 %v8569_v6 }
 0x4c7   : > { %7705 = vmatprep.subr.bf16.mxu0 %v8561_v60 }
 0x4c9   : > { %5902 = vmatmul.mubr.bf16.gmra.mrb[68].mxu0 %v5758_v33  ;;  %7742 = vmatpush3.bf16.msra.mxu1 %v8570_v34 }
 0x4ca   : > { %7706 = vmatpush3.bf16.msra.mxu0 %v8563_v40  ;;  %6331 = vmatprep.mubr.bf16.mxu0 %v12034_v22  ;;  %v6196_v22 = vsel %vm6188_vm12, %v6190_v50, %v6195_v13 }
 0x4cb   : > { %7735 = vmatprep.subr.bf16.mxu1 %v8571_v42  ;;  %7707 = vmatprep.subr.bf16.mxu0 %v8565_v14 }
 0x4cd   : > { %7743 = vmatpush3.bf16.msra.mxu1 %v8572_v5 }
 0x4ce   : > { %7708 = vmatpush3.bf16.msra.mxu0 %v8566_v59  ;;  %7736 = vmatprep.subr.bf16.mxu1 %v8573_v46 }
 0x4cf   : > { %7709 = vmatprep.subr.bf16.mxu0 %v8567_v39 }
 0x4d1   : > { %7744 = vmatpush3.bf16.msra.mxu1 %v8574_v3 }
 0x4d2   : > { %7710 = vmatpush3.bf16.msra.mxu0 %v8568_v16 }
 0x4d3   : > { %7711 = vmatprep.subr.bf16.mxu0 %v8569_v6 }
 0x4d4   : > { %6340 = vmatmul.mubr.bf16.vlgmr.msra.gmra.mrb[72].mxu1 %v6196_v22 }
 0x4d6   : > { %7712 = vmatpush3.bf16.msra.mxu0 %v8570_v34 }
 0x4d7   : > { %7713 = vmatprep.subr.bf16.mxu0 %v8571_v42 }
 0x4da   : > { %7714 = vmatpush3.bf16.msra.mxu0 %v8572_v5 }
 0x4db   : > { %7715 = vmatprep.subr.bf16.mxu0 %v8573_v46 }
 0x4de   : > { %7716 = vmatpush3.bf16.msra.mxu0 %v8574_v3 }
 0x4e1   : > { %6332 = vmatmul.mubr.bf16.vlgmr.msra.gmra.mrb[72].mxu0 %v12026_v11 }
 0x547   : > { %v7577_v10 = vpop.f32.mrb[48].mxu1 }
 0x548   : > { %v7578_v26 = vpop.f32.mrb[49].mxu1 }
 0x549   : > { %v7579_v19 = vadd.f32 %v7578_v26, %v7577_v10  ;;  %v7580_v25 = vpop.f32.mrb[50].mxu1 }
 0x54a   : > { %v7581_v7 = vpop.f32.mrb[51].mxu1 }
 0x54b   : > { %v7582_v57 = vadd.f32 %v7581_v7, %v7580_v25 }
 0x54f   : > { %v7583_v45 = vpop.f32.mrb[52].mxu1 }
 0x550   : > { %v7584_v29 = vpop.f32.mrb[53].mxu1 }
 0x551   : > { %v7585_v53 = vadd.f32 %v7584_v29, %v7583_v45  ;;  %v7586_v8 = vpop.f32.mrb[54].mxu1 }
 0x552   : > { %v7587_v50 = vpop.f32.mrb[55].mxu1 }
 0x553   : > { %v7588_v4 = vadd.f32 %v7587_v50, %v7586_v8 }
 0x554   : > { %v7549_v1 = vpop.f32.mrb[48].mxu0 }
 0x555   : > { %v7550_v27 = vpop.f32.mrb[49].mxu0 }
 0x556   : > { %v7551_v28 = vadd.f32 %v7550_v27, %v7549_v1  ;;  %v7552_v30 = vpop.f32.mrb[50].mxu0 }
 0x557   : > { %v7553_v36 = vpop.f32.mrb[51].mxu0 }
 0x558   : > { %v5260_v35 = vadd.f32 %v7579_v19, %v7551_v28  ;;  %v7554_v32 = vadd.f32 %v7553_v36, %v7552_v30 }
 0x55a   : > { %v5263_v11 = vadd.f32 %v7582_v57, %v7554_v32 }
 0x55c   : > { %v7555_v2 = vpop.f32.mrb[52].mxu0 }
 0x55d   : > { %v7556_v55 = vpop.f32.mrb[53].mxu0 }
 0x55e   : > { %v7557_v23 = vadd.f32 %v7556_v55, %v7555_v2  ;;  %v7558_v31 = vpop.f32.mrb[54].mxu0 }
 0x55f   : > { %v7559_v21 = vpop.f32.mrb[55].mxu0 }
 0x560   : > { %v5268_v41 = vadd.f32 %v7585_v53, %v7557_v23  ;;  %v7560_v9 = vadd.f32 %v7559_v21, %v7558_v31 }
 0x562   : > { %v5271_v61 = vadd.f32 %v7588_v4, %v7560_v9 }
 0x567   : > { %v7633_v48 = vpop.f32.mrb[56].mxu1 }
 0x568   : > { %v7634_v15 = vpop.f32.mrb[57].mxu1 }
 0x569   : > { %v7635_v37 = vadd.f32 %v7634_v15, %v7633_v48  ;;  %v7636_v49 = vpop.f32.mrb[58].mxu1 }
 0x56a   : > { %v7637_v18 = vpop.f32.mrb[59].mxu1 }
 0x56b   : > { %v7638_v20 = vadd.f32 %v7637_v18, %v7636_v49 }
 0x56f   : > { %v7639_v44 = vpop.f32.mrb[60].mxu1 }
 0x570   : > { %v7640_v43 = vpop.f32.mrb[61].mxu1 }
 0x571   : > { %v7641_v51 = vadd.f32 %v7640_v43, %v7639_v44  ;;  %v7642_v62 = vpop.f32.mrb[62].mxu1 }
 0x572   : > { %v7643_v24 = vpop.f32.mrb[63].mxu1 }
 0x573   : > { %v7644_v38 = vadd.f32 %v7643_v24, %v7642_v62 }
 0x574   : > { %v7605_v60 = vpop.f32.mrb[56].mxu0 }
 0x575   : > { %v7606_v12 = vpop.f32.mrb[57].mxu0 }
 0x576   : > { %v7607_v54 = vadd.f32 %v7606_v12, %v7605_v60  ;;  %v7608_v0 = vpop.f32.mrb[58].mxu0 }
 0x577   : > { %v7609_v40 = vpop.f32.mrb[59].mxu0 }
 0x578   : > { %v5472_v52 = vadd.f32 %v7607_v54, %v5260_v35  ;;  %v7610_v14 = vadd.f32 %v7609_v40, %v7608_v0  ;;  %v7516_v0 = vld [vmem:[%s12267_s6] ss:$0 sm:$0xff] }
 0x57a   : > { %v5473_v56 = vadd.f32 %v7610_v14, %v5263_v11  ;;  %v5707_v17 = vadd.f32 %v7635_v37, %v5472_v52 }
 0x57c   : > { %v7611_v59 = vpop.f32.mrb[60].mxu0  ;;  %v5708_v63 = vadd.f32 %v7638_v20, %v5473_v56 }
 0x57d   : > { %v7612_v39 = vpop.f32.mrb[61].mxu0 }
 0x57e   : > { %v7613_v47 = vadd.f32 %v7612_v39, %v7611_v59  ;;  %v7614_v16 = vpop.f32.mrb[62].mxu0 }
 0x57f   : > { %v7615_v6 = vpop.f32.mrb[63].mxu0 }
 0x580   : > { %v5474_v58 = vadd.f32 %v7613_v47, %v5268_v41  ;;  %v7616_v34 = vadd.f32 %v7615_v6, %v7614_v16 }
 0x582   : > { %v5475_v42 = vadd.f32 %v7616_v34, %v5271_v61  ;;  %v5709_v33 = vadd.f32 %v7641_v51, %v5474_v58 }
 0x584   : > { %v5710_v5 = vadd.f32 %v7644_v38, %v5475_v42 }
 0x587   : > { %v7689_v46 = vpop.f32.mrb[64].mxu1 }
 0x588   : > { %v7690_v3 = vpop.f32.mrb[65].mxu1 }
 0x589   : > { %v7691_v13 = vadd.f32 %v7690_v3, %v7689_v46  ;;  %v7692_v22 = vpop.f32.mrb[66].mxu1 }
 0x58a   : > { %v7693_v10 = vpop.f32.mrb[67].mxu1 }
 0x58b   : > { %v7694_v26 = vadd.f32 %v7693_v10, %v7692_v22 }
 0x58f   : > { %v7695_v19 = vpop.f32.mrb[68].mxu1 }
 0x590   : > { %v7696_v25 = vpop.f32.mrb[69].mxu1 }
 0x591   : > { %v7697_v7 = vadd.f32 %v7696_v25, %v7695_v19  ;;  %v7698_v57 = vpop.f32.mrb[70].mxu1 }
 0x592   : > { %v7699_v45 = vpop.f32.mrb[71].mxu1 }
 0x593   : > { %v7700_v29 = vadd.f32 %v7699_v45, %v7698_v57 }
 0x594   : > { %v7661_v53 = vpop.f32.mrb[64].mxu0 }
 0x595   : > { %v7662_v8 = vpop.f32.mrb[65].mxu0 }
 0x596   : > { %v7663_v50 = vadd.f32 %v7662_v8, %v7661_v53  ;;  %v7664_v4 = vpop.f32.mrb[66].mxu0 }
 0x597   : > { %v7665_v1 = vpop.f32.mrb[67].mxu0 }
 0x598   : > { %v5910_v27 = vadd.f32 %v7663_v50, %v5707_v17  ;;  %v7666_v28 = vadd.f32 %v7665_v1, %v7664_v4 }
 0x59a   : > { %v5911_v30 = vadd.f32 %v7666_v28, %v5708_v63  ;;  %v6145_v36 = vadd.f32 %v7691_v13, %v5910_v27 }
 0x59c   : > { %v7667_v35 = vpop.f32.mrb[68].mxu0  ;;  %v6146_v32 = vadd.f32 %v7694_v26, %v5911_v30 }
 0x59d   : > { %v7668_v11 = vpop.f32.mrb[69].mxu0 }
 0x59e   : > { %v7669_v2 = vadd.f32 %v7668_v11, %v7667_v35  ;;  %v7670_v55 = vpop.f32.mrb[70].mxu0 }
 0x59f   : > { %v7671_v23 = vpop.f32.mrb[71].mxu0 }
 0x5a0   : > { %v5912_v31 = vadd.f32 %v7669_v2, %v5709_v33  ;;  %v7672_v21 = vadd.f32 %v7671_v23, %v7670_v55 }
 0x5a2   : > { %v5913_v41 = vadd.f32 %v7672_v21, %v5710_v5  ;;  %v6147_v9 = vadd.f32 %v7697_v7, %v5912_v31 }
 0x5a4   : > { %v6148_v61 = vadd.f32 %v7700_v29, %v5913_v41 }
 0x5a7   : > { %v7723_v48 = vpop.f32.mrb[72].mxu1 }
 0x5a8   : > { %v7724_v15 = vpop.f32.mrb[73].mxu1 }
 0x5a9   : > { %v7725_v37 = vadd.f32 %v7724_v15, %v7723_v48  ;;  %v7726_v49 = vpop.f32.mrb[74].mxu1 }
 0x5aa   : > { %v7727_v18 = vpop.f32.mrb[75].mxu1 }
 0x5ab   : > { %v6350_v20 = vadd.f32 %v7725_v37, %v6147_v9  ;;  %v7728_v44 = vadd.f32 %v7727_v18, %v7726_v49 }
 0x5ad   : > { %v6351_v43 = vadd.f32 %v7728_v44, %v6148_v61  ;;  %v6361_v56 = vadd.f32 %v7516_v0, %v6350_v20 }
 0x5af   : > { %v6362_v17 = vadd.f32 %v7516_v0, %v6351_v43  ;;  %6365 = vst [vmem:[%s326_s25 + $0x10] sm:$0xff] %v6361_v56 }
 0x5b1   : > { %6366 = vst [vmem:[%s326_s25 + $0x18] sm:$0xff] %v6362_v17 }
 0x5b4   : > { %v7717_v51 = vpop.f32.mrb[72].mxu0 }
 0x5b5   : > { %v7718_v62 = vpop.f32.mrb[73].mxu0 }
 0x5b6   : > { %v7719_v24 = vadd.f32 %v7718_v62, %v7717_v51  ;;  %v7720_v38 = vpop.f32.mrb[74].mxu0 }
 0x5b7   : > { %v7721_v60 = vpop.f32.mrb[75].mxu0 }
 0x5b8   : > { %v6348_v12 = vadd.f32 %v7719_v24, %v6145_v36  ;;  %v7722_v54 = vadd.f32 %v7721_v60, %v7720_v38 }
 0x5ba   : > { %v6359_v40 = vadd.f32 %v7516_v0, %v6348_v12  ;;  %v6349_v52 = vadd.f32 %v7722_v54, %v6146_v32 }
 0x5bc   : > { %6363 = vst [vmem:[%s326_s25] sm:$0xff] %v6359_v40  ;;  %v6360_v14 = vadd.f32 %v7516_v0, %v6349_v52 }
 0x5be   : > { %6364 = vst [vmem:[%s326_s25 + $0x8] sm:$0xff] %v6360_v14 }
 0x5bf PF: > { %s19_s27 = sadd.s32 1, %s8733_s27  }
 0x5c0   : > { %p16_p5 = scmp.ge.s32.totalorder %s19_s27, 4  }
 0x5c2   :  { %18 = sbr.rel (!%p16_p5) target bundleno = 1 (0x1), region = 100 }

</bundles_post_ra>
